<compile_context>
chip_gen: v5e
topology: v5e:2x2
jax: 0.10.0
libtpu: 0.0.40
codegen_flags: <defaults>
</compile_context>

<pallas_src>
import math
from functools import partial

import jax
import jax.numpy as jnp
from jax.experimental import pallas as pl
from jax.experimental.pallas import tpu as pltpu

LN_EPS = 1e-12                     # PyTorch BertLayerNorm default
_INV_SQRT2 = 1.0 / math.sqrt(2.0)
VMEM_LIMIT = 64 * 1024 * 1024      # explicit scoped-VMEM budget (v5e default is 16 MiB)


def _layernorm(x, gamma, beta):
    mu = jnp.mean(x, axis=-1, keepdims=True)
    var = jnp.mean((x - mu) ** 2, axis=-1, keepdims=True)
    return (x - mu) * jax.lax.rsqrt(var + LN_EPS) * gamma + beta


# ---------------------------------------------------------------------------
# Kernel 1: fused embedding lookup (word+age+seg+pos) + sum + LayerNorm.
#   Tables are VMEM-resident (constant index_map); row gather is a one-hot
#   MXU matmul so no XLA gather round trips touch HBM.
#   TODO(synk): for large vocabularies replace the one-hot-matmul gather with
#   a DMA row-gather (pl.Element / scalar-prefetched ids).
# ---------------------------------------------------------------------------
def embed_ln_kernel(rid_ref, aid_ref, sid_ref, pid_ref,
                    wt_ref, at_ref, st_ref, pt_ref, g_ref, b_ref, out_ref):
    def gather(table_ref, ids_ref):
        ids = ids_ref[...]                                   # (tile_m, 1) int32
        vocab = table_ref.shape[0]
        iota = jax.lax.broadcasted_iota(jnp.int32, (ids.shape[0], vocab), 1)
        onehot = (iota == ids).astype(jnp.float32)           # (tile_m, vocab)
        return jnp.dot(onehot, table_ref[...],
                       preferred_element_type=jnp.float32)   # (tile_m, H)

    s = (gather(wt_ref, rid_ref) + gather(at_ref, aid_ref)
         + gather(st_ref, sid_ref) + gather(pt_ref, pid_ref))
    out_ref[...] = _layernorm(s, g_ref[...], b_ref[...])


def embed_ln(rid, aid, sid, pid, wt, at, st, pt, gamma, beta, *, tile_m):
    M = rid.shape[0]
    H = wt.shape[1]
    grid = (pl.cdiv(M, tile_m),)
    idsp = pl.BlockSpec((tile_m, 1), lambda i: (i, 0))
    tabsp = lambda t: pl.BlockSpec(t.shape, lambda i: (0, 0))
    vecsp = pl.BlockSpec((1, H), lambda i: (0, 0))
    outsp = pl.BlockSpec((tile_m, H), lambda i: (i, 0))
    return pl.pallas_call(
        embed_ln_kernel,
        out_shape=jax.ShapeDtypeStruct((M, H), jnp.float32),
        grid_spec=pltpu.PrefetchScalarGridSpec(
            num_scalar_prefetch=0, grid=grid,
            in_specs=[idsp, idsp, idsp, idsp,
                      tabsp(wt), tabsp(at), tabsp(st), tabsp(pt),
                      vecsp, vecsp],
            out_specs=outsp),
        compiler_params=pltpu.CompilerParams(
            dimension_semantics=("parallel",),
            vmem_limit_bytes=VMEM_LIMIT),
    )(rid, aid, sid, pid, wt, at, st, pt, gamma, beta)


# ---------------------------------------------------------------------------
# Kernel 2: one fused BERT encoder layer, grid = (batch,).
#   QKV -> per-head exact-softmax attention (full row in VMEM) ->
#   output proj + LN1 -> FFN (erf-GELU) + LN2.
#   TODO(synk): regain a q-tile grid axis (flash-style) for sequences too long
#   to hold K/V for a whole example in VMEM.
# ---------------------------------------------------------------------------
def layer_kernel(x_ref, bias_ref,
                 wq_ref, bq_ref, wk_ref, bk_ref, wv_ref, bv_ref,
                 wo_ref, bo_ref, g1_ref, b1_ref,
                 wi_ref, bi_ref, wf_ref, bf_ref, g2_ref, b2_ref,
                 out_ref, *, num_heads, scale):
    x = x_ref[0]                                             # (L, H) f32
    xb = x.astype(jnp.bfloat16)
    H = x.shape[1]
    hd = H // num_heads

    # QKV: three direct dot->use chains (no 3H-wide temp); fold 1/sqrt(hd) in q
    q = (jnp.dot(xb, wq_ref[...], preferred_element_type=jnp.float32)
         + bq_ref[...]) * scale
    k = jnp.dot(xb, wk_ref[...], preferred_element_type=jnp.float32) + bk_ref[...]
    v = jnp.dot(xb, wv_ref[...], preferred_element_type=jnp.float32) + bv_ref[...]
    q = q.astype(jnp.bfloat16)
    k = k.astype(jnp.bfloat16)
    v = v.astype(jnp.bfloat16)

    bias = bias_ref[0]                                       # (1, L) f32 additive mask

    ctx_heads = []
    for h in range(num_heads):                               # unrolled; heads are few
        sl = slice(h * hd, (h + 1) * hd)
        q_h = q[:, sl]                                       # (L, hd) bf16
        k_h = k[:, sl]
        v_h = v[:, sl]
        # scores = q_h @ k_h^T  (contraction on dim 1 of both -> no transpose)
        s = jax.lax.dot_general(q_h, k_h, (((1,), (1,)), ((), ())),
                                preferred_element_type=jnp.float32)   # (L, L)
        s = s + bias
        m = jnp.max(s, axis=-1, keepdims=True)
        p = jnp.exp(s - m)                                   # unnormalized probs
        denom = jnp.sum(p, axis=-1, keepdims=True)
        ctx_h = jnp.dot(p.astype(jnp.bfloat16), v_h,
                        preferred_element_type=jnp.float32)  # (L, hd) f32
        ctx_heads.append(ctx_h * pl.reciprocal(denom, approx=True))
    ctx = jnp.concatenate(ctx_heads, axis=-1).astype(jnp.bfloat16)    # (L, H) lane-dense

    attn_out = jnp.dot(ctx, wo_ref[...],
                       preferred_element_type=jnp.float32) + bo_ref[...]
    h1 = _layernorm(attn_out + x, g1_ref[...], b1_ref[...])

    inter = jnp.dot(h1.astype(jnp.bfloat16), wi_ref[...],
                    preferred_element_type=jnp.float32) + bi_ref[...]
    inter = 0.5 * inter * (1.0 + jax.lax.erf(inter * _INV_SQRT2))     # erf GELU

    ffn = jnp.dot(inter.astype(jnp.bfloat16), wf_ref[...],
                  preferred_element_type=jnp.float32) + bf_ref[...]
    out_ref[0] = _layernorm(ffn + h1, g2_ref[...], b2_ref[...])


def encoder_layer(h, bias, lp, *, num_heads, scale):
    B, L, H = h.shape
    I = lp['wi'].shape[1]
    tok = pl.BlockSpec((1, L, H), lambda b: (b, 0, 0))
    bsp = pl.BlockSpec((1, 1, L), lambda b: (b, 0, 0))
    cw = lambda r, c: pl.BlockSpec((r, c), lambda b: (0, 0))  # VMEM-resident weights
    return pl.pallas_call(
        partial(layer_kernel, num_heads=num_heads, scale=scale),
        out_shape=jax.ShapeDtypeStruct((B, L, H), jnp.float32),
        grid_spec=pltpu.PrefetchScalarGridSpec(
            num_scalar_prefetch=0, grid=(B,),
            in_specs=[tok, bsp,
                      cw(H, H), cw(1, H), cw(H, H), cw(1, H), cw(H, H), cw(1, H),
                      cw(H, H), cw(1, H), cw(1, H), cw(1, H),
                      cw(H, I), cw(1, I), cw(I, H), cw(1, H),
                      cw(1, H), cw(1, H)],
            out_specs=tok),
        compiler_params=pltpu.CompilerParams(
            dimension_semantics=("parallel",),
            vmem_limit_bytes=VMEM_LIMIT),
    )(h, bias, lp['wq'], lp['bq'], lp['wk'], lp['bk'], lp['wv'], lp['bv'],
      lp['wo'], lp['bo'], lp['ln1_g'], lp['ln1_b'],
      lp['wi'], lp['bi'], lp['wf'], lp['bf'], lp['ln2_g'], lp['ln2_b'])


# ---------------------------------------------------------------------------
# Deterministic synthetic parameters (no checkpoint load)
# ---------------------------------------------------------------------------
def init_behrt_params(key, *, vocab, age_vocab, seg_vocab, max_pos,
                      hidden, intermediate, num_layers):
    def nrm(k, shape):
        return (0.02 * jax.random.normal(k, shape)).astype(jnp.float32)

    keys = jax.random.split(key, 8 + num_layers)
    params = {
        'word_emb': nrm(keys[0], (vocab, hidden)),
        'age_emb':  nrm(keys[1], (age_vocab, hidden)),
        'seg_emb':  nrm(keys[2], (seg_vocab, hidden)),
        'pos_emb':  nrm(keys[3], (max_pos, hidden)),
        'emb_ln_g': jnp.ones((1, hidden), jnp.float32),
        'emb_ln_b': jnp.zeros((1, hidden), jnp.float32),
        'layers': [],
    }
    for li in range(num_layers):
        lk = jax.random.split(keys[8 + li], 6)
        params['layers'].append({
            'wq': nrm(lk[0], (hidden, hidden)).astype(jnp.bfloat16),
            'bq': jnp.zeros((1, hidden), jnp.float32),
            'wk': nrm(lk[1], (hidden, hidden)).astype(jnp.bfloat16),
            'bk': jnp.zeros((1, hidden), jnp.float32),
            'wv': nrm(lk[2], (hidden, hidden)).astype(jnp.bfloat16),
            'bv': jnp.zeros((1, hidden), jnp.float32),
            'wo': nrm(lk[3], (hidden, hidden)).astype(jnp.bfloat16),
            'bo': jnp.zeros((1, hidden), jnp.float32),
            'ln1_g': jnp.ones((1, hidden), jnp.float32),
            'ln1_b': jnp.zeros((1, hidden), jnp.float32),
            'wi': nrm(lk[4], (hidden, intermediate)).astype(jnp.bfloat16),
            'bi': jnp.zeros((1, intermediate), jnp.float32),
            'wf': nrm(lk[5], (intermediate, hidden)).astype(jnp.bfloat16),
            'bf': jnp.zeros((1, hidden), jnp.float32),
            'ln2_g': jnp.ones((1, hidden), jnp.float32),
            'ln2_b': jnp.zeros((1, hidden), jnp.float32),
        })
    return params


# ---------------------------------------------------------------------------
# BEHRT forward: Embedding -> Aggregator(BertEncoder, encounter=False)
# (dropout is a no-op in eval mode)
# ---------------------------------------------------------------------------
def behrt_forward(params, record, age, seg, position, att_mask, *,
                  num_heads, tile_m=None):
    B, L = record.shape
    H = params['word_emb'].shape[1]
    hd = H // num_heads
    M = B * L
    tile_m = tile_m if tile_m is not None else min(M, 512)   # big token tiles

    ids = lambda t: t.reshape(M, 1).astype(jnp.int32)
    # pad table rows to a multiple of 8 (sublane alignment); padded rows are
    # never selected by the one-hot gather.
    pad8 = lambda t: jnp.pad(t, ((0, (-t.shape[0]) % 8), (0, 0)))

    h = embed_ln(ids(record), ids(age), ids(seg), ids(position),
                 pad8(params['word_emb']), pad8(params['age_emb']),
                 pad8(params['seg_emb']), pad8(params['pos_emb']),
                 params['emb_ln_g'], params['emb_ln_b'],
                 tile_m=tile_m)                               # (M, H) f32
    h = h.reshape(B, L, H)

    # additive mask bias (1 - mask) * -10000, computed once, reused by all layers
    bias = ((1.0 - att_mask.astype(jnp.float32)) * (-10000.0)).reshape(B, 1, L)

    scale = 1.0 / math.sqrt(hd)
    for lp in params['layers']:
        h = encoder_layer(h, bias, lp, num_heads=num_heads, scale=scale)
    return h                                                  # last encoded layer


if __name__ == "__main__":
    B, L, H = 2, 16, 128          # lane-dense hidden (multiple of 128)
    NUM_HEADS = 2                 # head_dim = 64
    INTERMEDIATE = 256
    NUM_LAYERS = 2                # params['aggregator_num_layer']
    VOCAB, AGE_VOCAB, SEG_VOCAB, MAX_POS = 50, 20, 2, 64

    root = jax.random.PRNGKey(0)
    kp, kr, ka, ks = jax.random.split(root, 4)

    params = init_behrt_params(
        kp, vocab=VOCAB, age_vocab=AGE_VOCAB, seg_vocab=SEG_VOCAB,
        max_pos=MAX_POS, hidden=H, intermediate=INTERMEDIATE,
        num_layers=NUM_LAYERS)

    record = jax.random.randint(kr, (B, L), 0, VOCAB, dtype=jnp.int32)
    age = jax.random.randint(ka, (B, L), 0, AGE_VOCAB, dtype=jnp.int32)
    seg = jax.random.randint(ks, (B, L), 0, SEG_VOCAB, dtype=jnp.int32)
    position = jnp.tile(jnp.arange(L, dtype=jnp.int32)[None, :], (B, 1))
    # mask: first row fully valid, second row has 5 padding positions
    att_mask = jnp.stack([
        jnp.ones((L,), jnp.int32),
        jnp.concatenate([jnp.ones((L - 5,), jnp.int32), jnp.zeros((5,), jnp.int32)]),
    ])

    fwd = jax.jit(partial(behrt_forward, num_heads=NUM_HEADS))
    out = fwd(params, record, age, seg, position, att_mask)
    out = jax.block_until_ready(out)
    assert out.shape == (B, L, H) and bool(jnp.all(jnp.isfinite(out)))
    print("KERNEL_OK")
</pallas_src>

<mosaic_0001>
module attributes {stable_mosaic.version = 11 : i64} {
  func.func @layer_kernel(%arg0: i32, %arg1: memref<1x16x128xf32, #tpu.memory_space<vmem>>, %arg2: memref<1x1x16xf32, #tpu.memory_space<vmem>>, %arg3: memref<128x128xbf16, #tpu.memory_space<vmem>>, %arg4: memref<1x128xf32, #tpu.memory_space<vmem>>, %arg5: memref<128x128xbf16, #tpu.memory_space<vmem>>, %arg6: memref<1x128xf32, #tpu.memory_space<vmem>>, %arg7: memref<128x128xbf16, #tpu.memory_space<vmem>>, %arg8: memref<1x128xf32, #tpu.memory_space<vmem>>, %arg9: memref<128x128xbf16, #tpu.memory_space<vmem>>, %arg10: memref<1x128xf32, #tpu.memory_space<vmem>>, %arg11: memref<1x128xf32, #tpu.memory_space<vmem>>, %arg12: memref<1x128xf32, #tpu.memory_space<vmem>>, %arg13: memref<128x256xbf16, #tpu.memory_space<vmem>>, %arg14: memref<1x256xf32, #tpu.memory_space<vmem>>, %arg15: memref<256x128xbf16, #tpu.memory_space<vmem>>, %arg16: memref<1x128xf32, #tpu.memory_space<vmem>>, %arg17: memref<1x128xf32, #tpu.memory_space<vmem>>, %arg18: memref<1x128xf32, #tpu.memory_space<vmem>>, %arg19: memref<1x16x128xf32, #tpu.memory_space<vmem>>) attributes {dimension_semantics = [#tpu.dimension_semantics<parallel>], iteration_bounds = array<i64: 2>, scalar_prefetch = 0 : i64, scratch_operands = 0 : i64, tpu.core_type = #tpu.core_type<tc>, window_params = [{transform_indices = @transform_0, window_bounds = array<i64: 1, 16, 128>}, {transform_indices = @transform_1, window_bounds = array<i64: 1, 1, 16>}, {pipeline_mode = #tpu.pipeline_mode<synchronous>, transform_indices = @transform_2, window_bounds = array<i64: 128, 128>}, {pipeline_mode = #tpu.pipeline_mode<synchronous>, transform_indices = @transform_3, window_bounds = array<i64: 1, 128>}, {pipeline_mode = #tpu.pipeline_mode<synchronous>, transform_indices = @transform_4, window_bounds = array<i64: 128, 128>}, {pipeline_mode = #tpu.pipeline_mode<synchronous>, transform_indices = @transform_5, window_bounds = array<i64: 1, 128>}, {pipeline_mode = #tpu.pipeline_mode<synchronous>, transform_indices = @transform_6, window_bounds = array<i64: 128, 128>}, {pipeline_mode = #tpu.pipeline_mode<synchronous>, transform_indices = @transform_7, window_bounds = array<i64: 1, 128>}, {pipeline_mode = #tpu.pipeline_mode<synchronous>, transform_indices = @transform_8, window_bounds = array<i64: 128, 128>}, {pipeline_mode = #tpu.pipeline_mode<synchronous>, transform_indices = @transform_9, window_bounds = array<i64: 1, 128>}, {pipeline_mode = #tpu.pipeline_mode<synchronous>, transform_indices = @transform_10, window_bounds = array<i64: 1, 128>}, {pipeline_mode = #tpu.pipeline_mode<synchronous>, transform_indices = @transform_11, window_bounds = array<i64: 1, 128>}, {pipeline_mode = #tpu.pipeline_mode<synchronous>, transform_indices = @transform_12, window_bounds = array<i64: 128, 256>}, {pipeline_mode = #tpu.pipeline_mode<synchronous>, transform_indices = @transform_13, window_bounds = array<i64: 1, 256>}, {pipeline_mode = #tpu.pipeline_mode<synchronous>, transform_indices = @transform_14, window_bounds = array<i64: 256, 128>}, {pipeline_mode = #tpu.pipeline_mode<synchronous>, transform_indices = @transform_15, window_bounds = array<i64: 1, 128>}, {pipeline_mode = #tpu.pipeline_mode<synchronous>, transform_indices = @transform_16, window_bounds = array<i64: 1, 128>}, {pipeline_mode = #tpu.pipeline_mode<synchronous>, transform_indices = @transform_17, window_bounds = array<i64: 1, 128>}, {transform_indices = @transform_18, window_bounds = array<i64: 1, 16, 128>}]} {
    %c0 = arith.constant 0 : index
    %c0_0 = arith.constant 0 : index
    %c0_1 = arith.constant 0 : index
    %0 = vector.load %arg1[%c0, %c0_0, %c0_1] : memref<1x16x128xf32, #tpu.memory_space<vmem>>, vector<1x16x128xf32>
    %1 = vector.shape_cast %0 : vector<1x16x128xf32> to vector<16x128xf32>
    %2 = arith.truncf %1 : vector<16x128xf32> to vector<16x128xbf16>
    %c0_2 = arith.constant 0 : index
    %c0_3 = arith.constant 0 : index
    %3 = vector.load %arg3[%c0_2, %c0_3] : memref<128x128xbf16, #tpu.memory_space<vmem>>, vector<128x128xbf16>
    %cst = arith.constant dense<0.000000e+00> : vector<16x128xf32>
    %4 = tpu.matmul %2, %3, %cst {dimension_numbers = #tpu.dot_dimension_numbers<[1], [0], [0], [1], [0, 0, 1, 1], [], []>} : vector<16x128xbf16>, vector<128x128xbf16>, vector<16x128xf32> -> vector<16x128xf32>
    %c0_4 = arith.constant 0 : index
    %c0_5 = arith.constant 0 : index
    %5 = vector.load %arg4[%c0_4, %c0_5] : memref<1x128xf32, #tpu.memory_space<vmem>>, vector<1x128xf32>
    %6 = vector.broadcast %5 : vector<1x128xf32> to vector<16x128xf32>
    %7 = arith.addf %4, %6 : vector<16x128xf32>
    %cst_6 = arith.constant 1.250000e-01 : f32
    %8 = vector.broadcast %cst_6 : f32 to vector<16x128xf32>
    %9 = arith.mulf %7, %8 : vector<16x128xf32>
    %c0_7 = arith.constant 0 : index
    %c0_8 = arith.constant 0 : index
    %10 = vector.load %arg5[%c0_7, %c0_8] : memref<128x128xbf16, #tpu.memory_space<vmem>>, vector<128x128xbf16>
    %cst_9 = arith.constant dense<0.000000e+00> : vector<16x128xf32>
    %11 = tpu.matmul %2, %10, %cst_9 {dimension_numbers = #tpu.dot_dimension_numbers<[1], [0], [0], [1], [0, 0, 1, 1], [], []>} : vector<16x128xbf16>, vector<128x128xbf16>, vector<16x128xf32> -> vector<16x128xf32>
    %c0_10 = arith.constant 0 : index
    %c0_11 = arith.constant 0 : index
    %12 = vector.load %arg6[%c0_10, %c0_11] : memref<1x128xf32, #tpu.memory_space<vmem>>, vector<1x128xf32>
    %13 = vector.broadcast %12 : vector<1x128xf32> to vector<16x128xf32>
    %14 = arith.addf %11, %13 : vector<16x128xf32>
    %c0_12 = arith.constant 0 : index
    %c0_13 = arith.constant 0 : index
    %15 = vector.load %arg7[%c0_12, %c0_13] : memref<128x128xbf16, #tpu.memory_space<vmem>>, vector<128x128xbf16>
    %cst_14 = arith.constant dense<0.000000e+00> : vector<16x128xf32>
    %16 = tpu.matmul %2, %15, %cst_14 {dimension_numbers = #tpu.dot_dimension_numbers<[1], [0], [0], [1], [0, 0, 1, 1], [], []>} : vector<16x128xbf16>, vector<128x128xbf16>, vector<16x128xf32> -> vector<16x128xf32>
    %c0_15 = arith.constant 0 : index
    %c0_16 = arith.constant 0 : index
    %17 = vector.load %arg8[%c0_15, %c0_16] : memref<1x128xf32, #tpu.memory_space<vmem>>, vector<1x128xf32>
    %18 = vector.broadcast %17 : vector<1x128xf32> to vector<16x128xf32>
    %19 = arith.addf %16, %18 : vector<16x128xf32>
    %20 = arith.truncf %9 : vector<16x128xf32> to vector<16x128xbf16>
    %21 = arith.truncf %14 : vector<16x128xf32> to vector<16x128xbf16>
    %22 = arith.truncf %19 : vector<16x128xf32> to vector<16x128xbf16>
    %c0_17 = arith.constant 0 : index
    %c0_18 = arith.constant 0 : index
    %c0_19 = arith.constant 0 : index
    %23 = vector.load %arg2[%c0_17, %c0_18, %c0_19] : memref<1x1x16xf32, #tpu.memory_space<vmem>>, vector<1x1x16xf32>
    %24 = vector.shape_cast %23 : vector<1x1x16xf32> to vector<1x16xf32>
    %25 = vector.extract_strided_slice %20 {offsets = [0, 0], sizes = [16, 64], strides = [1, 1]} : vector<16x128xbf16> to vector<16x64xbf16>
    %26 = vector.extract_strided_slice %21 {offsets = [0, 0], sizes = [16, 64], strides = [1, 1]} : vector<16x128xbf16> to vector<16x64xbf16>
    %27 = vector.extract_strided_slice %22 {offsets = [0, 0], sizes = [16, 64], strides = [1, 1]} : vector<16x128xbf16> to vector<16x64xbf16>
    %cst_20 = arith.constant dense<0.000000e+00> : vector<16x16xf32>
    %28 = tpu.matmul %25, %26, %cst_20 {dimension_numbers = #tpu.dot_dimension_numbers<[1], [1], [0], [0], [0, 0, 1, 0], [], []>} : vector<16x64xbf16>, vector<16x64xbf16>, vector<16x16xf32> -> vector<16x16xf32>
    %29 = vector.broadcast %24 : vector<1x16xf32> to vector<16x16xf32>
    %30 = arith.addf %28, %29 : vector<16x16xf32>
    %cst_21 = arith.constant dense<0xFF800000> : vector<16xf32>
    %31 = vector.multi_reduction <maximumf>, %30, %cst_21 [1] : vector<16x16xf32> to vector<16xf32>
    %32 = vector.shape_cast %31 : vector<16xf32> to vector<16x1xf32>
    %33 = vector.broadcast %32 : vector<16x1xf32> to vector<16x16xf32>
    %34 = arith.subf %30, %33 : vector<16x16xf32>
    %35 = math.exp %34 : vector<16x16xf32>
    %cst_22 = arith.constant dense<0.000000e+00> : vector<16xf32>
    %36 = vector.multi_reduction <add>, %35, %cst_22 [1] : vector<16x16xf32> to vector<16xf32>
    %37 = vector.shape_cast %36 : vector<16xf32> to vector<16x1xf32>
    %38 = arith.truncf %35 : vector<16x16xf32> to vector<16x16xbf16>
    %cst_23 = arith.constant dense<0.000000e+00> : vector<16x64xf32>
    %39 = tpu.matmul %38, %27, %cst_23 {dimension_numbers = #tpu.dot_dimension_numbers<[1], [0], [0], [1], [0, 0, 1, 1], [], []>} : vector<16x16xbf16>, vector<16x64xbf16>, vector<16x64xf32> -> vector<16x64xf32>
    %40 = tpu.reciprocal %37 {approx = true} : vector<16x1xf32> -> vector<16x1xf32>
    %41 = vector.broadcast %40 : vector<16x1xf32> to vector<16x64xf32>
    %42 = arith.mulf %39, %41 : vector<16x64xf32>
    %43 = vector.extract_strided_slice %20 {offsets = [0, 64], sizes = [16, 64], strides = [1, 1]} : vector<16x128xbf16> to vector<16x64xbf16>
    %44 = vector.extract_strided_slice %21 {offsets = [0, 64], sizes = [16, 64], strides = [1, 1]} : vector<16x128xbf16> to vector<16x64xbf16>
    %45 = vector.extract_strided_slice %22 {offsets = [0, 64], sizes = [16, 64], strides = [1, 1]} : vector<16x128xbf16> to vector<16x64xbf16>
    %cst_24 = arith.constant dense<0.000000e+00> : vector<16x16xf32>
    %46 = tpu.matmul %43, %44, %cst_24 {dimension_numbers = #tpu.dot_dimension_numbers<[1], [1], [0], [0], [0, 0, 1, 0], [], []>} : vector<16x64xbf16>, vector<16x64xbf16>, vector<16x16xf32> -> vector<16x16xf32>
    %47 = vector.broadcast %24 : vector<1x16xf32> to vector<16x16xf32>
    %48 = arith.addf %46, %47 : vector<16x16xf32>
    %cst_25 = arith.constant dense<0xFF800000> : vector<16xf32>
    %49 = vector.multi_reduction <maximumf>, %48, %cst_25 [1] : vector<16x16xf32> to vector<16xf32>
    %50 = vector.shape_cast %49 : vector<16xf32> to vector<16x1xf32>
    %51 = vector.broadcast %50 : vector<16x1xf32> to vector<16x16xf32>
    %52 = arith.subf %48, %51 : vector<16x16xf32>
    %53 = math.exp %52 : vector<16x16xf32>
    %cst_26 = arith.constant dense<0.000000e+00> : vector<16xf32>
    %54 = vector.multi_reduction <add>, %53, %cst_26 [1] : vector<16x16xf32> to vector<16xf32>
    %55 = vector.shape_cast %54 : vector<16xf32> to vector<16x1xf32>
    %56 = arith.truncf %53 : vector<16x16xf32> to vector<16x16xbf16>
    %cst_27 = arith.constant dense<0.000000e+00> : vector<16x64xf32>
    %57 = tpu.matmul %56, %45, %cst_27 {dimension_numbers = #tpu.dot_dimension_numbers<[1], [0], [0], [1], [0, 0, 1, 1], [], []>} : vector<16x16xbf16>, vector<16x64xbf16>, vector<16x64xf32> -> vector<16x64xf32>
    %58 = tpu.reciprocal %55 {approx = true} : vector<16x1xf32> -> vector<16x1xf32>
    %59 = vector.broadcast %58 : vector<16x1xf32> to vector<16x64xf32>
    %60 = arith.mulf %57, %59 : vector<16x64xf32>
    %61 = tpu.concatenate %42, %60 in 1 : vector<16x64xf32>, vector<16x64xf32> -> vector<16x128xf32>
    %62 = arith.truncf %61 : vector<16x128xf32> to vector<16x128xbf16>
    %c0_28 = arith.constant 0 : index
    %c0_29 = arith.constant 0 : index
    %63 = vector.load %arg9[%c0_28, %c0_29] : memref<128x128xbf16, #tpu.memory_space<vmem>>, vector<128x128xbf16>
    %cst_30 = arith.constant dense<0.000000e+00> : vector<16x128xf32>
    %64 = tpu.matmul %62, %63, %cst_30 {dimension_numbers = #tpu.dot_dimension_numbers<[1], [0], [0], [1], [0, 0, 1, 1], [], []>} : vector<16x128xbf16>, vector<128x128xbf16>, vector<16x128xf32> -> vector<16x128xf32>
    %c0_31 = arith.constant 0 : index
    %c0_32 = arith.constant 0 : index
    %65 = vector.load %arg10[%c0_31, %c0_32] : memref<1x128xf32, #tpu.memory_space<vmem>>, vector<1x128xf32>
    %66 = vector.broadcast %65 : vector<1x128xf32> to vector<16x128xf32>
    %67 = arith.addf %64, %66 : vector<16x128xf32>
    %68 = arith.addf %67, %1 : vector<16x128xf32>
    %c0_33 = arith.constant 0 : index
    %c0_34 = arith.constant 0 : index
    %69 = vector.load %arg11[%c0_33, %c0_34] : memref<1x128xf32, #tpu.memory_space<vmem>>, vector<1x128xf32>
    %c0_35 = arith.constant 0 : index
    %c0_36 = arith.constant 0 : index
    %70 = vector.load %arg12[%c0_35, %c0_36] : memref<1x128xf32, #tpu.memory_space<vmem>>, vector<1x128xf32>
    %cst_37 = arith.constant dense<0.000000e+00> : vector<16xf32>
    %71 = vector.multi_reduction <add>, %68, %cst_37 [1] : vector<16x128xf32> to vector<16xf32>
    %72 = vector.shape_cast %71 : vector<16xf32> to vector<16x1xf32>
    %cst_38 = arith.constant 1.280000e+02 : f32
    %73 = vector.broadcast %cst_38 : f32 to vector<16x1xf32>
    %74 = arith.divf %72, %73 : vector<16x1xf32>
    %75 = vector.broadcast %74 : vector<16x1xf32> to vector<16x128xf32>
    %76 = arith.subf %68, %75 : vector<16x128xf32>
    %77 = arith.mulf %76, %76 : vector<16x128xf32>
    %cst_39 = arith.constant dense<0.000000e+00> : vector<16xf32>
    %78 = vector.multi_reduction <add>, %77, %cst_39 [1] : vector<16x128xf32> to vector<16xf32>
    %79 = vector.shape_cast %78 : vector<16xf32> to vector<16x1xf32>
    %cst_40 = arith.constant 1.280000e+02 : f32
    %80 = vector.broadcast %cst_40 : f32 to vector<16x1xf32>
    %81 = arith.divf %79, %80 : vector<16x1xf32>
    %82 = vector.broadcast %74 : vector<16x1xf32> to vector<16x128xf32>
    %83 = arith.subf %68, %82 : vector<16x128xf32>
    %cst_41 = arith.constant 9.99999996E-13 : f32
    %84 = vector.broadcast %cst_41 : f32 to vector<16x1xf32>
    %85 = arith.addf %81, %84 : vector<16x1xf32>
    %86 = math.rsqrt %85 : vector<16x1xf32>
    %87 = vector.broadcast %86 : vector<16x1xf32> to vector<16x128xf32>
    %88 = arith.mulf %83, %87 : vector<16x128xf32>
    %89 = vector.broadcast %69 : vector<1x128xf32> to vector<16x128xf32>
    %90 = arith.mulf %88, %89 : vector<16x128xf32>
    %91 = vector.broadcast %70 : vector<1x128xf32> to vector<16x128xf32>
    %92 = arith.addf %90, %91 : vector<16x128xf32>
    %93 = arith.truncf %92 : vector<16x128xf32> to vector<16x128xbf16>
    %c0_42 = arith.constant 0 : index
    %c0_43 = arith.constant 0 : index
    %94 = vector.load %arg13[%c0_42, %c0_43] : memref<128x256xbf16, #tpu.memory_space<vmem>>, vector<128x256xbf16>
    %cst_44 = arith.constant dense<0.000000e+00> : vector<16x256xf32>
    %95 = tpu.matmul %93, %94, %cst_44 {dimension_numbers = #tpu.dot_dimension_numbers<[1], [0], [0], [1], [0, 0, 1, 1], [], []>} : vector<16x128xbf16>, vector<128x256xbf16>, vector<16x256xf32> -> vector<16x256xf32>
    %c0_45 = arith.constant 0 : index
    %c0_46 = arith.constant 0 : index
    %96 = vector.load %arg14[%c0_45, %c0_46] : memref<1x256xf32, #tpu.memory_space<vmem>>, vector<1x256xf32>
    %97 = vector.broadcast %96 : vector<1x256xf32> to vector<16x256xf32>
    %98 = arith.addf %95, %97 : vector<16x256xf32>
    %cst_47 = arith.constant 5.000000e-01 : f32
    %99 = vector.broadcast %cst_47 : f32 to vector<16x256xf32>
    %100 = arith.mulf %99, %98 : vector<16x256xf32>
    %cst_48 = arith.constant 0.707106769 : f32
    %101 = vector.broadcast %cst_48 : f32 to vector<16x256xf32>
    %102 = arith.mulf %98, %101 : vector<16x256xf32>
    %103 = math.erf %102 : vector<16x256xf32>
    %cst_49 = arith.constant 1.000000e+00 : f32
    %104 = vector.broadcast %cst_49 : f32 to vector<16x256xf32>
    %105 = arith.addf %104, %103 : vector<16x256xf32>
    %106 = arith.mulf %100, %105 : vector<16x256xf32>
    %107 = arith.truncf %106 : vector<16x256xf32> to vector<16x256xbf16>
    %c0_50 = arith.constant 0 : index
    %c0_51 = arith.constant 0 : index
    %108 = vector.load %arg15[%c0_50, %c0_51] : memref<256x128xbf16, #tpu.memory_space<vmem>>, vector<256x128xbf16>
    %cst_52 = arith.constant dense<0.000000e+00> : vector<16x128xf32>
    %109 = tpu.matmul %107, %108, %cst_52 {dimension_numbers = #tpu.dot_dimension_numbers<[1], [0], [0], [1], [0, 0, 1, 1], [], []>} : vector<16x256xbf16>, vector<256x128xbf16>, vector<16x128xf32> -> vector<16x128xf32>
    %c0_53 = arith.constant 0 : index
    %c0_54 = arith.constant 0 : index
    %110 = vector.load %arg16[%c0_53, %c0_54] : memref<1x128xf32, #tpu.memory_space<vmem>>, vector<1x128xf32>
    %111 = vector.broadcast %110 : vector<1x128xf32> to vector<16x128xf32>
    %112 = arith.addf %109, %111 : vector<16x128xf32>
    %113 = arith.addf %112, %92 : vector<16x128xf32>
    %c0_55 = arith.constant 0 : index
    %c0_56 = arith.constant 0 : index
    %114 = vector.load %arg17[%c0_55, %c0_56] : memref<1x128xf32, #tpu.memory_space<vmem>>, vector<1x128xf32>
    %c0_57 = arith.constant 0 : index
    %c0_58 = arith.constant 0 : index
    %115 = vector.load %arg18[%c0_57, %c0_58] : memref<1x128xf32, #tpu.memory_space<vmem>>, vector<1x128xf32>
    %cst_59 = arith.constant dense<0.000000e+00> : vector<16xf32>
    %116 = vector.multi_reduction <add>, %113, %cst_59 [1] : vector<16x128xf32> to vector<16xf32>
    %117 = vector.shape_cast %116 : vector<16xf32> to vector<16x1xf32>
    %cst_60 = arith.constant 1.280000e+02 : f32
    %118 = vector.broadcast %cst_60 : f32 to vector<16x1xf32>
    %119 = arith.divf %117, %118 : vector<16x1xf32>
    %120 = vector.broadcast %119 : vector<16x1xf32> to vector<16x128xf32>
    %121 = arith.subf %113, %120 : vector<16x128xf32>
    %122 = arith.mulf %121, %121 : vector<16x128xf32>
    %cst_61 = arith.constant dense<0.000000e+00> : vector<16xf32>
    %123 = vector.multi_reduction <add>, %122, %cst_61 [1] : vector<16x128xf32> to vector<16xf32>
    %124 = vector.shape_cast %123 : vector<16xf32> to vector<16x1xf32>
    %cst_62 = arith.constant 1.280000e+02 : f32
    %125 = vector.broadcast %cst_62 : f32 to vector<16x1xf32>
    %126 = arith.divf %124, %125 : vector<16x1xf32>
    %127 = vector.broadcast %119 : vector<16x1xf32> to vector<16x128xf32>
    %128 = arith.subf %113, %127 : vector<16x128xf32>
    %cst_63 = arith.constant 9.99999996E-13 : f32
    %129 = vector.broadcast %cst_63 : f32 to vector<16x1xf32>
    %130 = arith.addf %126, %129 : vector<16x1xf32>
    %131 = math.rsqrt %130 : vector<16x1xf32>
    %132 = vector.broadcast %131 : vector<16x1xf32> to vector<16x128xf32>
    %133 = arith.mulf %128, %132 : vector<16x128xf32>
    %134 = vector.broadcast %114 : vector<1x128xf32> to vector<16x128xf32>
    %135 = arith.mulf %133, %134 : vector<16x128xf32>
    %136 = vector.broadcast %115 : vector<1x128xf32> to vector<16x128xf32>
    %137 = arith.addf %135, %136 : vector<16x128xf32>
    %c0_64 = arith.constant 0 : index
    %c0_65 = arith.constant 0 : index
    %c0_66 = arith.constant 0 : index
    %138 = vector.load %arg19[%c0_64, %c0_65, %c0_66] : memref<1x16x128xf32, #tpu.memory_space<vmem>>, vector<1x16x128xf32>
    %139 = vector.shape_cast %138 : vector<1x16x128xf32> to vector<16x128xf32>
    %140 = vector.shape_cast %137 : vector<16x128xf32> to vector<1x16x128xf32>
    tpu.vector_store %arg19[%c0_64, %c0_65, %c0_66], %140 {strides = array<i32>} : memref<1x16x128xf32, #tpu.memory_space<vmem>>, vector<1x16x128xf32>,
    return
  }
  func.func @transform_0(%arg0: i32) -> (i32, i32, i32) {
    %c0_i32 = arith.constant 0 : i32
    %c0_i32_0 = arith.constant 0 : i32
    %c0_i32_1 = arith.constant 0 : i32
    return %arg0, %c0_i32, %c0_i32_0 : i32, i32, i32
  }
  func.func @transform_1(%arg0: i32) -> (i32, i32, i32) {
    %c0_i32 = arith.constant 0 : i32
    %c0_i32_0 = arith.constant 0 : i32
    %c0_i32_1 = arith.constant 0 : i32
    return %arg0, %c0_i32, %c0_i32_0 : i32, i32, i32
  }
  func.func @transform_2(%arg0: i32) -> (i32, i32) {
    %c0_i32 = arith.constant 0 : i32
    %c0_i32_0 = arith.constant 0 : i32
    %c0_i32_1 = arith.constant 0 : i32
    return %c0_i32, %c0_i32_0 : i32, i32
  }
  func.func @transform_3(%arg0: i32) -> (i32, i32) {
    %c0_i32 = arith.constant 0 : i32
    %c0_i32_0 = arith.constant 0 : i32
    %c0_i32_1 = arith.constant 0 : i32
    return %c0_i32, %c0_i32_0 : i32, i32
  }
  func.func @transform_4(%arg0: i32) -> (i32, i32) {
    %c0_i32 = arith.constant 0 : i32
    %c0_i32_0 = arith.constant 0 : i32
    %c0_i32_1 = arith.constant 0 : i32
    return %c0_i32, %c0_i32_0 : i32, i32
  }
  func.func @transform_5(%arg0: i32) -> (i32, i32) {
    %c0_i32 = arith.constant 0 : i32
    %c0_i32_0 = arith.constant 0 : i32
    %c0_i32_1 = arith.constant 0 : i32
    return %c0_i32, %c0_i32_0 : i32, i32
  }
  func.func @transform_6(%arg0: i32) -> (i32, i32) {
    %c0_i32 = arith.constant 0 : i32
    %c0_i32_0 = arith.constant 0 : i32
    %c0_i32_1 = arith.constant 0 : i32
    return %c0_i32, %c0_i32_0 : i32, i32
  }
  func.func @transform_7(%arg0: i32) -> (i32, i32) {
    %c0_i32 = arith.constant 0 : i32
    %c0_i32_0 = arith.constant 0 : i32
    %c0_i32_1 = arith.constant 0 : i32
    return %c0_i32, %c0_i32_0 : i32, i32
  }
  func.func @transform_8(%arg0: i32) -> (i32, i32) {
    %c0_i32 = arith.constant 0 : i32
    %c0_i32_0 = arith.constant 0 : i32
    %c0_i32_1 = arith.constant 0 : i32
    return %c0_i32, %c0_i32_0 : i32, i32
  }
  func.func @transform_9(%arg0: i32) -> (i32, i32) {
    %c0_i32 = arith.constant 0 : i32
    %c0_i32_0 = arith.constant 0 : i32
    %c0_i32_1 = arith.constant 0 : i32
    return %c0_i32, %c0_i32_0 : i32, i32
  }
  func.func @transform_10(%arg0: i32) -> (i32, i32) {
    %c0_i32 = arith.constant 0 : i32
    %c0_i32_0 = arith.constant 0 : i32
    %c0_i32_1 = arith.constant 0 : i32
    return %c0_i32, %c0_i32_0 : i32, i32
  }
  func.func @transform_11(%arg0: i32) -> (i32, i32) {
    %c0_i32 = arith.constant 0 : i32
    %c0_i32_0 = arith.constant 0 : i32
    %c0_i32_1 = arith.constant 0 : i32
    return %c0_i32, %c0_i32_0 : i32, i32
  }
  func.func @transform_12(%arg0: i32) -> (i32, i32) {
    %c0_i32 = arith.constant 0 : i32
    %c0_i32_0 = arith.constant 0 : i32
    %c0_i32_1 = arith.constant 0 : i32
    return %c0_i32, %c0_i32_0 : i32, i32
  }
  func.func @transform_13(%arg0: i32) -> (i32, i32) {
    %c0_i32 = arith.constant 0 : i32
    %c0_i32_0 = arith.constant 0 : i32
    %c0_i32_1 = arith.constant 0 : i32
    return %c0_i32, %c0_i32_0 : i32, i32
  }
  func.func @transform_14(%arg0: i32) -> (i32, i32) {
    %c0_i32 = arith.constant 0 : i32
    %c0_i32_0 = arith.constant 0 : i32
    %c0_i32_1 = arith.constant 0 : i32
    return %c0_i32, %c0_i32_0 : i32, i32
  }
  func.func @transform_15(%arg0: i32) -> (i32, i32) {
    %c0_i32 = arith.constant 0 : i32
    %c0_i32_0 = arith.constant 0 : i32
    %c0_i32_1 = arith.constant 0 : i32
    return %c0_i32, %c0_i32_0 : i32, i32
  }
  func.func @transform_16(%arg0: i32) -> (i32, i32) {
    %c0_i32 = arith.constant 0 : i32
    %c0_i32_0 = arith.constant 0 : i32
    %c0_i32_1 = arith.constant 0 : i32
    return %c0_i32, %c0_i32_0 : i32, i32
  }
  func.func @transform_17(%arg0: i32) -> (i32, i32) {
    %c0_i32 = arith.constant 0 : i32
    %c0_i32_0 = arith.constant 0 : i32
    %c0_i32_1 = arith.constant 0 : i32
    return %c0_i32, %c0_i32_0 : i32, i32
  }
  func.func @transform_18(%arg0: i32) -> (i32, i32, i32) {
    %c0_i32 = arith.constant 0 : i32
    %c0_i32_0 = arith.constant 0 : i32
    %c0_i32_1 = arith.constant 0 : i32
    return %arg0, %c0_i32, %c0_i32_0 : i32, i32, i32
  }
}

module attributes {stable_mosaic.version = 11 : i64} {
  func.func @layer_kernel(%arg0: i32, %arg1: memref<1x16x128xf32, #tpu.memory_space<vmem>>, %arg2: memref<1x1x16xf32, #tpu.memory_space<vmem>>, %arg3: memref<128x128xbf16, #tpu.memory_space<vmem>>, %arg4: memref<1x128xf32, #tpu.memory_space<vmem>>, %arg5: memref<128x128xbf16, #tpu.memory_space<vmem>>, %arg6: memref<1x128xf32, #tpu.memory_space<vmem>>, %arg7: memref<128x128xbf16, #tpu.memory_space<vmem>>, %arg8: memref<1x128xf32, #tpu.memory_space<vmem>>, %arg9: memref<128x128xbf16, #tpu.memory_space<vmem>>, %arg10: memref<1x128xf32, #tpu.memory_space<vmem>>, %arg11: memref<1x128xf32, #tpu.memory_space<vmem>>, %arg12: memref<1x128xf32, #tpu.memory_space<vmem>>, %arg13: memref<128x256xbf16, #tpu.memory_space<vmem>>, %arg14: memref<1x256xf32, #tpu.memory_space<vmem>>, %arg15: memref<256x128xbf16, #tpu.memory_space<vmem>>, %arg16: memref<1x128xf32, #tpu.memory_space<vmem>>, %arg17: memref<1x128xf32, #tpu.memory_space<vmem>>, %arg18: memref<1x128xf32, #tpu.memory_space<vmem>>, %arg19: memref<1x16x128xf32, #tpu.memory_space<vmem>>) attributes {dimension_semantics = [#tpu.dimension_semantics<parallel>], iteration_bounds = array<i64: 2>, scalar_prefetch = 0 : i64, scratch_operands = 0 : i64, tpu.core_type = #tpu.core_type<tc>, window_params = [{transform_indices = @transform_0, window_bounds = array<i64: 1, 16, 128>}, {transform_indices = @transform_1, window_bounds = array<i64: 1, 1, 16>}, {pipeline_mode = #tpu.pipeline_mode<synchronous>, transform_indices = @transform_2, window_bounds = array<i64: 128, 128>}, {pipeline_mode = #tpu.pipeline_mode<synchronous>, transform_indices = @transform_3, window_bounds = array<i64: 1, 128>}, {pipeline_mode = #tpu.pipeline_mode<synchronous>, transform_indices = @transform_4, window_bounds = array<i64: 128, 128>}, {pipeline_mode = #tpu.pipeline_mode<synchronous>, transform_indices = @transform_5, window_bounds = array<i64: 1, 128>}, {pipeline_mode = #tpu.pipeline_mode<synchronous>, transform_indices = @transform_6, window_bounds = array<i64: 128, 128>}, {pipeline_mode = #tpu.pipeline_mode<synchronous>, transform_indices = @transform_7, window_bounds = array<i64: 1, 128>}, {pipeline_mode = #tpu.pipeline_mode<synchronous>, transform_indices = @transform_8, window_bounds = array<i64: 128, 128>}, {pipeline_mode = #tpu.pipeline_mode<synchronous>, transform_indices = @transform_9, window_bounds = array<i64: 1, 128>}, {pipeline_mode = #tpu.pipeline_mode<synchronous>, transform_indices = @transform_10, window_bounds = array<i64: 1, 128>}, {pipeline_mode = #tpu.pipeline_mode<synchronous>, transform_indices = @transform_11, window_bounds = array<i64: 1, 128>}, {pipeline_mode = #tpu.pipeline_mode<synchronous>, transform_indices = @transform_12, window_bounds = array<i64: 128, 256>}, {pipeline_mode = #tpu.pipeline_mode<synchronous>, transform_indices = @transform_13, window_bounds = array<i64: 1, 256>}, {pipeline_mode = #tpu.pipeline_mode<synchronous>, transform_indices = @transform_14, window_bounds = array<i64: 256, 128>}, {pipeline_mode = #tpu.pipeline_mode<synchronous>, transform_indices = @transform_15, window_bounds = array<i64: 1, 128>}, {pipeline_mode = #tpu.pipeline_mode<synchronous>, transform_indices = @transform_16, window_bounds = array<i64: 1, 128>}, {pipeline_mode = #tpu.pipeline_mode<synchronous>, transform_indices = @transform_17, window_bounds = array<i64: 1, 128>}, {transform_indices = @transform_18, window_bounds = array<i64: 1, 16, 128>}]} {
    %c0 = arith.constant 0 : index
    %c0_0 = arith.constant 0 : index
    %c0_1 = arith.constant 0 : index
    %0 = vector.load %arg1[%c0, %c0_0, %c0_1] : memref<1x16x128xf32, #tpu.memory_space<vmem>>, vector<1x16x128xf32>
    %1 = vector.shape_cast %0 : vector<1x16x128xf32> to vector<16x128xf32>
    %2 = arith.truncf %1 : vector<16x128xf32> to vector<16x128xbf16>
    %c0_2 = arith.constant 0 : index
    %c0_3 = arith.constant 0 : index
    %3 = vector.load %arg3[%c0_2, %c0_3] : memref<128x128xbf16, #tpu.memory_space<vmem>>, vector<128x128xbf16>
    %cst = arith.constant dense<0.000000e+00> : vector<16x128xf32>
    %4 = tpu.matmul %2, %3, %cst {dimension_numbers = #tpu.dot_dimension_numbers<[1], [0], [0], [1], [0, 0, 1, 1], [], []>} : vector<16x128xbf16>, vector<128x128xbf16>, vector<16x128xf32> -> vector<16x128xf32>
    %c0_4 = arith.constant 0 : index
    %c0_5 = arith.constant 0 : index
    %5 = vector.load %arg4[%c0_4, %c0_5] : memref<1x128xf32, #tpu.memory_space<vmem>>, vector<1x128xf32>
    %6 = vector.broadcast %5 : vector<1x128xf32> to vector<16x128xf32>
    %7 = arith.addf %4, %6 : vector<16x128xf32>
    %cst_6 = arith.constant 1.250000e-01 : f32
    %8 = vector.broadcast %cst_6 : f32 to vector<16x128xf32>
    %9 = arith.mulf %7, %8 : vector<16x128xf32>
    %c0_7 = arith.constant 0 : index
    %c0_8 = arith.constant 0 : index
    %10 = vector.load %arg5[%c0_7, %c0_8] : memref<128x128xbf16, #tpu.memory_space<vmem>>, vector<128x128xbf16>
    %cst_9 = arith.constant dense<0.000000e+00> : vector<16x128xf32>
    %11 = tpu.matmul %2, %10, %cst_9 {dimension_numbers = #tpu.dot_dimension_numbers<[1], [0], [0], [1], [0, 0, 1, 1], [], []>} : vector<16x128xbf16>, vector<128x128xbf16>, vector<16x128xf32> -> vector<16x128xf32>
    %c0_10 = arith.constant 0 : index
    %c0_11 = arith.constant 0 : index
    %12 = vector.load %arg6[%c0_10, %c0_11] : memref<1x128xf32, #tpu.memory_space<vmem>>, vector<1x128xf32>
    %13 = vector.broadcast %12 : vector<1x128xf32> to vector<16x128xf32>
    %14 = arith.addf %11, %13 : vector<16x128xf32>
    %c0_12 = arith.constant 0 : index
    %c0_13 = arith.constant 0 : index
    %15 = vector.load %arg7[%c0_12, %c0_13] : memref<128x128xbf16, #tpu.memory_space<vmem>>, vector<128x128xbf16>
    %cst_14 = arith.constant dense<0.000000e+00> : vector<16x128xf32>
    %16 = tpu.matmul %2, %15, %cst_14 {dimension_numbers = #tpu.dot_dimension_numbers<[1], [0], [0], [1], [0, 0, 1, 1], [], []>} : vector<16x128xbf16>, vector<128x128xbf16>, vector<16x128xf32> -> vector<16x128xf32>
    %c0_15 = arith.constant 0 : index
    %c0_16 = arith.constant 0 : index
    %17 = vector.load %arg8[%c0_15, %c0_16] : memref<1x128xf32, #tpu.memory_space<vmem>>, vector<1x128xf32>
    %18 = vector.broadcast %17 : vector<1x128xf32> to vector<16x128xf32>
    %19 = arith.addf %16, %18 : vector<16x128xf32>
    %20 = arith.truncf %9 : vector<16x128xf32> to vector<16x128xbf16>
    %21 = arith.truncf %14 : vector<16x128xf32> to vector<16x128xbf16>
    %22 = arith.truncf %19 : vector<16x128xf32> to vector<16x128xbf16>
    %c0_17 = arith.constant 0 : index
    %c0_18 = arith.constant 0 : index
    %c0_19 = arith.constant 0 : index
    %23 = vector.load %arg2[%c0_17, %c0_18, %c0_19] : memref<1x1x16xf32, #tpu.memory_space<vmem>>, vector<1x1x16xf32>
    %24 = vector.shape_cast %23 : vector<1x1x16xf32> to vector<1x16xf32>
    %25 = vector.extract_strided_slice %20 {offsets = [0, 0], sizes = [16, 64], strides = [1, 1]} : vector<16x128xbf16> to vector<16x64xbf16>
    %26 = vector.extract_strided_slice %21 {offsets = [0, 0], sizes = [16, 64], strides = [1, 1]} : vector<16x128xbf16> to vector<16x64xbf16>
    %27 = vector.extract_strided_slice %22 {offsets = [0, 0], sizes = [16, 64], strides = [1, 1]} : vector<16x128xbf16> to vector<16x64xbf16>
    %cst_20 = arith.constant dense<0.000000e+00> : vector<16x16xf32>
    %28 = tpu.matmul %25, %26, %cst_20 {dimension_numbers = #tpu.dot_dimension_numbers<[1], [1], [0], [0], [0, 0, 1, 0], [], []>} : vector<16x64xbf16>, vector<16x64xbf16>, vector<16x16xf32> -> vector<16x16xf32>
    %29 = vector.broadcast %24 : vector<1x16xf32> to vector<16x16xf32>
    %30 = arith.addf %28, %29 : vector<16x16xf32>
    %cst_21 = arith.constant dense<0xFF800000> : vector<16xf32>
    %31 = vector.multi_reduction <maximumf>, %30, %cst_21 [1] : vector<16x16xf32> to vector<16xf32>
    %32 = vector.shape_cast %31 : vector<16xf32> to vector<16x1xf32>
    %33 = vector.broadcast %32 : vector<16x1xf32> to vector<16x16xf32>
    %34 = arith.subf %30, %33 : vector<16x16xf32>
    %35 = math.exp %34 : vector<16x16xf32>
    %cst_22 = arith.constant dense<0.000000e+00> : vector<16xf32>
    %36 = vector.multi_reduction <add>, %35, %cst_22 [1] : vector<16x16xf32> to vector<16xf32>
    %37 = vector.shape_cast %36 : vector<16xf32> to vector<16x1xf32>
    %38 = arith.truncf %35 : vector<16x16xf32> to vector<16x16xbf16>
    %cst_23 = arith.constant dense<0.000000e+00> : vector<16x64xf32>
    %39 = tpu.matmul %38, %27, %cst_23 {dimension_numbers = #tpu.dot_dimension_numbers<[1], [0], [0], [1], [0, 0, 1, 1], [], []>} : vector<16x16xbf16>, vector<16x64xbf16>, vector<16x64xf32> -> vector<16x64xf32>
    %40 = tpu.reciprocal %37 {approx = true} : vector<16x1xf32> -> vector<16x1xf32>
    %41 = vector.broadcast %40 : vector<16x1xf32> to vector<16x64xf32>
    %42 = arith.mulf %39, %41 : vector<16x64xf32>
    %43 = vector.extract_strided_slice %20 {offsets = [0, 64], sizes = [16, 64], strides = [1, 1]} : vector<16x128xbf16> to vector<16x64xbf16>
    %44 = vector.extract_strided_slice %21 {offsets = [0, 64], sizes = [16, 64], strides = [1, 1]} : vector<16x128xbf16> to vector<16x64xbf16>
    %45 = vector.extract_strided_slice %22 {offsets = [0, 64], sizes = [16, 64], strides = [1, 1]} : vector<16x128xbf16> to vector<16x64xbf16>
    %cst_24 = arith.constant dense<0.000000e+00> : vector<16x16xf32>
    %46 = tpu.matmul %43, %44, %cst_24 {dimension_numbers = #tpu.dot_dimension_numbers<[1], [1], [0], [0], [0, 0, 1, 0], [], []>} : vector<16x64xbf16>, vector<16x64xbf16>, vector<16x16xf32> -> vector<16x16xf32>
    %47 = vector.broadcast %24 : vector<1x16xf32> to vector<16x16xf32>
    %48 = arith.addf %46, %47 : vector<16x16xf32>
    %cst_25 = arith.constant dense<0xFF800000> : vector<16xf32>
    %49 = vector.multi_reduction <maximumf>, %48, %cst_25 [1] : vector<16x16xf32> to vector<16xf32>
    %50 = vector.shape_cast %49 : vector<16xf32> to vector<16x1xf32>
    %51 = vector.broadcast %50 : vector<16x1xf32> to vector<16x16xf32>
    %52 = arith.subf %48, %51 : vector<16x16xf32>
    %53 = math.exp %52 : vector<16x16xf32>
    %cst_26 = arith.constant dense<0.000000e+00> : vector<16xf32>
    %54 = vector.multi_reduction <add>, %53, %cst_26 [1] : vector<16x16xf32> to vector<16xf32>
    %55 = vector.shape_cast %54 : vector<16xf32> to vector<16x1xf32>
    %56 = arith.truncf %53 : vector<16x16xf32> to vector<16x16xbf16>
    %cst_27 = arith.constant dense<0.000000e+00> : vector<16x64xf32>
    %57 = tpu.matmul %56, %45, %cst_27 {dimension_numbers = #tpu.dot_dimension_numbers<[1], [0], [0], [1], [0, 0, 1, 1], [], []>} : vector<16x16xbf16>, vector<16x64xbf16>, vector<16x64xf32> -> vector<16x64xf32>
    %58 = tpu.reciprocal %55 {approx = true} : vector<16x1xf32> -> vector<16x1xf32>
    %59 = vector.broadcast %58 : vector<16x1xf32> to vector<16x64xf32>
    %60 = arith.mulf %57, %59 : vector<16x64xf32>
    %61 = tpu.concatenate %42, %60 in 1 : vector<16x64xf32>, vector<16x64xf32> -> vector<16x128xf32>
    %62 = arith.truncf %61 : vector<16x128xf32> to vector<16x128xbf16>
    %c0_28 = arith.constant 0 : index
    %c0_29 = arith.constant 0 : index
    %63 = vector.load %arg9[%c0_28, %c0_29] : memref<128x128xbf16, #tpu.memory_space<vmem>>, vector<128x128xbf16>
    %cst_30 = arith.constant dense<0.000000e+00> : vector<16x128xf32>
    %64 = tpu.matmul %62, %63, %cst_30 {dimension_numbers = #tpu.dot_dimension_numbers<[1], [0], [0], [1], [0, 0, 1, 1], [], []>} : vector<16x128xbf16>, vector<128x128xbf16>, vector<16x128xf32> -> vector<16x128xf32>
    %c0_31 = arith.constant 0 : index
    %c0_32 = arith.constant 0 : index
    %65 = vector.load %arg10[%c0_31, %c0_32] : memref<1x128xf32, #tpu.memory_space<vmem>>, vector<1x128xf32>
    %66 = vector.broadcast %65 : vector<1x128xf32> to vector<16x128xf32>
    %67 = arith.addf %64, %66 : vector<16x128xf32>
    %68 = arith.addf %67, %1 : vector<16x128xf32>
    %c0_33 = arith.constant 0 : index
    %c0_34 = arith.constant 0 : index
    %69 = vector.load %arg11[%c0_33, %c0_34] : memref<1x128xf32, #tpu.memory_space<vmem>>, vector<1x128xf32>
    %c0_35 = arith.constant 0 : index
    %c0_36 = arith.constant 0 : index
    %70 = vector.load %arg12[%c0_35, %c0_36] : memref<1x128xf32, #tpu.memory_space<vmem>>, vector<1x128xf32>
    %cst_37 = arith.constant dense<0.000000e+00> : vector<16xf32>
    %71 = vector.multi_reduction <add>, %68, %cst_37 [1] : vector<16x128xf32> to vector<16xf32>
    %72 = vector.shape_cast %71 : vector<16xf32> to vector<16x1xf32>
    %cst_38 = arith.constant 1.280000e+02 : f32
    %73 = vector.broadcast %cst_38 : f32 to vector<16x1xf32>
    %74 = arith.divf %72, %73 : vector<16x1xf32>
    %75 = vector.broadcast %74 : vector<16x1xf32> to vector<16x128xf32>
    %76 = arith.subf %68, %75 : vector<16x128xf32>
    %77 = arith.mulf %76, %76 : vector<16x128xf32>
    %cst_39 = arith.constant dense<0.000000e+00> : vector<16xf32>
    %78 = vector.multi_reduction <add>, %77, %cst_39 [1] : vector<16x128xf32> to vector<16xf32>
    %79 = vector.shape_cast %78 : vector<16xf32> to vector<16x1xf32>
    %cst_40 = arith.constant 1.280000e+02 : f32
    %80 = vector.broadcast %cst_40 : f32 to vector<16x1xf32>
    %81 = arith.divf %79, %80 : vector<16x1xf32>
    %82 = vector.broadcast %74 : vector<16x1xf32> to vector<16x128xf32>
    %83 = arith.subf %68, %82 : vector<16x128xf32>
    %cst_41 = arith.constant 9.99999996E-13 : f32
    %84 = vector.broadcast %cst_41 : f32 to vector<16x1xf32>
    %85 = arith.addf %81, %84 : vector<16x1xf32>
    %86 = math.rsqrt %85 : vector<16x1xf32>
    %87 = vector.broadcast %86 : vector<16x1xf32> to vector<16x128xf32>
    %88 = arith.mulf %83, %87 : vector<16x128xf32>
    %89 = vector.broadcast %69 : vector<1x128xf32> to vector<16x128xf32>
    %90 = arith.mulf %88, %89 : vector<16x128xf32>
    %91 = vector.broadcast %70 : vector<1x128xf32> to vector<16x128xf32>
    %92 = arith.addf %90, %91 : vector<16x128xf32>
    %93 = arith.truncf %92 : vector<16x128xf32> to vector<16x128xbf16>
    %c0_42 = arith.constant 0 : index
    %c0_43 = arith.constant 0 : index
    %94 = vector.load %arg13[%c0_42, %c0_43] : memref<128x256xbf16, #tpu.memory_space<vmem>>, vector<128x256xbf16>
    %cst_44 = arith.constant dense<0.000000e+00> : vector<16x256xf32>
    %95 = tpu.matmul %93, %94, %cst_44 {dimension_numbers = #tpu.dot_dimension_numbers<[1], [0], [0], [1], [0, 0, 1, 1], [], []>} : vector<16x128xbf16>, vector<128x256xbf16>, vector<16x256xf32> -> vector<16x256xf32>
    %c0_45 = arith.constant 0 : index
    %c0_46 = arith.constant 0 : index
    %96 = vector.load %arg14[%c0_45, %c0_46] : memref<1x256xf32, #tpu.memory_space<vmem>>, vector<1x256xf32>
    %97 = vector.broadcast %96 : vector<1x256xf32> to vector<16x256xf32>
    %98 = arith.addf %95, %97 : vector<16x256xf32>
    %cst_47 = arith.constant 5.000000e-01 : f32
    %99 = vector.broadcast %cst_47 : f32 to vector<16x256xf32>
    %100 = arith.mulf %99, %98 : vector<16x256xf32>
    %cst_48 = arith.constant 0.707106769 : f32
    %101 = vector.broadcast %cst_48 : f32 to vector<16x256xf32>
    %102 = arith.mulf %98, %101 : vector<16x256xf32>
    %103 = math.erf %102 : vector<16x256xf32>
    %cst_49 = arith.constant 1.000000e+00 : f32
    %104 = vector.broadcast %cst_49 : f32 to vector<16x256xf32>
    %105 = arith.addf %104, %103 : vector<16x256xf32>
    %106 = arith.mulf %100, %105 : vector<16x256xf32>
    %107 = arith.truncf %106 : vector<16x256xf32> to vector<16x256xbf16>
    %c0_50 = arith.constant 0 : index
    %c0_51 = arith.constant 0 : index
    %108 = vector.load %arg15[%c0_50, %c0_51] : memref<256x128xbf16, #tpu.memory_space<vmem>>, vector<256x128xbf16>
    %cst_52 = arith.constant dense<0.000000e+00> : vector<16x128xf32>
    %109 = tpu.matmul %107, %108, %cst_52 {dimension_numbers = #tpu.dot_dimension_numbers<[1], [0], [0], [1], [0, 0, 1, 1], [], []>} : vector<16x256xbf16>, vector<256x128xbf16>, vector<16x128xf32> -> vector<16x128xf32>
    %c0_53 = arith.constant 0 : index
    %c0_54 = arith.constant 0 : index
    %110 = vector.load %arg16[%c0_53, %c0_54] : memref<1x128xf32, #tpu.memory_space<vmem>>, vector<1x128xf32>
    %111 = vector.broadcast %110 : vector<1x128xf32> to vector<16x128xf32>
    %112 = arith.addf %109, %111 : vector<16x128xf32>
    %113 = arith.addf %112, %92 : vector<16x128xf32>
    %c0_55 = arith.constant 0 : index
    %c0_56 = arith.constant 0 : index
    %114 = vector.load %arg17[%c0_55, %c0_56] : memref<1x128xf32, #tpu.memory_space<vmem>>, vector<1x128xf32>
    %c0_57 = arith.constant 0 : index
    %c0_58 = arith.constant 0 : index
    %115 = vector.load %arg18[%c0_57, %c0_58] : memref<1x128xf32, #tpu.memory_space<vmem>>, vector<1x128xf32>
    %cst_59 = arith.constant dense<0.000000e+00> : vector<16xf32>
    %116 = vector.multi_reduction <add>, %113, %cst_59 [1] : vector<16x128xf32> to vector<16xf32>
    %117 = vector.shape_cast %116 : vector<16xf32> to vector<16x1xf32>
    %cst_60 = arith.constant 1.280000e+02 : f32
    %118 = vector.broadcast %cst_60 : f32 to vector<16x1xf32>
    %119 = arith.divf %117, %118 : vector<16x1xf32>
    %120 = vector.broadcast %119 : vector<16x1xf32> to vector<16x128xf32>
    %121 = arith.subf %113, %120 : vector<16x128xf32>
    %122 = arith.mulf %121, %121 : vector<16x128xf32>
    %cst_61 = arith.constant dense<0.000000e+00> : vector<16xf32>
    %123 = vector.multi_reduction <add>, %122, %cst_61 [1] : vector<16x128xf32> to vector<16xf32>
    %124 = vector.shape_cast %123 : vector<16xf32> to vector<16x1xf32>
    %cst_62 = arith.constant 1.280000e+02 : f32
    %125 = vector.broadcast %cst_62 : f32 to vector<16x1xf32>
    %126 = arith.divf %124, %125 : vector<16x1xf32>
    %127 = vector.broadcast %119 : vector<16x1xf32> to vector<16x128xf32>
    %128 = arith.subf %113, %127 : vector<16x128xf32>
    %cst_63 = arith.constant 9.99999996E-13 : f32
    %129 = vector.broadcast %cst_63 : f32 to vector<16x1xf32>
    %130 = arith.addf %126, %129 : vector<16x1xf32>
    %131 = math.rsqrt %130 : vector<16x1xf32>
    %132 = vector.broadcast %131 : vector<16x1xf32> to vector<16x128xf32>
    %133 = arith.mulf %128, %132 : vector<16x128xf32>
    %134 = vector.broadcast %114 : vector<1x128xf32> to vector<16x128xf32>
    %135 = arith.mulf %133, %134 : vector<16x128xf32>
    %136 = vector.broadcast %115 : vector<1x128xf32> to vector<16x128xf32>
    %137 = arith.addf %135, %136 : vector<16x128xf32>
    %c0_64 = arith.constant 0 : index
    %c0_65 = arith.constant 0 : index
    %c0_66 = arith.constant 0 : index
    %138 = vector.load %arg19[%c0_64, %c0_65, %c0_66] : memref<1x16x128xf32, #tpu.memory_space<vmem>>, vector<1x16x128xf32>
    %139 = vector.shape_cast %138 : vector<1x16x128xf32> to vector<16x128xf32>
    %140 = vector.shape_cast %137 : vector<16x128xf32> to vector<1x16x128xf32>
    tpu.vector_store %arg19[%c0_64, %c0_65, %c0_66], %140 {strides = array<i32>} : memref<1x16x128xf32, #tpu.memory_space<vmem>>, vector<1x16x128xf32>,
    return
  }
  func.func @transform_0(%arg0: i32) -> (i32, i32, i32) {
    %c0_i32 = arith.constant 0 : i32
    %c0_i32_0 = arith.constant 0 : i32
    %c0_i32_1 = arith.constant 0 : i32
    return %arg0, %c0_i32, %c0_i32_0 : i32, i32, i32
  }
  func.func @transform_1(%arg0: i32) -> (i32, i32, i32) {
    %c0_i32 = arith.constant 0 : i32
    %c0_i32_0 = arith.constant 0 : i32
    %c0_i32_1 = arith.constant 0 : i32
    return %arg0, %c0_i32, %c0_i32_0 : i32, i32, i32
  }
  func.func @transform_2(%arg0: i32) -> (i32, i32) {
    %c0_i32 = arith.constant 0 : i32
    %c0_i32_0 = arith.constant 0 : i32
    %c0_i32_1 = arith.constant 0 : i32
    return %c0_i32, %c0_i32_0 : i32, i32
  }
  func.func @transform_3(%arg0: i32) -> (i32, i32) {
    %c0_i32 = arith.constant 0 : i32
    %c0_i32_0 = arith.constant 0 : i32
    %c0_i32_1 = arith.constant 0 : i32
    return %c0_i32, %c0_i32_0 : i32, i32
  }
  func.func @transform_4(%arg0: i32) -> (i32, i32) {
    %c0_i32 = arith.constant 0 : i32
    %c0_i32_0 = arith.constant 0 : i32
    %c0_i32_1 = arith.constant 0 : i32
    return %c0_i32, %c0_i32_0 : i32, i32
  }
  func.func @transform_5(%arg0: i32) -> (i32, i32) {
    %c0_i32 = arith.constant 0 : i32
    %c0_i32_0 = arith.constant 0 : i32
    %c0_i32_1 = arith.constant 0 : i32
    return %c0_i32, %c0_i32_0 : i32, i32
  }
  func.func @transform_6(%arg0: i32) -> (i32, i32) {
    %c0_i32 = arith.constant 0 : i32
    %c0_i32_0 = arith.constant 0 : i32
    %c0_i32_1 = arith.constant 0 : i32
    return %c0_i32, %c0_i32_0 : i32, i32
  }
  func.func @transform_7(%arg0: i32) -> (i32, i32) {
    %c0_i32 = arith.constant 0 : i32
    %c0_i32_0 = arith.constant 0 : i32
    %c0_i32_1 = arith.constant 0 : i32
    return %c0_i32, %c0_i32_0 : i32, i32
  }
  func.func @transform_8(%arg0: i32) -> (i32, i32) {
    %c0_i32 = arith.constant 0 : i32
    %c0_i32_0 = arith.constant 0 : i32
    %c0_i32_1 = arith.constant 0 : i32
    return %c0_i32, %c0_i32_0 : i32, i32
  }
  func.func @transform_9(%arg0: i32) -> (i32, i32) {
    %c0_i32 = arith.constant 0 : i32
    %c0_i32_0 = arith.constant 0 : i32
    %c0_i32_1 = arith.constant 0 : i32
    return %c0_i32, %c0_i32_0 : i32, i32
  }
  func.func @transform_10(%arg0: i32) -> (i32, i32) {
    %c0_i32 = arith.constant 0 : i32
    %c0_i32_0 = arith.constant 0 : i32
    %c0_i32_1 = arith.constant 0 : i32
    return %c0_i32, %c0_i32_0 : i32, i32
  }
  func.func @transform_11(%arg0: i32) -> (i32, i32) {
    %c0_i32 = arith.constant 0 : i32
    %c0_i32_0 = arith.constant 0 : i32
    %c0_i32_1 = arith.constant 0 : i32
    return %c0_i32, %c0_i32_0 : i32, i32
  }
  func.func @transform_12(%arg0: i32) -> (i32, i32) {
    %c0_i32 = arith.constant 0 : i32
    %c0_i32_0 = arith.constant 0 : i32
    %c0_i32_1 = arith.constant 0 : i32
    return %c0_i32, %c0_i32_0 : i32, i32
  }
  func.func @transform_13(%arg0: i32) -> (i32, i32) {
    %c0_i32 = arith.constant 0 : i32
    %c0_i32_0 = arith.constant 0 : i32
    %c0_i32_1 = arith.constant 0 : i32
    return %c0_i32, %c0_i32_0 : i32, i32
  }
  func.func @transform_14(%arg0: i32) -> (i32, i32) {
    %c0_i32 = arith.constant 0 : i32
    %c0_i32_0 = arith.constant 0 : i32
    %c0_i32_1 = arith.constant 0 : i32
    return %c0_i32, %c0_i32_0 : i32, i32
  }
  func.func @transform_15(%arg0: i32) -> (i32, i32) {
    %c0_i32 = arith.constant 0 : i32
    %c0_i32_0 = arith.constant 0 : i32
    %c0_i32_1 = arith.constant 0 : i32
    return %c0_i32, %c0_i32_0 : i32, i32
  }
  func.func @transform_16(%arg0: i32) -> (i32, i32) {
    %c0_i32 = arith.constant 0 : i32
    %c0_i32_0 = arith.constant 0 : i32
    %c0_i32_1 = arith.constant 0 : i32
    return %c0_i32, %c0_i32_0 : i32, i32
  }
  func.func @transform_17(%arg0: i32) -> (i32, i32) {
    %c0_i32 = arith.constant 0 : i32
    %c0_i32_0 = arith.constant 0 : i32
    %c0_i32_1 = arith.constant 0 : i32
    return %c0_i32, %c0_i32_0 : i32, i32
  }
  func.func @transform_18(%arg0: i32) -> (i32, i32, i32) {
    %c0_i32 = arith.constant 0 : i32
    %c0_i32_0 = arith.constant 0 : i32
    %c0_i32_1 = arith.constant 0 : i32
    return %arg0, %c0_i32, %c0_i32_0 : i32, i32, i32
  }
}

module attributes {stable_mosaic.version = 11 : i64} {
  func.func @embed_ln_kernel(%arg0: i32, %arg1: memref<32x1xi32, #tpu.memory_space<vmem>>, %arg2: memref<32x1xi32, #tpu.memory_space<vmem>>, %arg3: memref<32x1xi32, #tpu.memory_space<vmem>>, %arg4: memref<32x1xi32, #tpu.memory_space<vmem>>, %arg5: memref<56x128xf32, #tpu.memory_space<vmem>>, %arg6: memref<24x128xf32, #tpu.memory_space<vmem>>, %arg7: memref<8x128xf32, #tpu.memory_space<vmem>>, %arg8: memref<64x128xf32, #tpu.memory_space<vmem>>, %arg9: memref<1x128xf32, #tpu.memory_space<vmem>>, %arg10: memref<1x128xf32, #tpu.memory_space<vmem>>, %arg11: memref<32x128xf32, #tpu.memory_space<vmem>>) attributes {dimension_semantics = [#tpu.dimension_semantics<parallel>], iteration_bounds = array<i64: 1>, scalar_prefetch = 0 : i64, scratch_operands = 0 : i64, tpu.core_type = #tpu.core_type<tc>, window_params = [{transform_indices = @transform_0, window_bounds = array<i64: 32, 1>}, {transform_indices = @transform_1, window_bounds = array<i64: 32, 1>}, {transform_indices = @transform_2, window_bounds = array<i64: 32, 1>}, {transform_indices = @transform_3, window_bounds = array<i64: 32, 1>}, {pipeline_mode = #tpu.pipeline_mode<synchronous>, transform_indices = @transform_4, window_bounds = array<i64: 56, 128>}, {pipeline_mode = #tpu.pipeline_mode<synchronous>, transform_indices = @transform_5, window_bounds = array<i64: 24, 128>}, {pipeline_mode = #tpu.pipeline_mode<synchronous>, transform_indices = @transform_6, window_bounds = array<i64: 8, 128>}, {pipeline_mode = #tpu.pipeline_mode<synchronous>, transform_indices = @transform_7, window_bounds = array<i64: 64, 128>}, {pipeline_mode = #tpu.pipeline_mode<synchronous>, transform_indices = @transform_8, window_bounds = array<i64: 1, 128>}, {pipeline_mode = #tpu.pipeline_mode<synchronous>, transform_indices = @transform_9, window_bounds = array<i64: 1, 128>}, {transform_indices = @transform_10, window_bounds = array<i64: 32, 128>}]} {
    %c0 = arith.constant 0 : index
    %c0_0 = arith.constant 0 : index
    %0 = vector.load %arg1[%c0, %c0_0] : memref<32x1xi32, #tpu.memory_space<vmem>>, vector<32x1xi32>
    %1 = tpu.iota {dimensions = array<i32: 1>} : vector<32x56xi32>
    %2 = vector.broadcast %0 : vector<32x1xi32> to vector<32x56xi32>
    %3 = arith.cmpi eq, %1, %2 : vector<32x56xi32>
    %4 = arith.extui %3 : vector<32x56xi1> to vector<32x56xi32>
    %5 = arith.sitofp %4 : vector<32x56xi32> to vector<32x56xf32>
    %c0_1 = arith.constant 0 : index
    %c0_2 = arith.constant 0 : index
    %6 = vector.load %arg5[%c0_1, %c0_2] : memref<56x128xf32, #tpu.memory_space<vmem>>, vector<56x128xf32>
    %cst = arith.constant dense<0.000000e+00> : vector<32x128xf32>
    %7 = tpu.matmul %5, %6, %cst {dimension_numbers = #tpu.dot_dimension_numbers<[1], [0], [0], [1], [0, 0, 1, 1], [], []>} : vector<32x56xf32>, vector<56x128xf32>, vector<32x128xf32> -> vector<32x128xf32>
    %c0_3 = arith.constant 0 : index
    %c0_4 = arith.constant 0 : index
    %8 = vector.load %arg2[%c0_3, %c0_4] : memref<32x1xi32, #tpu.memory_space<vmem>>, vector<32x1xi32>
    %9 = tpu.iota {dimensions = array<i32: 1>} : vector<32x24xi32>
    %10 = vector.broadcast %8 : vector<32x1xi32> to vector<32x24xi32>
    %11 = arith.cmpi eq, %9, %10 : vector<32x24xi32>
    %12 = arith.extui %11 : vector<32x24xi1> to vector<32x24xi32>
    %13 = arith.sitofp %12 : vector<32x24xi32> to vector<32x24xf32>
    %c0_5 = arith.constant 0 : index
    %c0_6 = arith.constant 0 : index
    %14 = vector.load %arg6[%c0_5, %c0_6] : memref<24x128xf32, #tpu.memory_space<vmem>>, vector<24x128xf32>
    %cst_7 = arith.constant dense<0.000000e+00> : vector<32x128xf32>
    %15 = tpu.matmul %13, %14, %cst_7 {dimension_numbers = #tpu.dot_dimension_numbers<[1], [0], [0], [1], [0, 0, 1, 1], [], []>} : vector<32x24xf32>, vector<24x128xf32>, vector<32x128xf32> -> vector<32x128xf32>
    %16 = arith.addf %7, %15 : vector<32x128xf32>
    %c0_8 = arith.constant 0 : index
    %c0_9 = arith.constant 0 : index
    %17 = vector.load %arg3[%c0_8, %c0_9] : memref<32x1xi32, #tpu.memory_space<vmem>>, vector<32x1xi32>
    %18 = tpu.iota {dimensions = array<i32: 1>} : vector<32x8xi32>
    %19 = vector.broadcast %17 : vector<32x1xi32> to vector<32x8xi32>
    %20 = arith.cmpi eq, %18, %19 : vector<32x8xi32>
    %21 = arith.extui %20 : vector<32x8xi1> to vector<32x8xi32>
    %22 = arith.sitofp %21 : vector<32x8xi32> to vector<32x8xf32>
    %c0_10 = arith.constant 0 : index
    %c0_11 = arith.constant 0 : index
    %23 = vector.load %arg7[%c0_10, %c0_11] : memref<8x128xf32, #tpu.memory_space<vmem>>, vector<8x128xf32>
    %cst_12 = arith.constant dense<0.000000e+00> : vector<32x128xf32>
    %24 = tpu.matmul %22, %23, %cst_12 {dimension_numbers = #tpu.dot_dimension_numbers<[1], [0], [0], [1], [0, 0, 1, 1], [], []>} : vector<32x8xf32>, vector<8x128xf32>, vector<32x128xf32> -> vector<32x128xf32>
    %25 = arith.addf %16, %24 : vector<32x128xf32>
    %c0_13 = arith.constant 0 : index
    %c0_14 = arith.constant 0 : index
    %26 = vector.load %arg4[%c0_13, %c0_14] : memref<32x1xi32, #tpu.memory_space<vmem>>, vector<32x1xi32>
    %27 = tpu.iota {dimensions = array<i32: 1>} : vector<32x64xi32>
    %28 = vector.broadcast %26 : vector<32x1xi32> to vector<32x64xi32>
    %29 = arith.cmpi eq, %27, %28 : vector<32x64xi32>
    %30 = arith.extui %29 : vector<32x64xi1> to vector<32x64xi32>
    %31 = arith.sitofp %30 : vector<32x64xi32> to vector<32x64xf32>
    %c0_15 = arith.constant 0 : index
    %c0_16 = arith.constant 0 : index
    %32 = vector.load %arg8[%c0_15, %c0_16] : memref<64x128xf32, #tpu.memory_space<vmem>>, vector<64x128xf32>
    %cst_17 = arith.constant dense<0.000000e+00> : vector<32x128xf32>
    %33 = tpu.matmul %31, %32, %cst_17 {dimension_numbers = #tpu.dot_dimension_numbers<[1], [0], [0], [1], [0, 0, 1, 1], [], []>} : vector<32x64xf32>, vector<64x128xf32>, vector<32x128xf32> -> vector<32x128xf32>
    %34 = arith.addf %25, %33 : vector<32x128xf32>
    %c0_18 = arith.constant 0 : index
    %c0_19 = arith.constant 0 : index
    %35 = vector.load %arg9[%c0_18, %c0_19] : memref<1x128xf32, #tpu.memory_space<vmem>>, vector<1x128xf32>
    %c0_20 = arith.constant 0 : index
    %c0_21 = arith.constant 0 : index
    %36 = vector.load %arg10[%c0_20, %c0_21] : memref<1x128xf32, #tpu.memory_space<vmem>>, vector<1x128xf32>
    %cst_22 = arith.constant dense<0.000000e+00> : vector<32xf32>
    %37 = vector.multi_reduction <add>, %34, %cst_22 [1] : vector<32x128xf32> to vector<32xf32>
    %38 = vector.shape_cast %37 : vector<32xf32> to vector<32x1xf32>
    %cst_23 = arith.constant 1.280000e+02 : f32
    %39 = vector.broadcast %cst_23 : f32 to vector<32x1xf32>
    %40 = arith.divf %38, %39 : vector<32x1xf32>
    %41 = vector.broadcast %40 : vector<32x1xf32> to vector<32x128xf32>
    %42 = arith.subf %34, %41 : vector<32x128xf32>
    %43 = arith.mulf %42, %42 : vector<32x128xf32>
    %cst_24 = arith.constant dense<0.000000e+00> : vector<32xf32>
    %44 = vector.multi_reduction <add>, %43, %cst_24 [1] : vector<32x128xf32> to vector<32xf32>
    %45 = vector.shape_cast %44 : vector<32xf32> to vector<32x1xf32>
    %cst_25 = arith.constant 1.280000e+02 : f32
    %46 = vector.broadcast %cst_25 : f32 to vector<32x1xf32>
    %47 = arith.divf %45, %46 : vector<32x1xf32>
    %48 = vector.broadcast %40 : vector<32x1xf32> to vector<32x128xf32>
    %49 = arith.subf %34, %48 : vector<32x128xf32>
    %cst_26 = arith.constant 9.99999996E-13 : f32
    %50 = vector.broadcast %cst_26 : f32 to vector<32x1xf32>
    %51 = arith.addf %47, %50 : vector<32x1xf32>
    %52 = math.rsqrt %51 : vector<32x1xf32>
    %53 = vector.broadcast %52 : vector<32x1xf32> to vector<32x128xf32>
    %54 = arith.mulf %49, %53 : vector<32x128xf32>
    %55 = vector.broadcast %35 : vector<1x128xf32> to vector<32x128xf32>
    %56 = arith.mulf %54, %55 : vector<32x128xf32>
    %57 = vector.broadcast %36 : vector<1x128xf32> to vector<32x128xf32>
    %58 = arith.addf %56, %57 : vector<32x128xf32>
    %c0_27 = arith.constant 0 : index
    %c0_28 = arith.constant 0 : index
    %59 = vector.load %arg11[%c0_27, %c0_28] : memref<32x128xf32, #tpu.memory_space<vmem>>, vector<32x128xf32>
    tpu.vector_store %arg11[%c0_27, %c0_28], %58 {strides = array<i32>} : memref<32x128xf32, #tpu.memory_space<vmem>>, vector<32x128xf32>,
    return
  }
  func.func @transform_0(%arg0: i32) -> (i32, i32) {
    %c0_i32 = arith.constant 0 : i32
    %c0_i32_0 = arith.constant 0 : i32
    return %arg0, %c0_i32 : i32, i32
  }
  func.func @transform_1(%arg0: i32) -> (i32, i32) {
    %c0_i32 = arith.constant 0 : i32
    %c0_i32_0 = arith.constant 0 : i32
    return %arg0, %c0_i32 : i32, i32
  }
  func.func @transform_2(%arg0: i32) -> (i32, i32) {
    %c0_i32 = arith.constant 0 : i32
    %c0_i32_0 = arith.constant 0 : i32
    return %arg0, %c0_i32 : i32, i32
  }
  func.func @transform_3(%arg0: i32) -> (i32, i32) {
    %c0_i32 = arith.constant 0 : i32
    %c0_i32_0 = arith.constant 0 : i32
    return %arg0, %c0_i32 : i32, i32
  }
  func.func @transform_4(%arg0: i32) -> (i32, i32) {
    %c0_i32 = arith.constant 0 : i32
    %c0_i32_0 = arith.constant 0 : i32
    %c0_i32_1 = arith.constant 0 : i32
    return %c0_i32, %c0_i32_0 : i32, i32
  }
  func.func @transform_5(%arg0: i32) -> (i32, i32) {
    %c0_i32 = arith.constant 0 : i32
    %c0_i32_0 = arith.constant 0 : i32
    %c0_i32_1 = arith.constant 0 : i32
    return %c0_i32, %c0_i32_0 : i32, i32
  }
  func.func @transform_6(%arg0: i32) -> (i32, i32) {
    %c0_i32 = arith.constant 0 : i32
    %c0_i32_0 = arith.constant 0 : i32
    %c0_i32_1 = arith.constant 0 : i32
    return %c0_i32, %c0_i32_0 : i32, i32
  }
  func.func @transform_7(%arg0: i32) -> (i32, i32) {
    %c0_i32 = arith.constant 0 : i32
    %c0_i32_0 = arith.constant 0 : i32
    %c0_i32_1 = arith.constant 0 : i32
    return %c0_i32, %c0_i32_0 : i32, i32
  }
  func.func @transform_8(%arg0: i32) -> (i32, i32) {
    %c0_i32 = arith.constant 0 : i32
    %c0_i32_0 = arith.constant 0 : i32
    %c0_i32_1 = arith.constant 0 : i32
    return %c0_i32, %c0_i32_0 : i32, i32
  }
  func.func @transform_9(%arg0: i32) -> (i32, i32) {
    %c0_i32 = arith.constant 0 : i32
    %c0_i32_0 = arith.constant 0 : i32
    %c0_i32_1 = arith.constant 0 : i32
    return %c0_i32, %c0_i32_0 : i32, i32
  }
  func.func @transform_10(%arg0: i32) -> (i32, i32) {
    %c0_i32 = arith.constant 0 : i32
    %c0_i32_0 = arith.constant 0 : i32
    return %arg0, %c0_i32 : i32, i32
  }
}

</mosaic_0001>

<bundles_post_ra>
// kernel: behrt_forward.3
= control target key start
LH: loop header
LB: loop body
LE: loop exit
PB: predicated region body
PF: predicated region fallthrough
CT: control target
= control target key end

     0   :  { %15 = vsyncpa [#allocation3], 0  ;;  %s551_s16 = smov [#allocation2]   ;;  %s552_s18 = smov 128   ;;  %s768_s0 = inlined_call_operand.vmem [shape: s32[32,1], index: 0, kind: input, shape index: {}]   ;;  %s769_s1 = inlined_call_operand.vmem [shape: s32[32,1], index: 1, kind: input, shape index: {}]   ;;  %s770_s2 = inlined_call_operand.vmem [shape: s32[32,1], index: 2, kind: input, shape index: {}]   ;;  %s771_s3 = inlined_call_operand.vmem [shape: s32[32,1], index: 3, kind: input, shape index: {}]   ;;  %s772_s4 = inlined_call_operand.vmem [shape: f32[56,128], index: 4, kind: input, shape index: {}]   ;;  %s773_s5 = inlined_call_operand.vmem [shape: f32[24,128], index: 5, kind: input, shape index: {}]   ;;  %s774_s6 = inlined_call_operand.vmem [shape: f32[8,128], index: 6, kind: input, shape index: {}]   ;;  %s775_s7 = inlined_call_operand.hbm [shape: f32[64,128], index: 7, kind: input, shape index: {}]   ;;  %s776_s8 = inlined_call_operand.vmem [shape: f32[1,128], index: 8, kind: input, shape index: {}]   ;;  %s777_s9 = inlined_call_operand.vmem [shape: f32[1,128], index: 9, kind: input, shape index: {}]   ;;  %s778_s10 = inlined_call_operand.vmem [shape: f32[32,128], index: 10, kind: output, shape index: {}]  }
   0x1   :  { %s34_s15 = sshll.u32 %s775_s7, 4  ;;  %s36_s17 = sshll.u32 %s551_s16, 4  ;;  %s35_s15 = int_to_ptr.hbm [resolvable:$true] %s34_s15  ;;  %s37_s17 = int_to_ptr.vmem [resolvable:$true] %s36_s17 }
   0x2   :  { %s553_s19 = smov 8  }
   0x3   :  { %42 = dma.hbm_to_vmem [thread:$0]  %s35_s15, 1024, %s37_s17, [#allocation3], %s552_s18, %s552_s18, %s553_s19  }
   0x4   :  { %549 = dma.done.wait [#allocation3], 1024  }
   0x5   :  { %550 = vsyncadd [#allocation3], 4294966272  ;;  %v554_v0 = vmov 0   ;;  %v204_v1 = vld [vmem:[%s770_s2 + $0x8] sm:$0xff]  ;;  %v203_v2 = vld [vmem:[%s770_s2] sm:$0xff]  ;;  %v55_v37 = vlaneseq  ;;  %vm232_vm0 = vcmask 64512  }
   0x6   :  { %512 = vset.pattern.permute.xlu2 %v554_v0  ;;  %511 = vset.pattern.permute.xlu1 %v554_v0  ;;  %v51_v3 = vld [vmem:[%s768_s0] sm:$0xff]  ;;  %v279_v4 = vld [vmem:[%s771_s3 + $0x8] sm:$0xff]  ;;  %v205_v7 = vld [vmem:[%s770_s2 + $0x10] sm:$0xff]  ;;  %vm161_vm2 = vcmask 457728   ;;  %v555_v42 = vmov 0.0   ;;  %vm314_vm5 = vcmask 523264  }
   0x7   :  { %510 = vset.pattern.permute.xlu0 %v554_v0  ;;  %211 = vperm.xlu2 %512, %v204_v1   ;;  %v278_v5 = vld [vmem:[%s771_s3] sm:$0xff]  ;;  %v52_v8 = vld [vmem:[%s768_s0 + $0x8] sm:$0xff]  ;;  %v90_v10 = vld [vmem:[%s769_s1 + $0x10] sm:$0xff]  ;;  %v696_v38 = vand.u32 127, %v55_v37  ;;  %vm119_vm7 = vcmask 195584  }
   0x8   :  { %208 = vperm.xlu0 %510, %v203_v2   ;;  %58 = vperm.xlu1 %511, %v51_v3   ;;  %v88_v6 = vld [vmem:[%s769_s1] sm:$0xff]  ;;  %v89_v9 = vld [vmem:[%s769_s1 + $0x8] sm:$0xff]  ;;  %v280_v11 = vld [vmem:[%s771_s3 + $0x10] sm:$0xff] }
   0x9   :  { %v53_v12 = vld [vmem:[%s768_s0 + $0x10] sm:$0xff]  ;;  %v54_v13 = vld [vmem:[%s768_s0 + $0x18] sm:$0xff]  ;;  %v86_v19 = vld [vmem:[%s772_s4 + $0x28] sm:$0xff] }
   0xa   :  { %v206_v14 = vld [vmem:[%s770_s2 + $0x18] sm:$0xff]  ;;  %v87_v17 = vld [vmem:[%s772_s4 + $0x30] sm:$0xff]  ;;  %v311_v21 = vld [vmem:[#allocation2 + $0x28] sm:$0xff] }
   0xb   :  { %v281_v15 = vld [vmem:[%s771_s3 + $0x18] sm:$0xff]  ;;  %183 = vmatpush.msra.mxu1 %v87_v17  ;;  %v312_v20 = vld [vmem:[#allocation2 + $0x30] sm:$0xff]  ;;  %v85_v22 = vld [vmem:[%s772_s4 + $0x20] sm:$0xff] }
   0xc   :  { %v91_v16 = vld [vmem:[%s769_s1 + $0x18] sm:$0xff]  ;;  %v231_v24 = vld [vmem:[%s774_s6] sm:$0xff]  ;;  %v83_v26 = vld [vmem:[%s772_s4 + $0x10] sm:$0xff] }
   0xd   :  { %v313_v18 = vld [vmem:[#allocation2 + $0x38] sm:$0xff]  ;;  %184 = vmatpush.msra.mxu1 %v86_v19  ;;  %v310_v25 = vld [vmem:[#allocation2 + $0x20] sm:$0xff]  ;;  %260 = vmatpush.msra.mxu2 %v231_v24  ;;  %v118_v28 = vld [vmem:[%s773_s5 + $0x10] sm:$0xff] }
   0xe   :  { %335 = vmatpush.msra.mxu3 %v313_v18  ;;  %v84_v23 = vld [vmem:[%s772_s4 + $0x18] sm:$0xff]  ;;  %145 = vmatpush.msra.mxu0 %v118_v28  ;;  %v82_v29 = vld [vmem:[%s772_s4 + $0x8] sm:$0xff]  ;;  %v308_v30 = vld [vmem:[#allocation2 + $0x10] sm:$0xff] }
   0xf   :  { %286 = vperm.xlu2 %512, %v279_v4   ;;  %185 = vmatpush.msra.mxu1 %v85_v22  ;;  %v309_v27 = vld [vmem:[#allocation2 + $0x18] sm:$0xff]  ;;  %v307_v31 = vld [vmem:[#allocation2 + $0x8] sm:$0xff]  ;;  %v81_v33 = vld [vmem:[%s772_s4] sm:$0xff] }
  0x10   :  { %283 = vperm.xlu0 %510, %v278_v5   ;;  %93 = vperm.xlu1 %511, %v88_v6   ;;  %v117_v32 = vld [vmem:[%s773_s5 + $0x8] sm:$0xff]  ;;  %v116_v34 = vld [vmem:[%s773_s5] sm:$0xff] }
  0x11   :  { %336 = vmatpush.msra.mxu3 %v312_v20  ;;  %186 = vmatpush.msra.mxu1 %v84_v23  ;;  %v306_v35 = vld [vmem:[#allocation2] sm:$0xff] }
  0x12   :  { %146 = vmatpush.msra.mxu0 %v117_v32 }
  0x13   :  { %337 = vmatpush.msra.mxu3 %v311_v21  ;;  %187 = vmatpush.msra.mxu1 %v83_v26 }
  0x14   :  { %147 = vmatpush.msra.mxu0 %v116_v34 }
  0x15   :  { %338 = vmatpush.msra.mxu3 %v310_v25  ;;  %188 = vmatpush.msra.mxu1 %v82_v29 }
  0x17   :  { %214 = vperm.xlu2 %512, %v205_v7   ;;  %339 = vmatpush.msra.mxu3 %v309_v27 }
  0x18   :  { %61 = vperm.xlu0 %510, %v52_v8   ;;  %96 = vperm.xlu1 %511, %v89_v9  }
  0x19   :  { %340 = vmatpush.msra.mxu3 %v308_v30  ;;  %189 = vmatpush.msra.mxu1 %v81_v33 }
  0x1b   :  { %341 = vmatpush.msra.mxu3 %v307_v31 }
  0x1d   :  { %342 = vmatpush.msra.mxu3 %v306_v35  ;;  %v556_v35 = vmov 128.0  }
  0x1e   :  { %515 = vrcp.f32 %v556_v35 }
  0x1f   :  { %99 = vperm.xlu2 %512, %v90_v10  }
  0x20   :  { %289 = vperm.xlu0 %510, %v280_v11   ;;  %64 = vperm.xlu1 %511, %v53_v12  }
  0x27   :  { %67 = vperm.xlu2 %512, %v54_v13  }
  0x28   :  { %217 = vperm.xlu0 %510, %v206_v14   ;;  %292 = vperm.xlu1 %511, %v281_v15  }
  0x30   :  { %102 = vperm.xlu0 %510, %v91_v16  }
  0x61   :  { %v212_v36 = vpop.permute.xlu2 %211 }
  0x62   :  { %vm220_vm4 = vcmp.eq.s32.totalorder %v696_v38, %v212_v36  ;;  %v516_v36 = vpop.eup %515 }
  0x63   :  { %v489_v45 = vsel %vm220_vm4, 1.0, %v555_v42  ;;  %v371_v37 = vmul.f32 128.0, %v516_v36 }
  0x69   :  { %v287_v39 = vpop.permute.xlu2 %286 }
  0x6a   :  { %vm295_vm10 = vcmp.eq.s32.totalorder %v696_v38, %v287_v39 }
  0x6b   :  { %v497_v55 = vsel %vm295_vm10, 1.0, %v555_v42 }
  0x71   :  { %v215_v47 = vpop.permute.xlu2 %214 }
  0x72   :  { %vm221_vm9 = vcmp.eq.s32.totalorder %v696_v38, %v215_v47 }
  0x73   :  { %v490_v53 = vsel %vm221_vm9, 1.0, %v555_v42 }
  0x79   :  { %v100_v56 = vpop.permute.xlu2 %99 }
  0x7a   :  { %v209_v40 = vpop.permute.xlu0 %208  ;;  %v59_v41 = vpop.permute.xlu1 %58  ;;  %vm106_vm13 = vcmp.eq.s32.totalorder %v696_v38, %v100_v56 }
  0x7b   :  { %vm219_vm1 = vcmp.eq.s32.totalorder %v696_v38, %v209_v40  ;;  %vm69_vm3 = vcmp.eq.s32.totalorder %v696_v38, %v59_v41  ;;  %v478_v61 = vsel %vm106_vm13, 1.0, %v555_v42 }
  0x7c   :  { %v488_v43 = vsel %vm219_vm1, 1.0, %v555_v42  ;;  %v472_v44 = vsel %vm69_vm3, 1.0, %v555_v42 }
  0x7d   :  { %492 = vmatmul.msk.f32.vlgmr.msra.gmra.mxu2 %vm232_vm0, %v488_v43  ;;  %484 = vmatmul.msk.f32.vlgmr.msra.gmra.mxu1 %vm161_vm2, %v472_v44 }
  0x81   :  { %v68_v63 = vpop.permute.xlu2 %67 }
  0x82   :  { %v284_v46 = vpop.permute.xlu0 %283  ;;  %v94_v48 = vpop.permute.xlu1 %93  ;;  %vm72_vm1 = vcmp.eq.s32.totalorder %v696_v38, %v68_v63 }
  0x83   :  { %vm294_vm6 = vcmp.eq.s32.totalorder %v696_v38, %v284_v46  ;;  %vm104_vm8 = vcmp.eq.s32.totalorder %v696_v38, %v94_v48  ;;  %v475_v3 = vsel %vm72_vm1, 1.0, %v555_v42 }
  0x84   :  { %v496_v49 = vsel %vm294_vm6, 1.0, %v555_v42  ;;  %v476_v50 = vsel %vm104_vm8, 1.0, %v555_v42 }
  0x85   :  { %493 = vmatmul.msk.f32.gmra.mxu2 %vm232_vm0, %v489_v45  ;;  %500 = vmatmul.msk.f32.vlgmr.msra.gmra.mxu3 %vm314_vm5, %v496_v49 }
  0x86   :  { %480 = vmatmul.msk.f32.vlgmr.msra.gmra.mxu0 %vm119_vm7, %v476_v50 }
  0x8a   :  { %v62_v51 = vpop.permute.xlu0 %61  ;;  %v97_v52 = vpop.permute.xlu1 %96 }
  0x8b   :  { %vm70_vm11 = vcmp.eq.s32.totalorder %v696_v38, %v62_v51  ;;  %vm105_vm12 = vcmp.eq.s32.totalorder %v696_v38, %v97_v52 }
  0x8c   :  { %v473_v54 = vsel %vm70_vm11, 1.0, %v555_v42  ;;  %v477_v57 = vsel %vm105_vm12, 1.0, %v555_v42 }
  0x8d   :  { %485 = vmatmul.msk.f32.gmra.mxu1 %vm161_vm2, %v473_v54  ;;  %494 = vmatmul.msk.f32.gmra.mxu2 %vm232_vm0, %v490_v53 }
  0x8e   :  { %481 = vmatmul.msk.f32.gmra.mxu0 %vm119_vm7, %v477_v57  ;;  %501 = vmatmul.msk.f32.gmra.mxu3 %vm314_vm5, %v497_v55 }
  0x92   :  { %v290_v58 = vpop.permute.xlu0 %289  ;;  %v65_v59 = vpop.permute.xlu1 %64 }
  0x93   :  { %vm296_vm14 = vcmp.eq.s32.totalorder %v696_v38, %v290_v58  ;;  %vm71_vm15 = vcmp.eq.s32.totalorder %v696_v38, %v65_v59 }
  0x94   :  { %v498_v60 = vsel %vm296_vm14, 1.0, %v555_v42  ;;  %v474_v62 = vsel %vm71_vm15, 1.0, %v555_v42 }
  0x95   :  { %486 = vmatmul.msk.f32.gmra.mxu1 %vm161_vm2, %v474_v62 }
  0x96   :  { %482 = vmatmul.msk.f32.gmra.mxu0 %vm119_vm7, %v478_v61  ;;  %502 = vmatmul.msk.f32.gmra.mxu3 %vm314_vm5, %v498_v60 }
  0x9a   :  { %v218_v0 = vpop.permute.xlu0 %217  ;;  %v293_v1 = vpop.permute.xlu1 %292 }
  0x9b   :  { %vm222_vm3 = vcmp.eq.s32.totalorder %v696_v38, %v218_v0  ;;  %vm297_vm4 = vcmp.eq.s32.totalorder %v696_v38, %v293_v1 }
  0x9c   :  { %v491_v2 = vsel %vm222_vm3, 1.0, %v555_v42  ;;  %v499_v4 = vsel %vm297_vm4, 1.0, %v555_v42 }
  0x9d   :  { %495 = vmatmul.msk.f32.gmra.mxu2 %vm232_vm0, %v491_v2  ;;  %487 = vmatmul.msk.f32.gmra.mxu1 %vm161_vm2, %v475_v3  ;;  %vm375_vm0 = vweird.f32 %v516_v36 }
  0x9e   :  { %503 = vmatmul.msk.f32.gmra.mxu3 %vm314_vm5, %v499_v4 }
  0xa2   :  { %v103_v5 = vpop.permute.xlu0 %102 }
  0xa3   :  { %vm107_vm6 = vcmp.eq.s32.totalorder %v696_v38, %v103_v5  ;;  %v372_v38 = vsub.f32 1.0, %v371_v37 }
  0xa4   :  { %v479_v6 = vsel %vm107_vm6, 1.0, %v555_v42 }
  0xa5   :  { %483 = vmatmul.msk.f32.gmra.mxu0 %vm119_vm7, %v479_v6  ;;  %v373_v39 = vmul.f32 %v516_v36, %v372_v38 }
  0xa7   :  { %v374_v40 = vadd.f32 %v516_v36, %v373_v39 }
  0xa9   :  { %v730_v41 = vsel %vm375_vm0, %v516_v36, %v374_v40 }
  0xfa   :  { %v191_v7 = vpop.f32.mrf.mxu1 }
 0x100   :  { %v262_v9 = vpop.f32.mrf.mxu2 }
 0x103   :  { %v149_v8 = vpop.f32.mrf.mxu0 }
 0x104   :  { %v192_v10 = vadd.f32 %v191_v7, %v149_v8 }
 0x106   :  { %v274_v11 = vadd.f32 %v262_v9, %v192_v10  ;;  %v513_v9 = vld [vmem:[%s776_s8] ss:$0 sm:$0xff] }
 0x108   :  { %v344_v12 = vpop.f32.mrf.mxu3  ;;  %v265_v17 = vpop.f32.mrf.mxu2 }
 0x109   :  { %v356_v13 = vadd.f32 %v344_v12, %v274_v11 }
 0x10a   :  { %v194_v14 = vpop.f32.mrf.mxu1 }
 0x10b   :  { %v152_v15 = vpop.f32.mrf.mxu0  ;;  %362 = vadd.xlane.f32.xlu1 %v356_v13 }
 0x10c   :  { %v195_v16 = vadd.f32 %v194_v14, %v152_v15 }
 0x10e   :  { %v275_v18 = vadd.f32 %v265_v17, %v195_v16 }
 0x110   :  { %v268_v24 = vpop.f32.mrf.mxu2 }
 0x111   :  { %v347_v19 = vpop.f32.mrf.mxu3 }
 0x112   :  { %v357_v20 = vadd.f32 %v347_v19, %v275_v18  ;;  %v197_v22 = vpop.f32.mrf.mxu1 }
 0x113   :  { %v155_v21 = vpop.f32.mrf.mxu0 }
 0x114   :  { %364 = vadd.xlane.f32.xlu2 %v357_v20  ;;  %v198_v23 = vadd.f32 %v197_v22, %v155_v21 }
 0x116   :  { %v276_v25 = vadd.f32 %v268_v24, %v198_v23 }
 0x119   :  { %v350_v26 = vpop.f32.mrf.mxu3 }
 0x11a   :  { %v358_v27 = vadd.f32 %v350_v26, %v276_v25  ;;  %v200_v28 = vpop.f32.mrf.mxu1 }
 0x11c   :  { %366 = vadd.xlane.f32.xlu0 %v358_v27 }
 0x120   :  { %v271_v31 = vpop.f32.mrf.mxu2 }
 0x121   :  { %v353_v33 = vpop.f32.mrf.mxu3 }
 0x122   :  { %v158_v29 = vpop.f32.mrf.mxu0 }
 0x123   :  { %v201_v30 = vadd.f32 %v200_v28, %v158_v29 }
 0x125   :  { %v277_v32 = vadd.f32 %v271_v31, %v201_v30 }
 0x127   :  { %v359_v34 = vadd.f32 %v353_v33, %v277_v32 }
 0x129   :  { %368 = vadd.xlane.f32.xlu2 %v359_v34 }
 0x17e   :  { %v363_v42 = vpop.xlane.xlu1 %362 }
 0x17f   :  { %v377_v43 = vmul.f32 %v730_v41, %v363_v42 }
 0x181   :  { %v381_v44 = vsub.f32 %v356_v13, %v377_v43  ;;  %v514_v13 = vld [vmem:[%s777_s9] ss:$0 sm:$0xff] }
 0x183   :  { %v385_v45 = vmul.f32 %v381_v44, %v381_v44 }
 0x185   :  { %389 = vadd.xlane.f32.xlu1 %v385_v45 }
 0x187   :  { %v365_v46 = vpop.xlane.xlu2 %364 }
 0x188   :  { %v378_v47 = vmul.f32 %v730_v41, %v365_v46 }
 0x18a   :  { %v382_v48 = vsub.f32 %v357_v20, %v378_v47 }
 0x18c   :  { %v386_v49 = vmul.f32 %v382_v48, %v382_v48 }
 0x18e   :  { %391 = vadd.xlane.f32.xlu2 %v386_v49 }
 0x18f   :  { %v367_v50 = vpop.xlane.xlu0 %366 }
 0x190   :  { %v379_v51 = vmul.f32 %v730_v41, %v367_v50 }
 0x192   :  { %v735_v52 = vsub.f32 %v358_v27, %v379_v51 }
 0x194   :  { %v387_v53 = vmul.f32 %v735_v52, %v735_v52 }
 0x196   :  { %393 = vadd.xlane.f32.xlu0 %v387_v53 }
 0x19c   :  { %v369_v54 = vpop.xlane.xlu2 %368 }
 0x19d   :  { %v380_v55 = vmul.f32 %v730_v41, %v369_v54 }
 0x19f   :  { %v740_v56 = vsub.f32 %v359_v34, %v380_v55 }
 0x1a1   :  { %v388_v57 = vmul.f32 %v740_v56, %v740_v56 }
 0x1a3   :  { %395 = vadd.xlane.f32.xlu1 %v388_v57 }
 0x1f8   :  { %v390_v58 = vpop.xlane.xlu1 %389 }
 0x1f9   :  { %v397_v59 = vmul.f32 %v390_v58, %v730_v41 }
 0x1fb   :  { %v401_v60 = vadd.f32 1e-12, %v397_v59 }
 0x1fd   :  { %517 = vrsqrt.f32 %v401_v60  ;;  %vm411_vm5 = vweird.f32 %v401_v60 }
 0x201   :  { %v392_v61 = vpop.xlane.xlu2 %391 }
 0x202   :  { %v398_v62 = vmul.f32 %v392_v61, %v730_v41 }
 0x203   :  { %v518_v63 = vpop.eup %517 }
 0x204   :  { %v406_v0 = vmul.f32 %v518_v63, %v401_v60  ;;  %v402_v1 = vadd.f32 1e-12, %v398_v62  ;;  %vm412_vm2 = vweird.f32 %v518_v63 }
 0x205   :  { %vm413_vm7 = vmor %vm411_vm5, %vm412_vm2 }
 0x206   :  { %v407_v2 = vmul.f32 %v518_v63, %v406_v0  ;;  %519 = vrsqrt.f32 %v402_v1  ;;  %vm421_vm9 = vweird.f32 %v402_v1 }
 0x208   :  { %v408_v3 = vmul.f32 0.5, %v407_v2 }
 0x209   :  { %v394_v5 = vpop.xlane.xlu0 %393 }
 0x20a   :  { %v409_v4 = vsub.f32 1.5, %v408_v3  ;;  %v399_v6 = vmul.f32 %v394_v5, %v730_v41 }
 0x20c   :  { %v520_v7 = vpop.eup %519  ;;  %v410_v8 = vmul.f32 %v518_v63, %v409_v4  ;;  %v403_v11 = vadd.f32 1e-12, %v399_v6 }
 0x20d   :  { %v416_v10 = vmul.f32 %v520_v7, %v402_v1  ;;  %vm422_vm8 = vweird.f32 %v520_v7 }
 0x20e   :  { %v414_v12 = vsel %vm413_vm7, %v518_v63, %v410_v8  ;;  %521 = vrsqrt.f32 %v403_v11  ;;  %vm423_vm10 = vmor %vm421_vm9, %vm422_vm8  ;;  %vm431_vm12 = vweird.f32 %v403_v11 }
 0x20f   :  { %v445_v14 = vmul.f32 %v414_v12, %v381_v44  ;;  %v417_v15 = vmul.f32 %v520_v7, %v416_v10 }
 0x211   :  { %v452_v16 = vmul.f32 %v513_v9, %v445_v14  ;;  %v418_v17 = vmul.f32 0.5, %v417_v15 }
 0x213   :  { %v459_v18 = vadd.f32 %v514_v13, %v452_v16  ;;  %v419_v19 = vsub.f32 1.5, %v418_v17 }
 0x214   :  { %v522_v20 = vpop.eup %521 }
 0x215   :  { %463 = vst [vmem:[%s778_s10] sm:$0xff] %v459_v18  ;;  %v420_v21 = vmul.f32 %v520_v7, %v419_v19  ;;  %v426_v22 = vmul.f32 %v522_v20, %v403_v11  ;;  %vm432_vm11 = vweird.f32 %v522_v20 }
 0x216   :  { %v396_v23 = vpop.xlane.xlu1 %395  ;;  %vm433_vm13 = vmor %vm431_vm12, %vm432_vm11 }
 0x217   :  { %v424_v24 = vsel %vm423_vm10, %v520_v7, %v420_v21  ;;  %v400_v25 = vmul.f32 %v396_v23, %v730_v41  ;;  %v427_v27 = vmul.f32 %v522_v20, %v426_v22 }
 0x218   :  { %v446_v26 = vmul.f32 %v424_v24, %v382_v48 }
 0x219   :  { %v404_v28 = vadd.f32 1e-12, %v400_v25  ;;  %v428_v30 = vmul.f32 0.5, %v427_v27 }
 0x21a   :  { %v453_v29 = vmul.f32 %v513_v9, %v446_v26 }
 0x21b   :  { %523 = vrsqrt.f32 %v404_v28  ;;  %v429_v32 = vsub.f32 1.5, %v428_v30  ;;  %vm441_vm15 = vweird.f32 %v404_v28 }
 0x21c   :  { %v460_v31 = vadd.f32 %v514_v13, %v453_v29 }
 0x21d   :  { %v430_v33 = vmul.f32 %v522_v20, %v429_v32 }
 0x21e   :  { %464 = vst [vmem:[%s778_s10 + $0x8] sm:$0xff] %v460_v31 }
 0x21f   :  { %v434_v34 = vsel %vm433_vm13, %v522_v20, %v430_v33 }
 0x220   :  { %v447_v36 = vmul.f32 %v434_v34, %v735_v52 }
 0x221   :  { %v524_v35 = vpop.eup %523 }
 0x222   :  { %v436_v37 = vmul.f32 %v524_v35, %v404_v28  ;;  %v454_v38 = vmul.f32 %v513_v9, %v447_v36  ;;  %vm442_vm14 = vweird.f32 %v524_v35 }
 0x223   :  { %vm443_vm1 = vmor %vm441_vm15, %vm442_vm14 }
 0x224   :  { %v437_v39 = vmul.f32 %v524_v35, %v436_v37  ;;  %v461_v40 = vadd.f32 %v514_v13, %v454_v38 }
 0x226   :  { %v438_v41 = vmul.f32 0.5, %v437_v39  ;;  %465 = vst [vmem:[%s778_s10 + $0x10] sm:$0xff] %v461_v40 }
 0x228   :  { %v439_v42 = vsub.f32 1.5, %v438_v41 }
 0x22a   :  { %v440_v43 = vmul.f32 %v524_v35, %v439_v42 }
 0x22c   :  { %v444_v44 = vsel %vm443_vm1, %v524_v35, %v440_v43 }
 0x22d   :  { %v448_v45 = vmul.f32 %v444_v44, %v740_v56 }
 0x22f   :  { %v455_v46 = vmul.f32 %v513_v9, %v448_v45 }
 0x231   :  { %v462_v47 = vadd.f32 %v514_v13, %v455_v46 }
 0x233   :  { %466 = vst [vmem:[%s778_s10 + $0x18] sm:$0xff] %v462_v47 }
 0x234   :  { %471 = vsyncpa [#allocation3], 1 }

// kernel: behrt_forward.5
= control target key start
LH: loop header
LB: loop body
LE: loop exit
PB: predicated region body
PF: predicated region fallthrough
CT: control target
= control target key end

     0   :  { %s3184_s0 = inlined_call_operand.vmem [shape: f32[2,16,128], index: 0, kind: input, shape index: {}]   ;;  %s3185_s1 = inlined_call_operand.vmem [shape: f32[2,1,16], index: 1, kind: input, shape index: {}]   ;;  %s3186_s2 = inlined_call_operand.hbm [shape: bf16[128,128], index: 2, kind: input, shape index: {}]   ;;  %s3187_s3 = inlined_call_operand.vmem [shape: f32[1,128], index: 3, kind: input, shape index: {}]   ;;  %s3188_s4 = inlined_call_operand.hbm [shape: bf16[128,128], index: 4, kind: input, shape index: {}]   ;;  %s3189_s5 = inlined_call_operand.vmem [shape: f32[1,128], index: 5, kind: input, shape index: {}]   ;;  %s3190_s6 = inlined_call_operand.hbm [shape: bf16[128,128], index: 6, kind: input, shape index: {}]   ;;  %s3191_s7 = inlined_call_operand.vmem [shape: f32[1,128], index: 7, kind: input, shape index: {}]   ;;  %s3192_s8 = inlined_call_operand.hbm [shape: bf16[128,128], index: 8, kind: input, shape index: {}]   ;;  %s3193_s9 = inlined_call_operand.vmem [shape: f32[1,128], index: 9, kind: input, shape index: {}]   ;;  %s3194_s10 = inlined_call_operand.vmem [shape: f32[1,128], index: 10, kind: input, shape index: {}]   ;;  %s3195_s11 = inlined_call_operand.vmem [shape: f32[1,128], index: 11, kind: input, shape index: {}]   ;;  %s3196_s12 = inlined_call_operand.hbm [shape: bf16[128,256], index: 12, kind: input, shape index: {}]   ;;  %s3197_s13 = inlined_call_operand.vmem [shape: f32[1,256], index: 13, kind: input, shape index: {}]   ;;  %s3198_s14 = inlined_call_operand.hbm [shape: bf16[256,128], index: 14, kind: input, shape index: {}]   ;;  %s3199_s15 = inlined_call_operand.vmem [shape: f32[1,128], index: 15, kind: input, shape index: {}]   ;;  %s3200_s16 = inlined_call_operand.vmem [shape: f32[1,128], index: 16, kind: input, shape index: {}]   ;;  %s3201_s17 = inlined_call_operand.vmem [shape: f32[1,128], index: 17, kind: input, shape index: {}]   ;;  %s3202_s18 = inlined_call_operand.hbm [shape: f32[2,16,128], index: 18, kind: output, shape index: {}]  }
   0x1   :  { %3213 = sst [smem:[#allocation26_spill]] %s3184_s0 }
   0x2   :  { %3214 = sst [smem:[#allocation27_spill]] %s3185_s1 }
   0x3   :  { %3215 = sst [smem:[#allocation28_spill]] %s3186_s2 }
   0x4   :  { %3216 = sst [smem:[#allocation29_spill]] %s3188_s4 }
   0x5   :  { %3217 = sst [smem:[#allocation30_spill]] %s3192_s8 }
   0x6   :  { %3218 = sst [smem:[#allocation31_spill]] %s3201_s17 }
   0x7   :  { %3219 = sst [smem:[#allocation32_spill]] %s3202_s18 }
   0x8   :  { %23 = vsyncpa [#allocation3], 0 }
   0x9   :  { %24 = vsyncpa [#allocation6], 0 }
   0xa   :  { %25 = vsyncpa [#allocation9], 0 }
   0xb   :  { %26 = vsyncpa [#allocation12], 0 }
   0xc   :  { %27 = vsyncpa [#allocation4], 0 }
   0xd   :  { %29 = vsyncpa [#allocation4 + $0x1], 0  ;;  %s2801_s27 = smov 0   ;;  %s2803_s28 = smov 0  }
   0xe   :  { %s2805_s29 = smov 0   ;;  %s2807_s30 = smov 0  }
   0xf LB: > { %3220 = sst [smem:[#allocation19_spill]] %s2678_s27  ;;  %s2822_s0 = sadd.s32 4294967295, %s2690_s30   ;;  %s2690_s30 = sphi %s2807_s30, %s3245_s30   ;;  %s2686_s29 = sphi %s2805_s29, %s3247_s29   ;;  %s2682_s28 = sphi %s2803_s28, %s3249_s28   ;;  %s2678_s27 = sphi %s2801_s27, %s3248_s27  }
  0x10   : > { %3221 = sst [smem:[#allocation20_spill]] %s2686_s29  ;;  %s1921_s19 = sadd.s32 4294967294, %s2690_s30  }
  0x11   : > { %3222 = sst [smem:[#allocation21_spill]] %s2690_s30  ;;  %s2826_s1 = sadd.s32 1, %s2690_s30  }
  0x12   : > { %3223 = sst [smem:[#allocation22_spill]] %s2826_s1  ;;  %s430_s20 = sadd.s32 1, %s2686_s29 }
  0x13   : > { %s427_s21 = ssub.s32 %s2690_s30, %s2826_s1  ;;  %p440_p0 = scmp.ne.s32.totalorder %s2686_s29, %s2682_s28 }
  0x14   : > { %p428_p1 = scmp.eq.s32.totalorder %s427_s21, 0  ;;  %p441_p2 = scmp.eq.s32.totalorder %s2822_s0, 1 }
  0x15   : > { %p446_p3 = scmp.ne.s32.totalorder %s2682_s28, %s2678_s27  ;;  %p447_p4 = scmp.eq.s32.totalorder %s1921_s19, 1 }
  0x16   : > { %s2837_s22 = scalar_select %p428_p1, %s2686_s29, %s430_s20  }
  0x17   : > { %p2839_p5 = por %p441_p2, %p440_p0  ;;  %p2843_p6 = por %p447_p4, %p446_p3 }
  0x18   : > { %3224 = sst [smem:[#allocation23_spill]] %s2837_s22  ;;  %p1922_p7 = scmp.ge.s32.totalorder %s2690_s30, 1 }
  0x19   : > { %s3225_s2 = scalar_select %p2839_p5, 1, 0 }
  0x1a   : > { %s3227_s23 = scalar_select %p2843_p6, 1, 0 }
  0x1b   : > { %3226 = sst [smem:[#allocation24_spill]] %s3225_s2  ;;  %p454_p8 = scmp.lt.s32.totalorder %s2690_s30, 3 }
  0x1c   : > { %3228 = sst [smem:[#allocation25_spill]] %s3227_s23  ;;  %p2324_p9 = scmp.eq.s32.totalorder %s2822_s0, 0 }
  0x1d   : > { %p2850_p10 = pnand %p1922_p7, %p454_p8  ;;  %s3230_s4 = sld [smem:[#allocation29_spill]] }
  0x1e   : > { %s3231_s8 = sld [smem:[#allocation30_spill]]  ;;  %s2692_s1 = smov [#allocation5]  }
  0x1f   : > { %p2301_p11 = pneg %p2850_p10  ;;  %s484_s23 = sshll.u32 %s2692_s1, 4  ;;  %s485_s23 = int_to_ptr.vmem [resolvable:$true] %s484_s23 }
  0x20   : > { %s2693_s25 = smov 64   ;;  %s2694_s26 = smov 4  }
  0x21   : > { %p2864_p12 = pnand %p2324_p9, %p2301_p11  ;;  %s2695_s20 = smov [#allocation8]  }
  0x22   : > { %s518_s21 = sshll.u32 %s2695_s20, 4  ;;  %s3233_s27 = sld [smem:[#allocation28_spill]]  ;;  %s519_s21 = int_to_ptr.vmem [resolvable:$true] %s518_s21 }
  0x23   : > { %s482_s19 = sshll.u32 %s3230_s4, 4  ;;  %s499_s18 = sshll.u32 %s3190_s6, 4  ;;  %s483_s19 = int_to_ptr.hbm [resolvable:$true] %s482_s19  ;;  %s500_s18 = int_to_ptr.hbm [resolvable:$true] %s499_s18 }
  0x24   : > { %s516_s22 = sshll.u32 %s3231_s8, 4  ;;  %s2696_s17 = smov [#allocation2]   ;;  %s517_s22 = int_to_ptr.hbm [resolvable:$true] %s516_s22 }
  0x25   : > { %2307 = dma.hbm_to_vmem [thread:$0]  (!%p2864_p12), %s483_s19, 1024, %s485_s23, [#allocation6], %s2693_s25, %s2693_s25, %s2694_s26  }
  0x26   : > { %2313 = dma.hbm_to_vmem [thread:$0]  (!%p2864_p12), %s517_s22, 1024, %s519_s21, [#allocation9], %s2693_s25, %s2693_s25, %s2694_s26  }
  0x27   : > { %s467_s23 = sshll.u32 %s2696_s17, 4  ;;  %s2697_s4 = smov [#allocation7]   ;;  %s468_s23 = int_to_ptr.vmem [resolvable:$true] %s467_s23 }
  0x28   : > { %s465_s30 = sshll.u32 %s3233_s27, 4  ;;  %s501_s8 = sshll.u32 %s2697_s4, 4  ;;  %s466_s30 = int_to_ptr.hbm [resolvable:$true] %s465_s30  ;;  %s502_s8 = int_to_ptr.vmem [resolvable:$true] %s501_s8 }
  0x29   : > { %2304 = dma.hbm_to_vmem [thread:$0]  (!%p2864_p12), %s466_s30, 1024, %s468_s23, [#allocation3], %s2693_s25, %s2693_s25, %s2694_s26  }
  0x2a   : > { %s539_s22 = sshll.u32 %s3196_s12, 4  ;;  %s2698_s17 = smov [#allocation10]   ;;  %s540_s22 = int_to_ptr.hbm [resolvable:$true] %s539_s22 }
  0x2b   : > { %2310 = dma.hbm_to_vmem [thread:$0]  (!%p2864_p12), %s500_s18, 1024, %s502_s8, [#allocation6], %s2693_s25, %s2693_s25, %s2694_s26  }
  0x2c   : > { %s541_s2 = sshll.u32 %s2698_s17, 4  ;;  %s556_s30 = sshll.u32 %s3198_s14, 4  ;;  %s542_s2 = int_to_ptr.vmem [resolvable:$true] %s541_s2  ;;  %s557_s30 = int_to_ptr.hbm [resolvable:$true] %s556_s30 }
  0x2d   : > { %s2699_s1 = smov 128   ;;  %s2700_s23 = smov 8  }
  0x2e   : > { %2316 = dma.hbm_to_vmem [thread:$0]  (!%p2864_p12), %s540_s22, 2048, %s542_s2, [#allocation9], %s2699_s1, %s2699_s1, %s2700_s23  }
  0x2f   : > { %s2701_s4 = smov [#allocation11]   ;;  %597 = sbr.rel (%p2850_p10) target bundleno = 2072 (0x818), region = 92 }
  0x30   : > { %s558_s27 = sshll.u32 %s2701_s4, 4  ;;  %s559_s27 = int_to_ptr.vmem [resolvable:$true] %s558_s27 }
  0x31   : > { %2319 = dma.hbm_to_vmem [thread:$0]  (!%p2864_p12), %s557_s30, 2048, %s559_s27, [#allocation12], %s2693_s25, %s2693_s25, %s2694_s26  }
  0x34   : > { %2657 = dma.done.wait (%p2324_p9), [#allocation3], 1024  }
  0x35   : > { %2659 = vsyncadd (%p2324_p9), [#allocation3], 4294966272 }
  0x36   : > { %2661 = dma.done.wait (%p2324_p9), [#allocation6], 2048  }
  0x37   : > { %2663 = vsyncadd (%p2324_p9), [#allocation6], 4294965248 }
  0x38   : > { %2665 = dma.done.wait (%p2324_p9), [#allocation9], 3072  }
  0x39   : > { %2667 = vsyncadd (%p2324_p9), [#allocation9], 4294964224 }
  0x3a   : > { %2669 = dma.done.wait (%p2324_p9), [#allocation12], 2048  }
  0x3b   : > { %2671 = vsyncadd (%p2324_p9), [#allocation12], 4294965248  ;;  %v2217_v0 = vld [vmem:[#allocation2 + $0x38] sm:$0xff]  ;;  %v2216_v2 = vld [vmem:[#allocation2 + $0x30] sm:$0xff]  ;;  %p680_p13 = scmp.lt.s32.totalorder %s2822_s0, 1  ;;  %s3234_s26 = sld [smem:[#allocation26_spill]] }
  0x3c   : > { %v2225_v1 = vld [vmem:[#allocation5 + $0x38] sm:$0xff]  ;;  %760 = vmatpush.bf16.msra.mxu0 %v2217_v0  ;;  %v2224_v3 = vld [vmem:[#allocation5 + $0x30] sm:$0xff]  ;;  %v2215_v4 = vld [vmem:[#allocation2 + $0x28] sm:$0xff]  ;;  %s3235_s30 = sld [smem:[#allocation27_spill]]  ;;  %vm960_vm0 = vcmask 523264   ;;  %s2702_s4 = smov 64  }
  0x3d   : > { %844 = vmatpush.bf16.msra.mxu1 %v2225_v1  ;;  %v2223_v5 = vld [vmem:[#allocation5 + $0x28] sm:$0xff]  ;;  %v2233_v6 = vld [vmem:[#allocation7 + $0x38] sm:$0xff]  ;;  %v2214_v7 = vld [vmem:[#allocation2 + $0x20] sm:$0xff]  ;;  %s2927_s18 = scalar_select %p680_p13, %s2822_s0, 1  ;;  %vm981_vm1 = vcmask 130048  }
  0x3e   : > { %926 = vmatpush.bf16.msra.mxu2 %v2233_v6  ;;  %v2232_v8 = vld [vmem:[#allocation7 + $0x30] sm:$0xff]  ;;  %v2222_v9 = vld [vmem:[#allocation5 + $0x20] sm:$0xff]  ;;  %v2231_v10 = vld [vmem:[#allocation7 + $0x28] sm:$0xff]  ;;  %s3239_s25 = sld [smem:[#allocation31_spill]] }
  0x3f   : > { %v2213_v11 = vld [vmem:[#allocation2 + $0x18] sm:$0xff]  ;;  %v2230_v13 = vld [vmem:[#allocation7 + $0x20] sm:$0xff]  ;;  %v2212_v14 = vld [vmem:[#allocation2 + $0x10] sm:$0xff]  ;;  %s2209_s29 = sshll.u32 %s2927_s18, 4  ;;  %s3240_s22 = sld [smem:[#allocation32_spill]] }
  0x40   : > { %761 = vmatpush.bf16.msra.mxu0 %v2216_v2  ;;  %v2221_v12 = vld [vmem:[#allocation5 + $0x18] sm:$0xff]  ;;  %v2220_v15 = vld [vmem:[#allocation5 + $0x10] sm:$0xff]  ;;  %v2211_v17 = vld [vmem:[#allocation2 + $0x8] sm:$0xff] }
  0x41   : > { %845 = vmatpush.bf16.msra.mxu1 %v2224_v3  ;;  %v2229_v16 = vld [vmem:[#allocation7 + $0x18] sm:$0xff]  ;;  %v2219_v18 = vld [vmem:[#allocation5 + $0x8] sm:$0xff]  ;;  %s684_s8 = scalar_lea.vmem %s3234_s26, %s2209_s29  ;;  %v2228_v19 = vld [vmem:[#allocation7 + $0x10] sm:$0xff]  ;;  %s2274_s26 = sshll.u32 %s2822_s0, 4 }
  0x42   : > { %927 = vmatpush.bf16.msra.mxu2 %v2232_v8  ;;  %v2210_v20 = vld [vmem:[#allocation2] sm:$0xff]  ;;  %v2935_v23 = vld [vmem:[%s684_s8 + $0x8] sm:$0xff]  ;;  %s687_s23 = scalar_lea.vmem %s3235_s30, %s2927_s18 }
  0x43   : > { %v2218_v21 = vld [vmem:[#allocation5] sm:$0xff]  ;;  %v2227_v24 = vld [vmem:[#allocation7 + $0x8] sm:$0xff] }
  0x44   : > { %762 = vmatpush.bf16.msra.mxu0 %v2215_v4  ;;  %v2933_v22 = vld [vmem:[%s684_s8] sm:$0xff] }
  0x45   : > { %846 = vmatpush.bf16.msra.mxu1 %v2223_v5  ;;  %v691_v25 = vpack.c.bf16 %v2935_v23, %v2933_v22  ;;  %v2226_v26 = vld [vmem:[#allocation7] sm:$0xff]  ;;  %s1786_s17 = scalar_lea.hbm %s3240_s22, %s2274_s26 }
  0x46   : > { %928 = vmatpush.bf16.msra.mxu2 %v2231_v10  ;;  %v2389_v29 = vld [vmem:[%s3189_s5] ss:$0 sm:$0xff]  ;;  %s1789_s30 = sshll.u32 %s1786_s17, 4  ;;  %s1790_s30 = int_to_ptr.hbm [resolvable:$true] %s1789_s30 }
  0x47   : > { %v2388_v30 = vld [vmem:[%s3187_s3] ss:$0 sm:$0xff] }
  0x48   : > { %763 = vmatpush.bf16.msra.mxu0 %v2214_v7  ;;  %v2390_v51 = vld [vmem:[%s3191_s7] ss:$0 sm:$0xff] }
  0x49   : > { %847 = vmatpush.bf16.msra.mxu1 %v2222_v9  ;;  %v2391_v62 = vld [vmem:[%s687_s23] ss:$0 sm:$0xff]  ;;  %s677_s23 = sand.u32 1, %s2682_s28  }
  0x4a   : > { %929 = vmatpush.bf16.msra.mxu2 %v2230_v13  ;;  %s1937_s18 = sshll.u32 %s677_s23, 4  ;;  %s1775_s0 = scalar_lea.sflag [#allocation4], %s677_s23 }
  0x4b   : > { %s679_s2 = scalar_lea.vmem [#allocation13], %s1937_s18 }
  0x4c   : > { %764 = vmatpush.bf16.msra.mxu0 %v2213_v11  ;;  %s1787_s21 = sshll.u32 %s679_s2, 4  ;;  %s1788_s21 = int_to_ptr.vmem [resolvable:$true] %s1787_s21 }
  0x4d   : > { %848 = vmatpush.bf16.msra.mxu1 %v2221_v12 }
  0x4e   : > { %930 = vmatpush.bf16.msra.mxu2 %v2229_v16 }
  0x50   : > { %765 = vmatpush.bf16.msra.mxu0 %v2212_v14 }
  0x51   : > { %849 = vmatpush.bf16.msra.mxu1 %v2220_v15 }
  0x52   : > { %931 = vmatpush.bf16.msra.mxu2 %v2228_v19 }
  0x54   : > { %766 = vmatpush.bf16.msra.mxu0 %v2211_v17 }
  0x55   : > { %850 = vmatpush.bf16.msra.mxu1 %v2219_v18 }
  0x56   : > { %932 = vmatpush.bf16.msra.mxu2 %v2227_v24 }
  0x58   : > { %767 = vmatpush.bf16.msra.mxu0 %v2210_v20 }
  0x59   : > { %851 = vmatpush.bf16.msra.mxu1 %v2218_v21 }
  0x5a   : > { %933 = vmatpush.bf16.msra.mxu2 %v2226_v26 }
  0x5b   : > { %768 = vmatmul.bf16.vlgmr.msra.gmra.mxu0 %v691_v25 }
  0x5c   : > { %852 = vmatmul.bf16.vlgmr.msra.gmra.mxu1 %v691_v25 }
  0x5d   : > { %934 = vmatmul.bf16.vlgmr.msra.gmra.mxu2 %v691_v25 }
  0xd8   : > { %v769_v27 = vpop.f32.mrf.mxu0 }
  0xd9   : > { %v853_v28 = vpop.f32.mrf.mxu1  ;;  %v770_v34 = vadd.f32 %v2388_v30, %v769_v27 }
  0xda   : > { %v854_v31 = vadd.f32 %v2389_v29, %v853_v28 }
  0xdb   : > { %v774_v40 = vmul.f32 0.125, %v770_v34 }
  0xdc   : > { %v942_v35 = vpack.c.bf16 %v854_v31, %v854_v31 }
  0xdd   : > { %v940_v45 = vpack.c.bf16 %v774_v40, %v774_v40  ;;  %v2240_v40 = vld [vmem:[#allocation8 + $0x30] sm:$0xff] }
  0xde   : > { %v957_v41 = vunpack.c.l.b16 %v942_v35 }
  0xdf   : > { %v952_v48 = vunpack.c.l.b16 %v940_v45 }
  0xe0   : > { %v771_v32 = vpop.f32.mrf.mxu0  ;;  %v935_v50 = vpop.f32.mrf.mxu2 }
  0xe1   : > { %v855_v33 = vpop.f32.mrf.mxu1  ;;  %v772_v36 = vadd.f32 %v2388_v30, %v771_v32  ;;  %v936_v53 = vadd.f32 %v2390_v51, %v935_v50 }
  0xe2   : > { %v856_v37 = vadd.f32 %v2389_v29, %v855_v33 }
  0xe3   : > { %v775_v38 = vmul.f32 0.125, %v772_v36  ;;  %v944_v55 = vpack.c.bf16 %v936_v53, %v936_v53 }
  0xe4   : > { %v943_v39 = vpack.c.bf16 %v856_v37, %v856_v37 }
  0xe5   : > { %v941_v43 = vpack.c.bf16 %v775_v38, %v775_v38  ;;  %v1003_v57 = vunpack.c.l.b16 %v944_v55  ;;  %v2234_v55 = vld [vmem:[#allocation8] sm:$0xff] }
  0xe6   : > { %v958_v42 = vunpack.c.l.b16 %v943_v39  ;;  %v2241_v39 = vld [vmem:[#allocation8 + $0x38] sm:$0xff] }
  0xe7   : > { %v953_v47 = vunpack.c.l.b16 %v941_v43  ;;  %1174 = vmatpush.bf16.msrb.mxu1 %v2241_v39  ;;  %v2237_v43 = vld [vmem:[#allocation8 + $0x18] sm:$0xff] }
  0xe8   : > { %v959_v44 = vpack.c.b16 %v958_v42, %v957_v41  ;;  %v937_v52 = vpop.f32.mrf.mxu2  ;;  %v2239_v41 = vld [vmem:[#allocation8 + $0x28] sm:$0xff]  ;;  %v2238_v42 = vld [vmem:[#allocation8 + $0x20] sm:$0xff]  ;;  %v2253_v39 = vld [vmem:[#allocation10 + $0x54] sm:$0xf0] }
  0xe9   : > { %v954_v49 = vpack.c.b16 %v953_v47, %v952_v48  ;;  %v938_v54 = vadd.f32 %v2390_v51, %v937_v52  ;;  %v2235_v48 = vld [vmem:[#allocation8 + $0x8] sm:$0xff] }
  0xea   : > { %1030 = vrot.lane.b32.xlu1 %v959_v44, %s2702_s4  ;;  %v965_v46 = vsel %vm960_vm0, %v959_v44, 0 }
  0xeb   : > { %974 = vmatpush.bf16.xpose.msra.mxu3 %v965_v46  ;;  %v945_v56 = vpack.c.bf16 %v938_v54, %v938_v54  ;;  %1175 = vmatpush.bf16.msrb.mxu1 %v2240_v40  ;;  %v2236_v46 = vld [vmem:[#allocation8 + $0x10] sm:$0xff] }
  0xec   : > { %v2252_v40 = vld [vmem:[#allocation10 + $0x54] sm:$0xf] }
  0xed   : > { %v1004_v58 = vunpack.c.l.b16 %v945_v56 }
  0xef   : > { %v1005_v59 = vpack.c.b16 %v1004_v58, %v1003_v57  ;;  %1176 = vmatpush.bf16.msrb.mxu1 %v2239_v41 }
  0xf2   : > { %1028 = vrot.lane.b32.xlu1 %v954_v49, %s2702_s4  ;;  %2036 = vmatmul.msk.bf16.vlgmr.msra.gmra.mxu3 %vm960_vm0, %v954_v49 }
  0xf3   : > { %1017 = vmatpush.bf16.msrb.mxu3 %v1005_v59  ;;  %1177 = vmatpush.bf16.msrb.mxu1 %v2238_v42  ;;  %v2116_v42 = vld [vmem:[#allocation10 + $0x58] sm:$0xf0] }
  0xf7   : > { %1178 = vmatpush.bf16.msrb.mxu1 %v2237_v43  ;;  %v2119_v43 = vor.u32 %v2252_v40, %v2116_v42 }
  0xfb   : > { %1179 = vmatpush.bf16.msrb.mxu1 %v2236_v46  ;;  %v2250_v46 = vld [vmem:[#allocation10 + $0x44] sm:$0xf] }
  0xff   : > { %1180 = vmatpush.bf16.msrb.mxu1 %v2235_v48  ;;  %v2108_v48 = vld [vmem:[#allocation10 + $0x48] sm:$0xf0] }
 0x103   : > { %1181 = vmatpush.bf16.msrb.mxu1 %v2234_v55 }
 0x15c   : > { %v1031_v60 = vpop.permute.xlu1 %1030 }
 0x15d   : > { %v1036_v61 = vsel %vm960_vm0, %v1031_v60, 0 }
 0x15e   : > { %1045 = vmatpush.bf16.xpose.msra.mxu3 %v1036_v61 }
 0x164   : > { %v1029_v15 = vpop.permute.xlu1 %1028 }
 0x175   : > { %v976_v63 = vpop.f32.mrf.mxu3 }
 0x176   : > { %v977_v0 = vadd.f32 %v2391_v62, %v976_v63 }
 0x178   : > { %v982_v1 = vsel %vm981_vm1, %v977_v0, -inf }
 0x179   : > { %983 = vmax.xlane.f32.xlu0 %v982_v1 }
 0x17d   : > { %v978_v2 = vpop.f32.mrf.mxu3 }
 0x17e   : > { %v979_v3 = vadd.f32 %v2391_v62, %v978_v2 }
 0x180   : > { %v985_v4 = vsel %vm981_vm1, %v979_v3, -inf }
 0x181   : > { %986 = vmax.xlane.f32.xlu0 %v985_v4  ;;  %v2392_v4 = vld [vmem:[%s3193_s9] ss:$0 sm:$0xff] }
 0x195   : > { %1071 = vrot.lane.b32.xlu0 %v1005_v59, %s2702_s4 }
 0x1ec   : > { %v984_v5 = vpop.xlane.xlu0 %983 }
 0x1ed   : > { %v988_v6 = vsub.f32 %v977_v0, %v984_v5 }
 0x1ef   : > { %v990_v7 = vmul.f32 1.442695, %v988_v6 }
 0x1f1   : > { %2398 = vpow2.f32 %v990_v7 }
 0x1f4   : > { %v987_v8 = vpop.xlane.xlu0 %986 }
 0x1f5   : > { %v989_v9 = vsub.f32 %v979_v3, %v987_v8 }
 0x1f7   : > { %v992_v10 = vmul.f32 1.442695, %v989_v9  ;;  %v2399_v11 = vpop.eup %2398 }
 0x1f8   : > { %v994_v37 = vsel %vm981_vm1, %v2399_v11, 0.0 }
 0x1f9   : > { %2400 = vpow2.f32 %v992_v10 }
 0x1ff   : > { %v2401_v12 = vpop.eup %2400 }
 0x200   : > { %v1000_v13 = vpack.c.bf16 %v2401_v12, %v2399_v11  ;;  %v997_v38 = vsel %vm981_vm1, %v2401_v12, 0.0  ;;  %v2703_v11 = vmov 128.0  }
 0x202   : > { %2037 = vmatmul.msk.bf16.vlgmr.msrb.gmra.mxu3 %vm981_vm1, %v1000_v13 }
 0x207   : > { %v1072_v14 = vpop.permute.xlu0 %1071 }
 0x208   : > { %1084 = vmatpush.bf16.msrb.mxu0 %v1072_v14 }
 0x212   : > { %2038 = vmatmul.msk.bf16.vlgmr.msra.gmra.mxu3 %vm960_vm0, %v1029_v15 }
 0x285   : > { %v2967_v16 = vpop.f32.mrf.mxu3 }
 0x28d   : > { %v2969_v17 = vpop.f32.mrf.mxu3 }
 0x295   : > { %v1047_v18 = vpop.f32.mrf.mxu3 }
 0x296   : > { %v1048_v19 = vadd.f32 %v2391_v62, %v1047_v18 }
 0x298   : > { %v1052_v20 = vsel %vm981_vm1, %v1048_v19, -inf }
 0x299   : > { %1053 = vmax.xlane.f32.xlu2 %v1052_v20 }
 0x29d   : > { %v1049_v21 = vpop.f32.mrf.mxu3 }
 0x29e   : > { %v1050_v24 = vadd.f32 %v2391_v62, %v1049_v21 }
 0x2a0   : > { %v1055_v25 = vsel %vm981_vm1, %v1050_v24, -inf }
 0x2a1   : > { %1056 = vmax.xlane.f32.xlu2 %v1055_v25 }
 0x30c   : > { %v1054_v26 = vpop.xlane.xlu2 %1053 }
 0x30d   : > { %v1058_v27 = vsub.f32 %v1048_v19, %v1054_v26  ;;  %v2130_v26 = vld [vmem:[#allocation10 + $0x70] sm:$0xf] }
 0x30f   : > { %v1060_v28 = vmul.f32 1.442695, %v1058_v27  ;;  %v2257_v27 = vld [vmem:[#allocation10 + $0x74] sm:$0xf0] }
 0x311   : > { %2402 = vpow2.f32 %v1060_v28  ;;  %v2256_v28 = vld [vmem:[#allocation10 + $0x74] sm:$0xf] }
 0x314   : > { %v1057_v29 = vpop.xlane.xlu2 %1056 }
 0x315   : > { %v1059_v30 = vsub.f32 %v1050_v24, %v1057_v29  ;;  %v2131_v29 = vor.u32 %v2257_v27, %v2130_v26 }
 0x317   : > { %v2403_v31 = vpop.eup %2402  ;;  %v1062_v32 = vmul.f32 1.442695, %v1059_v30  ;;  %v2132_v30 = vld [vmem:[#allocation10 + $0x78] sm:$0xf0]  ;;  %1352 = vmatpush.bf16.msrb.mxu2 %v2131_v29 }
 0x318   : > { %v1064_v33 = vsel %vm981_vm1, %v2403_v31, 0.0 }
 0x319   : > { %2404 = vpow2.f32 %v1062_v32  ;;  %1065 = vadd.xlane.f32.xlu1 %v1064_v33  ;;  %v2122_v32 = vld [vmem:[#allocation10 + $0x60] sm:$0xf]  ;;  %v2255_v33 = vld [vmem:[#allocation10 + $0x64] sm:$0xf0] }
 0x31f   : > { %v2405_v34 = vpop.eup %2404 }
 0x320   : > { %v1067_v35 = vsel %vm981_vm1, %v2405_v34, 0.0  ;;  %v1070_v36 = vpack.c.bf16 %v2405_v34, %v2403_v31  ;;  %v2135_v31 = vor.u32 %v2256_v28, %v2132_v30  ;;  %v2254_v34 = vld [vmem:[#allocation10 + $0x64] sm:$0xf] }
 0x321   : > { %1068 = vadd.xlane.f32.xlu2 %v1067_v35  ;;  %v2123_v35 = vor.u32 %v2255_v33, %v2122_v32  ;;  %v2393_v32 = vld [vmem:[%s3194_s10] ss:$0 sm:$0xff] }
 0x322   : > { %2039 = vmatmul.msk.bf16.vlgmr.msrb.gmra.mxu0 %vm981_vm1, %v1070_v36  ;;  %1366 = vmatpush.bf16.msrb.mxu3 %v2135_v31  ;;  %v2124_v36 = vld [vmem:[#allocation10 + $0x68] sm:$0xf0] }
 0x323   : > { %1353 = vmatpush.bf16.msrb.mxu2 %v2123_v35 }
 0x329   : > { %995 = vadd.xlane.f32.xlu2 %v994_v37  ;;  %v2127_v37 = vor.u32 %v2254_v34, %v2124_v36 }
 0x32b   : > { %1367 = vmatpush.bf16.msrb.mxu3 %v2127_v37  ;;  %v2394_v37 = vld [vmem:[%s3195_s11] ss:$0 sm:$0xff] }
 0x32f   : > { %1368 = vmatpush.bf16.msrb.mxu3 %v2119_v43 }
 0x331   : > { %998 = vadd.xlane.f32.xlu2 %v997_v38  ;;  %v2114_v38 = vld [vmem:[#allocation10 + $0x50] sm:$0xf] }
 0x332   : > { %v2115_v41 = vor.u32 %v2253_v39, %v2114_v38 }
 0x334   : > { %1354 = vmatpush.bf16.msrb.mxu2 %v2115_v41  ;;  %v1266_v41 = vld [vmem:[%s3197_s13] sm:$0x3] }
 0x335   : > { %v1269_v42 = vperm.slane %v1266_v41, 1 }
 0x38c   : > { %v1066_v44 = vpop.xlane.xlu1 %1065 }
 0x38d   : > { %2406 = vrcp.f32 %v1066_v44  ;;  %v2106_v44 = vld [vmem:[#allocation10 + $0x40] sm:$0xf] }
 0x393   : > { %v2407_v49 = vpop.eup %2406 }
 0x394   : > { %v1069_v45 = vpop.xlane.xlu2 %1068 }
 0x395   : > { %2408 = vrcp.f32 %v1069_v45  ;;  %v2251_v45 = vld [vmem:[#allocation10 + $0x44] sm:$0xf0] }
 0x39b   : > { %v2409_v50 = vpop.eup %2408 }
 0x39c   : > { %v996_v56 = vpop.xlane.xlu2 %995 }
 0x39d   : > { %2410 = vrcp.f32 %v996_v56  ;;  %v2090_v56 = vld [vmem:[#allocation10 + $0x20] sm:$0xf] }
 0x39f   : > { %v1086_v47 = vpop.f32.mrf.mxu0 }
 0x3a0   : > { %v1093_v52 = vmul.f32 %v2407_v49, %v1086_v47  ;;  %v2107_v47 = vor.u32 %v2251_v45, %v2106_v44  ;;  %v2111_v49 = vor.u32 %v2250_v46, %v2108_v48 }
 0x3a2   : > { %1355 = vmatpush.bf16.msrb.mxu2 %v2107_v47  ;;  %1369 = vmatpush.bf16.msrb.mxu3 %v2111_v49 }
 0x3a3   : > { %v2411_v58 = vpop.eup %2410 }
 0x3a4   : > { %v999_v57 = vpop.xlane.xlu2 %998  ;;  %v1026_v61 = vmul.f32 %v2411_v58, %v2967_v16  ;;  %v2246_v58 = vld [vmem:[#allocation10 + $0x24] sm:$0xf] }
 0x3a5   : > { %2412 = vrcp.f32 %v999_v57  ;;  %v2247_v57 = vld [vmem:[#allocation10 + $0x24] sm:$0xf0] }
 0x3a6   : > { %2414 = vrcp.f32 %v2703_v11 }
 0x3a7   : > { %v1088_v51 = vpop.f32.mrf.mxu0 }
 0x3a8   : > { %v1094_v53 = vmul.f32 %v2409_v50, %v1088_v51  ;;  %v2098_v50 = vld [vmem:[#allocation10 + $0x30] sm:$0xf]  ;;  %v2249_v51 = vld [vmem:[#allocation10 + $0x34] sm:$0xf0] }
 0x3aa   : > { %v2383_v54 = vpack.i.bf16 %v1094_v53, %v1093_v52  ;;  %v2248_v52 = vld [vmem:[#allocation10 + $0x34] sm:$0xf]  ;;  %v2099_v53 = vor.u32 %v2249_v51, %v2098_v50 }
 0x3ab   : > { %v2413_v59 = vpop.eup %2412 }
 0x3ac   : > { %2384 = vrot.lane.b32.xlu0 %v2383_v54, %s2702_s4  ;;  %v1027_v62 = vmul.f32 %v2413_v59, %v2969_v17  ;;  %v2415_v12 = vpop.eup %2414  ;;  %v2100_v54 = vld [vmem:[#allocation10 + $0x38] sm:$0xf0]  ;;  %1356 = vmatpush.bf16.msrb.mxu2 %v2099_v53  ;;  %v2091_v59 = vor.u32 %v2247_v57, %v2090_v56  ;;  %s2626_s4 = sshra.s32 %s1790_s30, 4  ;;  %s2627_s4 = int_to_ptr.hbm [resolvable:$true] %s2626_s4 }
 0x3ad   : > { %v1197_v13 = vmul.f32 128.0, %v2415_v12  ;;  %vm1201_vm2 = vweird.f32 %v2415_v12  ;;  %v2103_v55 = vor.u32 %v2248_v52, %v2100_v54  ;;  %s2628_s27 = scalar_lea.hbm %s2627_s4, 16  ;;  %p2633_p3 = scmp.lt.s32.totalorder %s2627_s4, %s3240_s22 }
 0x3ae   : > { %p2629_p0 = scmp.ne.s32.totalorder %s2627_s4, %s2628_s27 }
 0x3af   : > { %v1198_v14 = vsub.f32 1.0, %v1197_v13  ;;  %1370 = vmatpush.bf16.msrb.mxu3 %v2103_v55 }
 0x3b0   : > { %1357 = vmatpush.bf16.msrb.mxu2 %v2091_v59  ;;  %p2630_p1 = pnand %p2629_p0, %p2839_p5 }
 0x3b1   : > { %v1199_v15 = vmul.f32 %v2415_v12, %v1198_v14 }
 0x3b2   : > { %p2631_p2 = pneg %p2630_p1 }
 0x3b3   : > { %v1200_v16 = vadd.f32 %v2415_v12, %v1199_v15 }
 0x3b5   : > { %v2988_v17 = vsel %vm1201_vm2, %v2415_v12, %v1200_v16 }
 0x41e   : > { %v2385_v60 = vpop.permute.xlu0 %2384 }
 0x41f   : > { %v2387_v63 = vunpack.i.h.bf16 %v2385_v60  ;;  %v2386_v0 = vunpack.i.l.bf16 %v2385_v60  ;;  %v2092_v60 = vld [vmem:[#allocation10 + $0x28] sm:$0xf0] }
 0x421   : > { %v1103_v1 = vsel %vm960_vm0, %v1026_v61, %v2386_v0  ;;  %v1104_v2 = vsel %vm960_vm0, %v1027_v62, %v2387_v63  ;;  %v2095_v61 = vor.u32 %v2246_v58, %v2092_v60  ;;  %v2082_v62 = vld [vmem:[#allocation10 + $0x10] sm:$0xf]  ;;  %v2245_v63 = vld [vmem:[#allocation10 + $0x14] sm:$0xf0]  ;;  %v2244_v0 = vld [vmem:[#allocation10 + $0x14] sm:$0xf] }
 0x422   : > { %v1105_v3 = vpack.c.bf16 %v1104_v2, %v1103_v1  ;;  %v2083_v1 = vor.u32 %v2245_v63, %v2082_v62  ;;  %v2084_v2 = vld [vmem:[#allocation10 + $0x18] sm:$0xf0] }
 0x423   : > { %1371 = vmatpush.bf16.msrb.mxu3 %v2095_v61 }
 0x424   : > { %1182 = vmatmul.bf16.vlgmr.msrb.gmra.mxu1 %v1105_v3  ;;  %v2087_v3 = vor.u32 %v2244_v0, %v2084_v2  ;;  %1358 = vmatpush.bf16.msrb.mxu2 %v2083_v1 }
 0x427   : > { %1372 = vmatpush.bf16.msrb.mxu3 %v2087_v3  ;;  %v2265_v3 = vld [vmem:[#allocation11 + $0x38] sm:$0xff] }
 0x428   : > { %1690 = vmatpush.bf16.msra.mxu0 %v2265_v3 }
 0x4a1   : > { %v1183_v5 = vpop.f32.mrf.mxu1 }
 0x4a2   : > { %v1184_v6 = vadd.f32 %v2392_v4, %v1183_v5  ;;  %v2243_v5 = vld [vmem:[#allocation10 + $0x4] sm:$0xf0] }
 0x4a4   : > { %v1188_v7 = vadd.f32 %v1184_v6, %v2933_v22  ;;  %v2242_v6 = vld [vmem:[#allocation10 + $0x4] sm:$0xf] }
 0x4a6   : > { %1192 = vadd.xlane.f32.xlu2 %v1188_v7 }
 0x4a9   : > { %v1185_v8 = vpop.f32.mrf.mxu1 }
 0x4aa   : > { %v1186_v9 = vadd.f32 %v2392_v4, %v1185_v8  ;;  %v2074_v4 = vld [vmem:[#allocation10] sm:$0xf] }
 0x4ab   : > { %v2075_v8 = vor.u32 %v2243_v5, %v2074_v4  ;;  %v2273_v4 = vld [vmem:[#allocation11 + $0x78] sm:$0xff] }
 0x4ac   : > { %v1189_v10 = vadd.f32 %v1186_v9, %v2935_v23  ;;  %v2076_v9 = vld [vmem:[#allocation10 + $0x8] sm:$0xf0]  ;;  %1704 = vmatpush.bf16.msra.mxu1 %v2273_v4 }
 0x4ad   : > { %v2079_v11 = vor.u32 %v2242_v6, %v2076_v9  ;;  %1359 = vmatpush.bf16.msrb.mxu2 %v2075_v8 }
 0x4ae   : > { %1194 = vadd.xlane.f32.xlu0 %v1189_v10 }
 0x4af   : > { %1373 = vmatpush.bf16.msrb.mxu3 %v2079_v11 }
 0x519   : > { %v1193_v18 = vpop.xlane.xlu2 %1192 }
 0x51a   : > { %v1203_v19 = vmul.f32 %v2988_v17, %v1193_v18 }
 0x51c   : > { %v2991_v22 = vsub.f32 %v1188_v7, %v1203_v19 }
 0x51e   : > { %v1207_v20 = vmul.f32 %v2991_v22, %v2991_v22 }
 0x520   : > { %1209 = vadd.xlane.f32.xlu2 %v1207_v20 }
 0x521   : > { %v1195_v23 = vpop.xlane.xlu0 %1194 }
 0x522   : > { %v1204_v21 = vmul.f32 %v2988_v17, %v1195_v23 }
 0x524   : > { %v2996_v24 = vsub.f32 %v1189_v10, %v1204_v21 }
 0x526   : > { %v1208_v25 = vmul.f32 %v2996_v24, %v2996_v24 }
 0x528   : > { %1211 = vadd.xlane.f32.xlu2 %v1208_v25 }
 0x593   : > { %v1210_v7 = vpop.xlane.xlu2 %1209 }
 0x594   : > { %v1213_v10 = vmul.f32 %v1210_v7, %v2988_v17 }
 0x596   : > { %v1215_v12 = vadd.f32 1e-12, %v1213_v10 }
 0x598   : > { %2416 = vrsqrt.f32 %v1215_v12  ;;  %vm1223_vm4 = vweird.f32 %v1215_v12 }
 0x59b   : > { %v1212_v13 = vpop.xlane.xlu2 %1211 }
 0x59c   : > { %v1214_v14 = vmul.f32 %v1212_v13, %v2988_v17  ;;  %v2272_v13 = vld [vmem:[#allocation11 + $0x70] sm:$0xff] }
 0x59d   : > { %1705 = vmatpush.bf16.msra.mxu1 %v2272_v13 }
 0x59e   : > { %v2417_v15 = vpop.eup %2416  ;;  %v1216_v16 = vadd.f32 1e-12, %v1214_v14 }
 0x59f   : > { %v1218_v18 = vmul.f32 %v2417_v15, %v1215_v12  ;;  %vm1224_vm3 = vweird.f32 %v2417_v15  ;;  %v2264_v12 = vld [vmem:[#allocation11 + $0x30] sm:$0xff] }
 0x5a0   : > { %2418 = vrsqrt.f32 %v1216_v16  ;;  %vm1225_vm5 = vmor %vm1223_vm4, %vm1224_vm3  ;;  %vm1233_vm7 = vweird.f32 %v1216_v16  ;;  %1691 = vmatpush.bf16.msra.mxu0 %v2264_v12 }
 0x5a1   : > { %v1219_v19 = vmul.f32 %v2417_v15, %v1218_v18 }
 0x5a3   : > { %v1220_v20 = vmul.f32 0.5, %v1219_v19 }
 0x5a5   : > { %v1221_v23 = vsub.f32 1.5, %v1220_v20 }
 0x5a6   : > { %v2419_v21 = vpop.eup %2418 }
 0x5a7   : > { %v1222_v25 = vmul.f32 %v2417_v15, %v1221_v23  ;;  %v1228_v26 = vmul.f32 %v2419_v21, %v1216_v16  ;;  %vm1234_vm6 = vweird.f32 %v2419_v21 }
 0x5a8   : > { %vm1235_vm8 = vmor %vm1233_vm7, %vm1234_vm6 }
 0x5a9   : > { %v1229_v27 = vmul.f32 %v2419_v21, %v1228_v26  ;;  %v1226_v28 = vsel %vm1225_vm5, %v2417_v15, %v1222_v25 }
 0x5aa   : > { %v1237_v31 = vmul.f32 %v1226_v28, %v2991_v22 }
 0x5ab   : > { %v1230_v29 = vmul.f32 0.5, %v1229_v27 }
 0x5ac   : > { %v1242_v36 = vmul.f32 %v2393_v32, %v1237_v31  ;;  %v2263_v31 = vld [vmem:[#allocation11 + $0x28] sm:$0xff] }
 0x5ad   : > { %v1231_v30 = vsub.f32 1.5, %v1230_v29  ;;  %1692 = vmatpush.bf16.msra.mxu0 %v2263_v31 }
 0x5ae   : > { %v3010_v39 = vadd.f32 %v2394_v37, %v1242_v36 }
 0x5af   : > { %v1232_v33 = vmul.f32 %v2419_v21, %v1231_v30 }
 0x5b1   : > { %v1236_v34 = vsel %vm1235_vm8, %v2419_v21, %v1232_v33 }
 0x5b2   : > { %v1238_v35 = vmul.f32 %v1236_v34, %v2996_v24  ;;  %v1268_v24 = vperm.slane %v1266_v41, 0 }
 0x5b4   : > { %v1243_v38 = vmul.f32 %v2393_v32, %v1238_v35  ;;  %v2271_v32 = vld [vmem:[#allocation11 + $0x68] sm:$0xff] }
 0x5b5   : > { %1706 = vmatpush.bf16.msra.mxu1 %v2271_v32 }
 0x5b6   : > { %v3012_v40 = vadd.f32 %v2394_v37, %v1243_v38 }
 0x5b8   : > { %v1249_v22 = vpack.c.bf16 %v3012_v40, %v3010_v39 }
 0x5ba   : > { %1360 = vmatmul.bf16.vlgmr.msrb.gmra.mxu2 %v1249_v22  ;;  %1374 = vmatmul.bf16.vlgmr.msrb.gmra.mxu3 %v1249_v22 }
 0x63d   : > { %v1361_v43 = vpop.f32.mrf.mxu2  ;;  %v1375_v44 = vpop.f32.mrf.mxu3 }
 0x63e   : > { %v3019_v45 = vadd.f32 %v1361_v43, %v1268_v24  ;;  %v3021_v46 = vadd.f32 %v1375_v44, %v1269_v42  ;;  %v2262_v44 = vld [vmem:[#allocation11 + $0x20] sm:$0xff] }
 0x63f   : > { %1693 = vmatpush.bf16.msra.mxu0 %v2262_v44 }
 0x640   : > { %v3024_v47 = vmul.f32 0.70710677, %v3019_v45  ;;  %v3027_v48 = vmul.f32 0.70710677, %v3021_v46 }
 0x642   : > { %v1388_v49 = vmul.f32 %v3024_v47, %v3024_v47  ;;  %v1428_v50 = vmul.f32 %v3027_v48, %v3027_v48 }
 0x644   : > { %v3033_v51 = vmin.f32 %v1388_v49, 16.0  ;;  %v3035_v52 = vmin.f32 %v1428_v50, 16.0  ;;  %v2270_v49 = vld [vmem:[#allocation11 + $0x60] sm:$0xff] }
 0x645   : > { %v1363_v53 = vpop.f32.mrf.mxu2  ;;  %v1377_v54 = vpop.f32.mrf.mxu3  ;;  %1707 = vmatpush.bf16.msra.mxu1 %v2270_v49 }
 0x646   : > { %v1390_v55 = vmul.f32 2.1237322e-06, %v3033_v51  ;;  %v1401_v56 = vmul.f32 3.8918573e-05, %v3033_v51  ;;  %v3039_v57 = vadd.f32 %v1363_v53, %v1268_v24  ;;  %v1441_v58 = vmul.f32 3.8918573e-05, %v3035_v52 }
 0x647   : > { %v3042_v59 = vadd.f32 %v1377_v54, %v1269_v42  ;;  %v1430_v1 = vmul.f32 2.1237322e-06, %v3035_v52 }
 0x648   : > { %v1391_v60 = vadd.f32 0.00028619796, %v1390_v55  ;;  %v1402_v61 = vadd.f32 0.001143296, %v1401_v56  ;;  %v1442_v62 = vadd.f32 0.001143296, %v1441_v58 }
 0x649   : > { %v3045_v63 = vmul.f32 0.70710677, %v3039_v57  ;;  %v3050_v2 = vmul.f32 0.70710677, %v3042_v59  ;;  %v1431_v15 = vadd.f32 0.00028619796, %v1430_v1 }
 0x64a   : > { %v1403_v0 = vmul.f32 %v1402_v61, %v3033_v51  ;;  %v1443_v5 = vmul.f32 %v1442_v62, %v3035_v52  ;;  %v1392_v7 = vmul.f32 %v1391_v60, %v3033_v51  ;;  %v2261_v60 = vld [vmem:[#allocation11 + $0x18] sm:$0xff] }
 0x64b   : > { %v1468_v6 = vmul.f32 %v3045_v63, %v3045_v63  ;;  %v1508_v9 = vmul.f32 %v3050_v2, %v3050_v2  ;;  %v1432_v29 = vmul.f32 %v1431_v15, %v3035_v52  ;;  %v2269_v1 = vld [vmem:[#allocation11 + $0x58] sm:$0xff]  ;;  %1694 = vmatpush.bf16.msra.mxu0 %v2261_v60 }
 0x64c   : > { %v1404_v8 = vadd.f32 0.014752088, %v1403_v0  ;;  %v1444_v10 = vadd.f32 0.014752088, %v1443_v5  ;;  %v1393_v23 = vadd.f32 0.0036580483, %v1392_v7  ;;  %1708 = vmatpush.bf16.msra.mxu1 %v2269_v1 }
 0x64d   : > { %v3058_v11 = vmin.f32 %v1468_v6, 16.0  ;;  %v3061_v16 = vmin.f32 %v1508_v9, 16.0  ;;  %v1433_v42 = vadd.f32 0.0036580483, %v1432_v29  ;;  %v2260_v7 = vld [vmem:[#allocation11 + $0x10] sm:$0xff] }
 0x64e   : > { %v1405_v14 = vmul.f32 %v1404_v8, %v3033_v51  ;;  %v1445_v18 = vmul.f32 %v1444_v10, %v3035_v52  ;;  %v1394_v37 = vmul.f32 %v1393_v23, %v3033_v51  ;;  %v2268_v8 = vld [vmem:[#allocation11 + $0x50] sm:$0xff]  ;;  %v2259_v23 = vld [vmem:[#allocation11 + $0x8] sm:$0xff] }
 0x64f   : > { %v1470_v19 = vmul.f32 2.1237322e-06, %v3058_v11  ;;  %v1481_v20 = vmul.f32 3.8918573e-05, %v3058_v11  ;;  %v1510_v30 = vmul.f32 2.1237322e-06, %v3061_v16  ;;  %v1434_v4 = vmul.f32 %v1433_v42, %v3035_v52  ;;  %1695 = vmatpush.bf16.msra.mxu0 %v2260_v7 }
 0x650   : > { %v1406_v21 = vadd.f32 0.112945676, %v1405_v14  ;;  %v1446_v25 = vadd.f32 0.112945676, %v1445_v18  ;;  %v1521_v36 = vmul.f32 3.8918573e-05, %v3061_v16  ;;  %1709 = vmatpush.bf16.msra.mxu1 %v2268_v8 }
 0x651   : > { %v1471_v26 = vadd.f32 0.00028619796, %v1470_v19  ;;  %v1482_v27 = vadd.f32 0.001143296, %v1481_v20  ;;  %v1511_v54 = vadd.f32 0.00028619796, %v1510_v30 }
 0x652   : > { %v1407_v28 = vmul.f32 %v1406_v21, %v3033_v51  ;;  %v1447_v33 = vmul.f32 %v1446_v25, %v3035_v52  ;;  %v1522_v55 = vadd.f32 0.001143296, %v1521_v36  ;;  %v1395_v56 = vadd.f32 0.05243302, %v1394_v37  ;;  %v2267_v21 = vld [vmem:[#allocation11 + $0x48] sm:$0xff]  ;;  %v2258_v37 = vld [vmem:[#allocation11] sm:$0xff] }
 0x653   : > { %v1472_v34 = vmul.f32 %v1471_v26, %v3058_v11  ;;  %v1483_v35 = vmul.f32 %v1482_v27, %v3058_v11  ;;  %v1512_v5 = vmul.f32 %v1511_v54, %v3061_v16  ;;  %v1435_v13 = vadd.f32 0.05243302, %v1434_v4  ;;  %1696 = vmatpush.bf16.msra.mxu0 %v2259_v23 }
 0x654   : > { %v1408_v38 = vadd.f32 0.4994258, %v1407_v28  ;;  %v1448_v22 = vadd.f32 0.4994258, %v1447_v33  ;;  %v1523_v0 = vmul.f32 %v1522_v55, %v3061_v16  ;;  %v1396_v6 = vmul.f32 %v1395_v56, %v3033_v51  ;;  %1710 = vmatpush.bf16.msra.mxu1 %v2267_v21 }
 0x655   : > { %v1484_v41 = vadd.f32 0.014752088, %v1483_v35  ;;  %v1473_v43 = vadd.f32 0.0036580483, %v1472_v34  ;;  %v1513_v15 = vadd.f32 0.0036580483, %v1512_v5  ;;  %v1436_v32 = vmul.f32 %v1435_v13, %v3035_v52 }
 0x656   : > { %v1409_v24 = vmul.f32 %v1408_v38, %v3033_v51  ;;  %v1449_v50 = vmul.f32 %v1448_v22, %v3035_v52  ;;  %v1524_v10 = vadd.f32 0.014752088, %v1523_v0  ;;  %v1397_v20 = vadd.f32 0.18741608, %v1396_v6  ;;  %v2266_v38 = vld [vmem:[#allocation11 + $0x40] sm:$0xff] }
 0x657   : > { %v1485_v53 = vmul.f32 %v1484_v41, %v3058_v11  ;;  %v1474_v3 = vmul.f32 %v1473_v43, %v3058_v11  ;;  %v1514_v34 = vmul.f32 %v1513_v15, %v3061_v16  ;;  %v1437_v49 = vadd.f32 0.18741608, %v1436_v32  ;;  %1697 = vmatpush.bf16.msra.mxu0 %v2258_v37 }
 0x658   : > { %v3077_v58 = vadd.f32 1.0, %v1409_v24  ;;  %v3079_v61 = vadd.f32 1.0, %v1449_v50  ;;  %v1525_v18 = vmul.f32 %v1524_v10, %v3061_v16  ;;  %v1398_v35 = vmul.f32 %v1397_v20, %v3033_v51  ;;  %1711 = vmatpush.bf16.msra.mxu1 %v2266_v38 }
 0x659   : > { %v1486_v62 = vadd.f32 0.112945676, %v1485_v53  ;;  %v1475_v12 = vadd.f32 0.05243302, %v1474_v3  ;;  %v1515_v50 = vadd.f32 0.05243302, %v1514_v34 }
 0x65a   : > { %2420 = vrcp.f32 %v3077_v58  ;;  %v1526_v30 = vadd.f32 0.112945676, %v1525_v18  ;;  %v1422_v44 = vand.u32 2147483648, %v3077_v58  ;;  %v1399_v53 = vadd.f32 1.1283791, %v1398_v35 }
 0x65b   : > { %2422 = vrcp.f32 %v3079_v61  ;;  %v1487_v9 = vmul.f32 %v1486_v62, %v3058_v11  ;;  %v1476_v29 = vmul.f32 %v1475_v12, %v3058_v11  ;;  %vm1416_vm10 = vweird.f32 %v3077_v58 }
 0x65c   : > { %v1527_v36 = vmul.f32 %v1526_v30, %v3061_v16  ;;  %v1420_v51 = vand.u32 2147483647, %v3077_v58  ;;  %v1423_v1 = vor.u32 1.1754944e-38, %v1422_v44  ;;  %v1516_v3 = vmul.f32 %v1515_v50, %v3061_v16 }
 0x65d   : > { %v1488_v14 = vadd.f32 0.4994258, %v1487_v9  ;;  %v1477_v24 = vadd.f32 0.18741608, %v1476_v29  ;;  %v1400_v4 = vmul.f32 %v1399_v53, %v3024_v47  ;;  %v1462_v8 = vand.u32 2147483648, %v3079_v61 }
 0x65e   : > { %v1528_v42 = vadd.f32 0.4994258, %v1527_v36  ;;  %vm1421_vm12 = vcmp.eq.f32.partialorder %v1420_v51, 8.507059e+37  ;;  %vm1456_vm14 = vweird.f32 %v3079_v61  ;;  %v1517_v13 = vadd.f32 0.18741608, %v1516_v3 }
 0x65f   : > { %v1489_v27 = vmul.f32 %v1488_v14, %v3058_v11  ;;  %v1478_v60 = vmul.f32 %v1477_v24, %v3058_v11  ;;  %v1460_v11 = vand.u32 2147483647, %v3079_v61  ;;  %v1463_v20 = vor.u32 1.1754944e-38, %v1462_v8 }
 0x660   : > { %v2421_v19 = vpop.eup %2420  ;;  %v1529_v54 = vmul.f32 %v1528_v42, %v3061_v16  ;;  %v1382_v24 = vmul.f32 0.5, %v3039_v57  ;;  %v1381_v57 = vmul.f32 0.5, %v3021_v46 }
 0x661   : > { %v3090_v25 = vpop.eup %2422  ;;  %v1412_v26 = vmul.f32 %v2421_v19, %v3077_v58  ;;  %v1490_v33 = vadd.f32 1.0, %v1489_v27  ;;  %vm1417_vm9 = vweird.f32 %v2421_v19  ;;  %v1438_v58 = vmul.f32 %v1437_v49, %v3035_v52 }
 0x662   : > { %v1452_v28 = vmul.f32 %v3090_v25, %v3079_v61  ;;  %vm1418_vm11 = vmor %vm1416_vm10, %vm1417_vm9  ;;  %v3107_v62 = vadd.f32 1.0, %v1529_v54  ;;  %vm1457_vm13 = vweird.f32 %v3090_v25  ;;  %v1479_v9 = vadd.f32 1.1283791, %v1478_v60 }
 0x663   : > { %v1413_v31 = vsub.f32 1.0, %v1412_v26  ;;  %2424 = vrcp.f32 %v1490_v33  ;;  %v1500_v47 = vand.u32 2147483647, %v1490_v33  ;;  %v1502_v12 = vand.u32 2147483648, %v1490_v33  ;;  %vm3118_vm15 = vmor %vm1456_vm14, %vm1457_vm13 }
 0x664   : > { %v1453_v41 = vsub.f32 1.0, %v1452_v28  ;;  %2426 = vrcp.f32 %v3107_v62  ;;  %v1439_v18 = vadd.f32 1.1283791, %v1438_v58  ;;  %vm1461_vm1 = vcmp.eq.f32.partialorder %v1460_v11, 8.507059e+37  ;;  %v2395_v58 = vld [vmem:[%s3199_s15] ss:$0 sm:$0xff] }
 0x665   : > { %v1414_v22 = vmul.f32 %v2421_v19, %v1413_v31  ;;  %vm1496_vm2 = vweird.f32 %v1490_v33  ;;  %v1480_v21 = vmul.f32 %v1479_v9, %v3045_v63  ;;  %vm1501_vm4 = vcmp.eq.f32.partialorder %v1500_v47, 8.507059e+37 }
 0x666   : > { %v1454_v55 = vmul.f32 %v3090_v25, %v1453_v41  ;;  %v1503_v26 = vor.u32 1.1754944e-38, %v1502_v12  ;;  %v1518_v27 = vmul.f32 %v1517_v13, %v3061_v16  ;;  %v1440_v32 = vmul.f32 %v1439_v18, %v3027_v48 }
 0x667   : > { %v1415_v43 = vadd.f32 %v2421_v19, %v1414_v22  ;;  %v1540_v37 = vand.u32 2147483647, %v3107_v62  ;;  %v1542_v63 = vand.u32 2147483648, %v3107_v62  ;;  %v1380_v16 = vmul.f32 0.5, %v3019_v45 }
 0x668   : > { %v1455_v7 = vadd.f32 %v3090_v25, %v1454_v55  ;;  %vm1536_vm6 = vweird.f32 %v3107_v62 }
 0x669   : > { %v1419_v56 = vsel %vm1418_vm11, %v2421_v19, %v1415_v43  ;;  %v2425_v0 = vpop.eup %2424  ;;  %v1543_v49 = vor.u32 1.1754944e-38, %v1542_v63  ;;  %vm1541_vm8 = vcmp.eq.f32.partialorder %v1540_v37, 8.507059e+37 }
 0x66a   : > { %v1492_v5 = vmul.f32 %v2425_v0, %v1490_v33  ;;  %v1424_v6 = vsel %vm1421_vm12, %v1423_v1, %v1419_v56  ;;  %vm1497_vm0 = vweird.f32 %v2425_v0  ;;  %v1459_v19 = vsel %vm3118_vm15, %v3090_v25, %v1455_v7  ;;  %v2427_v61 = vpop.eup %2426 }
 0x66b   : > { %v1425_v52 = vmul.f32 %v1424_v6, %v1400_v4  ;;  %vm1498_vm3 = vmor %vm1496_vm2, %vm1497_vm0  ;;  %v1464_v29 = vsel %vm1461_vm1, %v1463_v20, %v1459_v19  ;;  %v1532_v31 = vmul.f32 %v2427_v61, %v3107_v62  ;;  %v1519_v33 = vadd.f32 1.1283791, %v1518_v27 }
 0x66c   : > { %v1493_v10 = vsub.f32 1.0, %v1492_v5  ;;  %v1465_v36 = vmul.f32 %v1464_v29, %v1440_v32  ;;  %vm1537_vm5 = vweird.f32 %v2427_v61 }
 0x66d   : > { %v2136_v28 = vclamps-f32 %v1425_v52, 1.0  ;;  %v1533_v35 = vsub.f32 1.0, %v1532_v31  ;;  %v1520_v44 = vmul.f32 %v1519_v33, %v3050_v2  ;;  %vm1538_vm7 = vmor %vm1536_vm6, %vm1537_vm5 }
 0x66e   : > { %v1494_v15 = vmul.f32 %v2425_v0, %v1493_v10  ;;  %v2137_v48 = vclamps-f32 %v1465_v36, 1.0  ;;  %v2397_v36 = vld [vmem:[%s3239_s25] ss:$0 sm:$0xff]  ;;  %s2632_s25 = scalar_lea.hbm %s3240_s22, 32 }
 0x66f   : > { %v1548_v38 = vadd.f32 1.0, %v2136_v28  ;;  %v1534_v41 = vmul.f32 %v2427_v61, %v1533_v35  ;;  %p2634_p4 = scmp.lt.s32.totalorder %s2632_s25, %s2628_s27 }
 0x670   : > { %v1495_v23 = vadd.f32 %v2425_v0, %v1494_v15  ;;  %v1549_v60 = vadd.f32 1.0, %v2137_v48 }
 0x671   : > { %v1535_v43 = vadd.f32 %v2427_v61, %v1534_v41  ;;  %v1552_v50 = vmul.f32 %v1548_v38, %v1380_v16  ;;  %p2635_p7 = por %p2634_p4, %p2633_p3 }
 0x672   : > { %v1499_v30 = vsel %vm1498_vm3, %v2425_v0, %v1495_v23  ;;  %v1383_v0 = vmul.f32 0.5, %v3042_v59  ;;  %v1553_v1 = vmul.f32 %v1549_v60, %v1381_v57 }
 0x673   : > { %v1504_v25 = vsel %vm1501_vm4, %v1503_v26, %v1499_v30  ;;  %v1539_v51 = vsel %vm1538_vm7, %v2427_v61, %v1535_v43  ;;  %p2636_p8 = pnand %p2635_p7, %p2631_p2 }
 0x674   : > { %v1505_v34 = vmul.f32 %v1504_v25, %v1480_v21  ;;  %v1544_v54 = vsel %vm1541_vm8, %v1543_v49, %v1539_v51 }
 0x675   : > { %v1545_v56 = vmul.f32 %v1544_v54, %v1520_v44 }
 0x676   : > { %v2138_v22 = vclamps-f32 %v1505_v34, 1.0  ;;  %v2396_v34 = vld [vmem:[%s3200_s16] ss:$0 sm:$0xff] }
 0x677   : > { %v2139_v45 = vclamps-f32 %v1545_v56, 1.0 }
 0x678   : > { %v1550_v42 = vadd.f32 1.0, %v2138_v22 }
 0x679   : > { %v1551_v62 = vadd.f32 1.0, %v2139_v45 }
 0x67a   : > { %v1554_v53 = vmul.f32 %v1550_v42, %v1382_v24 }
 0x67b   : > { %v1555_v3 = vmul.f32 %v1551_v62, %v1383_v0 }
 0x67c   : > { %v1556_v55 = vpack.c.bf16 %v1554_v53, %v1552_v50 }
 0x67d   : > { %v1557_v2 = vpack.c.bf16 %v1555_v3, %v1553_v1 }
 0x67e   : > { %1698 = vmatmul.bf16.vlgmr.msra.gmra.mxu0 %v1556_v55 }
 0x67f   : > { %1712 = vmatmul.bf16.vlgmr.msra.gmra.mxu1 %v1557_v2 }
 0x6fb   : > { %v1699_v4 = vpop.f32.mrf.mxu0 }
 0x6fc   : > { %v1700_v5 = vadd.f32 %v2395_v58, %v1699_v4  ;;  %v1713_v6 = vpop.f32.mrf.mxu1 }
 0x6fe   : > { %v1714_v7 = vadd.f32 %v1713_v6, %v1700_v5 }
 0x700   : > { %v1718_v8 = vadd.f32 %v1714_v7, %v3010_v39 }
 0x702   : > { %1722 = vadd.xlane.f32.xlu1 %v1718_v8 }
 0x703   : > { %v1701_v11 = vpop.f32.mrf.mxu0 }
 0x704   : > { %v1702_v46 = vadd.f32 %v2395_v58, %v1701_v11  ;;  %v1715_v9 = vpop.f32.mrf.mxu1 }
 0x706   : > { %v1716_v59 = vadd.f32 %v1715_v9, %v1702_v46 }
 0x708   : > { %v1719_v10 = vadd.f32 %v1716_v59, %v3012_v40 }
 0x70a   : > { %1724 = vadd.xlane.f32.xlu2 %v1719_v10 }
 0x775   : > { %v1723_v47 = vpop.xlane.xlu1 %1722 }
 0x776   : > { %v1726_v12 = vmul.f32 %v1723_v47, %v2988_v17 }
 0x778   : > { %v1728_v13 = vsub.f32 %v1718_v8, %v1726_v12 }
 0x77a   : > { %v1730_v52 = vmul.f32 %v1728_v13, %v1728_v13 }
 0x77c   : > { %1732 = vadd.xlane.f32.xlu1 %v1730_v52 }
 0x77d   : > { %v1725_v14 = vpop.xlane.xlu2 %1724 }
 0x77e   : > { %v1727_v15 = vmul.f32 %v1725_v14, %v2988_v17 }
 0x780   : > { %v1729_v18 = vsub.f32 %v1719_v10, %v1727_v15 }
 0x782   : > { %v1731_v19 = vmul.f32 %v1729_v18, %v1729_v18 }
 0x784   : > { %1734 = vadd.xlane.f32.xlu2 %v1731_v19 }
 0x7ef   : > { %v1733_v39 = vpop.xlane.xlu1 %1732 }
 0x7f0   : > { %v1736_v20 = vmul.f32 %v1733_v39, %v2988_v17 }
 0x7f2   : > { %v1738_v23 = vadd.f32 1e-12, %v1736_v20 }
 0x7f4   : > { %2428 = vrsqrt.f32 %v1738_v23  ;;  %vm1746_vm10 = vweird.f32 %v1738_v23 }
 0x7f7   : > { %v1735_v40 = vpop.xlane.xlu2 %1734 }
 0x7f8   : > { %v1737_v61 = vmul.f32 %v1735_v40, %v2988_v17 }
 0x7fa   : > { %v2429_v21 = vpop.eup %2428  ;;  %v1739_v26 = vadd.f32 1e-12, %v1737_v61 }
 0x7fb   : > { %v1741_v27 = vmul.f32 %v2429_v21, %v1738_v23  ;;  %vm1747_vm9 = vweird.f32 %v2429_v21 }
 0x7fc   : > { %2430 = vrsqrt.f32 %v1739_v26  ;;  %vm1748_vm11 = vmor %vm1746_vm10, %vm1747_vm9  ;;  %vm1756_vm13 = vweird.f32 %v1739_v26 }
 0x7fd   : > { %v1742_v28 = vmul.f32 %v2429_v21, %v1741_v27 }
 0x7ff   : > { %v1743_v29 = vmul.f32 0.5, %v1742_v28 }
 0x801   : > { %v1744_v30 = vsub.f32 1.5, %v1743_v29 }
 0x802   : > { %v2431_v31 = vpop.eup %2430 }
 0x803   : > { %v1745_v32 = vmul.f32 %v2429_v21, %v1744_v30  ;;  %v1751_v25 = vmul.f32 %v2431_v31, %v1739_v26  ;;  %vm1757_vm12 = vweird.f32 %v2431_v31 }
 0x804   : > { %vm1758_vm14 = vmor %vm1756_vm13, %vm1757_vm12 }
 0x805   : > { %v1749_v17 = vsel %vm1748_vm11, %v2429_v21, %v1745_v32  ;;  %v1752_v35 = vmul.f32 %v2431_v31, %v1751_v25 }
 0x806   : > { %v1760_v33 = vmul.f32 %v1749_v17, %v1728_v13 }
 0x807   : > { %v1753_v37 = vmul.f32 0.5, %v1752_v35 }
 0x808   : > { %v1765_v63 = vmul.f32 %v2396_v34, %v1760_v33 }
 0x809   : > { %v1754_v38 = vsub.f32 1.5, %v1753_v37 }
 0x80a   : > { %v1770_v22 = vadd.f32 %v2397_v36, %v1765_v63 }
 0x80b   : > { %v1755_v41 = vmul.f32 %v2431_v31, %v1754_v38 }
 0x80c   : > { %1772 = vst [vmem:[%s679_s2] sm:$0xff] %v1770_v22 }
 0x80d   : > { %v1759_v16 = vsel %vm1758_vm14, %v2431_v31, %v1755_v41 }
 0x80e   : > { %v1761_v24 = vmul.f32 %v1759_v16, %v1729_v18 }
 0x810   : > { %v1766_v42 = vmul.f32 %v2396_v34, %v1761_v24 }
 0x812   : > { %v1771_v43 = vadd.f32 %v2397_v36, %v1766_v42 }
 0x814   : > { %1773 = vst [vmem:[%s679_s2 + $0x8] sm:$0xff] %v1771_v43 }
 0x815   : > { %2639 = shalt.err (!%p2636_p8)
}
 0x816   : > { %s2704_s23 = smov 128   ;;  %s2705_s8 = smov 8  }
 0x817   : > { %2299 = dma.vmem_to_hbm [thread:$0]  (%p2839_p5), %s1788_s21, 256, %s1790_s30, %s1775_s0, %s2704_s23, %s2704_s23, %s2705_s8  }
 0x818 PF: > { %s3242_s19 = sld [smem:[#allocation21_spill]] }
 0x819   : > { %s3243_s17 = sld [smem:[#allocation19_spill]] }
 0x81e   : > { %p2336_p9 = scmp.ge.s32.totalorder %s3242_s19, 2 }
 0x81f   : > { %s1804_s29 = sand.u32 1, %s3243_s17  }
 0x820   : > { %p2321_p10 = pnand %p2336_p9, %p2843_p6  ;;  %s1805_s24 = scalar_lea.sflag [#allocation4], %s1804_s29 }
 0x822   : > { %p2322_p11 = pneg %p2321_p10 }
 0x824   : > { %2673 = dma.done.wait (%p2322_p11), %s1805_s24, 256  }
 0x825   : > { %2675 = vsyncadd (%p2322_p11), %s1805_s24, 4294967040  ;;  %s3245_s30 = sld [smem:[#allocation22_spill]]  ;;  %s3248_s27 = smov %s2682_s28 }
 0x826   : > { %s3246_s4 = sld [smem:[#allocation20_spill]] }
 0x827   : > { %s3247_s29 = sld [smem:[#allocation23_spill]] }
 0x82b   : > { %p32_p12 = scmp.ge.s32.totalorder %s3245_s30, 4  }
 0x82c   : > { %s3249_s28 = smov %s3246_s4 }
 0x82d   :  { %34 = sbr.rel (!%p32_p12) target bundleno = 15 (0xf), region = 155 }
 0x832   :  { %1811 = vsyncpa [#allocation3], 1 }
 0x833   :  { %1813 = vsyncpa [#allocation3 + $0x1], 1 }
 0x834   :  { %1814 = vsyncpa [#allocation6], 1 }
 0x835   :  { %1815 = vsyncpa [#allocation9], 1 }
 0x836   :  { %1816 = vsyncpa [#allocation12], 1 }
 0x837   :  { %1817 = vsyncpa [#allocation4], 1 }
 0x838   :  { %1819 = vsyncpa [#allocation4 + $0x1], 1 }

// kernel: behrt_forward.4
= control target key start
LH: loop header
LB: loop body
LE: loop exit
PB: predicated region body
PF: predicated region fallthrough
CT: control target
= control target key end

     0   :  { %s3005_s0 = inlined_call_operand.vmem [shape: f32[2,16,128], index: 0, kind: input, shape index: {}]   ;;  %s3006_s1 = inlined_call_operand.vmem [shape: f32[2,1,16], index: 1, kind: input, shape index: {}]   ;;  %s3007_s2 = inlined_call_operand.hbm [shape: bf16[128,128], index: 2, kind: input, shape index: {}]   ;;  %s3008_s3 = inlined_call_operand.vmem [shape: f32[1,128], index: 3, kind: input, shape index: {}]   ;;  %s3009_s4 = inlined_call_operand.hbm [shape: bf16[128,128], index: 4, kind: input, shape index: {}]   ;;  %s3010_s5 = inlined_call_operand.vmem [shape: f32[1,128], index: 5, kind: input, shape index: {}]   ;;  %s3011_s6 = inlined_call_operand.hbm [shape: bf16[128,128], index: 6, kind: input, shape index: {}]   ;;  %s3012_s7 = inlined_call_operand.vmem [shape: f32[1,128], index: 7, kind: input, shape index: {}]   ;;  %s3013_s8 = inlined_call_operand.hbm [shape: bf16[128,128], index: 8, kind: input, shape index: {}]   ;;  %s3014_s9 = inlined_call_operand.vmem [shape: f32[1,128], index: 9, kind: input, shape index: {}]   ;;  %s3015_s10 = inlined_call_operand.vmem [shape: f32[1,128], index: 10, kind: input, shape index: {}]   ;;  %s3016_s11 = inlined_call_operand.vmem [shape: f32[1,128], index: 11, kind: input, shape index: {}]   ;;  %s3017_s12 = inlined_call_operand.vmem [shape: bf16[128,256], index: 12, kind: input, shape index: {}]   ;;  %s3018_s13 = inlined_call_operand.vmem [shape: f32[1,256], index: 13, kind: input, shape index: {}]   ;;  %s3019_s14 = inlined_call_operand.hbm [shape: bf16[256,128], index: 14, kind: input, shape index: {}]   ;;  %s3020_s15 = inlined_call_operand.vmem [shape: f32[1,128], index: 15, kind: input, shape index: {}]   ;;  %s3021_s16 = inlined_call_operand.vmem [shape: f32[1,128], index: 16, kind: input, shape index: {}]   ;;  %s3022_s17 = inlined_call_operand.vmem [shape: f32[1,128], index: 17, kind: input, shape index: {}]   ;;  %s3023_s18 = inlined_call_operand.vmem [shape: f32[2,16,128], index: 18, kind: output, shape index: {}]  }
   0x1   :  { %3026 = sst [smem:[#allocation14_spill]] %s3005_s0 }
   0x2   :  { %3027 = sst [smem:[#allocation15_spill]] %s3006_s1 }
   0x3   :  { %3028 = sst [smem:[#allocation16_spill]] %s3007_s2 }
   0x4   :  { %3029 = sst [smem:[#allocation17_spill]] %s3009_s4 }
   0x5   :  { %3030 = sst [smem:[#allocation18_spill]] %s3013_s8 }
   0x6   :  { %3031 = sst [smem:[#allocation19_spill]] %s3022_s17 }
   0x7   :  { %3032 = sst [smem:[#allocation20_spill]] %s3023_s18 }
   0x8   :  { %23 = vsyncpa [#allocation3], 0 }
   0x9   :  { %24 = vsyncpa [#allocation5], 0 }
   0xa   :  { %25 = vsyncpa [#allocation8], 0  ;;  %s2610_s27 = smov 0  }
   0xb LB: > { %3033 = sst [smem:[#allocation13_spill]] %s2504_s27  ;;  %s2616_s28 = sadd.s32 4294967295, %s2504_s27   ;;  %s2504_s27 = sphi %s2610_s27, %s31_s27  }
   0xc   : > { %p1875_p0 = scmp.ge.s32.totalorder %s2504_s27, 1  ;;  %p450_p1 = scmp.lt.s32.totalorder %s2504_s27, 3 }
   0xd   : > { %p2260_p2 = scmp.eq.s32.totalorder %s2616_s28, 0  ;;  %s3034_s4 = sld [smem:[#allocation17_spill]] }
   0xe   : > { %p2624_p3 = pnand %p1875_p0, %p450_p1  ;;  %s3036_s8 = sld [smem:[#allocation18_spill]] }
   0xf   : > { %s2506_s22 = smov [#allocation4]   ;;  %s2507_s24 = smov [#allocation7]  }
  0x10   : > { %p2244_p4 = pneg %p2624_p3  ;;  %s480_s2 = sshll.u32 %s2506_s22, 4  ;;  %s481_s2 = int_to_ptr.vmem [resolvable:$true] %s480_s2 }
  0x11   : > { %s514_s25 = sshll.u32 %s2507_s24, 4  ;;  %s3038_s30 = sld [smem:[#allocation16_spill]]  ;;  %s515_s25 = int_to_ptr.vmem [resolvable:$true] %s514_s25 }
  0x12   : > { %p2635_p5 = pnand %p2260_p2, %p2244_p4  ;;  %s2508_s20 = smov 64  }
  0x13   : > { %s478_s0 = sshll.u32 %s3034_s4, 4  ;;  %s2509_s22 = smov 4   ;;  %s479_s0 = int_to_ptr.hbm [resolvable:$true] %s478_s0 }
  0x14   : > { %s512_s21 = sshll.u32 %s3036_s8, 4  ;;  %s2510_s4 = smov [#allocation2]   ;;  %s513_s21 = int_to_ptr.hbm [resolvable:$true] %s512_s21 }
  0x15   : > { %2250 = dma.hbm_to_vmem [thread:$0]  (!%p2635_p5), %s479_s0, 1024, %s481_s2, [#allocation5], %s2508_s20, %s2508_s20, %s2509_s22  }
  0x16   : > { %2256 = dma.hbm_to_vmem [thread:$0]  (!%p2635_p5), %s513_s21, 1024, %s515_s25, [#allocation8], %s2508_s20, %s2508_s20, %s2509_s22  }
  0x17   : > { %s461_s1 = sshll.u32 %s3038_s30, 4  ;;  %s463_s8 = sshll.u32 %s2510_s4, 4  ;;  %s462_s1 = int_to_ptr.hbm [resolvable:$true] %s461_s1  ;;  %s464_s8 = int_to_ptr.vmem [resolvable:$true] %s463_s8 }
  0x18   : > { %s495_s24 = sshll.u32 %s3011_s6, 4  ;;  %s541_s30 = sshll.u32 %s3019_s14, 4  ;;  %s496_s24 = int_to_ptr.hbm [resolvable:$true] %s495_s24  ;;  %s542_s30 = int_to_ptr.hbm [resolvable:$true] %s541_s30 }
  0x19   : > { %2247 = dma.hbm_to_vmem [thread:$0]  (!%p2635_p5), %s462_s1, 1024, %s464_s8, [#allocation3], %s2508_s20, %s2508_s20, %s2509_s22  }
  0x1a   : > { %s2511_s17 = smov [#allocation6]   ;;  %s2512_s21 = smov [#allocation9]  }
  0x1b   : > { %s497_s0 = sshll.u32 %s2511_s17, 4  ;;  %s543_s4 = sshll.u32 %s2512_s21, 4  ;;  %s498_s0 = int_to_ptr.vmem [resolvable:$true] %s497_s0  ;;  %s544_s4 = int_to_ptr.vmem [resolvable:$true] %s543_s4 }
  0x1c   : > { %2253 = dma.hbm_to_vmem [thread:$0]  (!%p2635_p5), %s496_s24, 1024, %s498_s0, [#allocation5], %s2508_s20, %s2508_s20, %s2509_s22  }
  0x1d   : > { %2259 = dma.hbm_to_vmem [thread:$0]  (!%p2635_p5), %s542_s30, 2048, %s544_s4, [#allocation8], %s2508_s20, %s2508_s20, %s2509_s22  }
  0x1e   : > { %582 = sbr.rel (%p2624_p3) target bundleno = 2050 (0x802), region = 92 }
  0x23   : > { %2491 = dma.done.wait (%p2260_p2), [#allocation3], 1024  }
  0x24   : > { %2493 = vsyncadd (%p2260_p2), [#allocation3], 4294966272 }
  0x25   : > { %2495 = dma.done.wait (%p2260_p2), [#allocation5], 2048  }
  0x26   : > { %2497 = vsyncadd (%p2260_p2), [#allocation5], 4294965248 }
  0x27   : > { %2499 = dma.done.wait (%p2260_p2), [#allocation8], 3072  }
  0x28   : > { %2501 = vsyncadd (%p2260_p2), [#allocation8], 4294964224  ;;  %v2167_v0 = vld [vmem:[#allocation2 + $0x38] sm:$0xff]  ;;  %v2166_v2 = vld [vmem:[#allocation2 + $0x30] sm:$0xff]  ;;  %p660_p6 = scmp.lt.s32.totalorder %s2616_s28, 1  ;;  %s3039_s27 = sld [smem:[#allocation14_spill]] }
  0x29   : > { %v2175_v1 = vld [vmem:[#allocation4 + $0x38] sm:$0xff]  ;;  %745 = vmatpush.bf16.msra.mxu0 %v2167_v0  ;;  %v2174_v3 = vld [vmem:[#allocation4 + $0x30] sm:$0xff]  ;;  %v2165_v4 = vld [vmem:[#allocation2 + $0x28] sm:$0xff]  ;;  %s3040_s24 = sld [smem:[#allocation15_spill]]  ;;  %vm945_vm0 = vcmask 523264   ;;  %s2513_s29 = smov 64  }
  0x2a   : > { %829 = vmatpush.bf16.msra.mxu1 %v2175_v1  ;;  %v2173_v5 = vld [vmem:[#allocation4 + $0x28] sm:$0xff]  ;;  %v2183_v6 = vld [vmem:[#allocation6 + $0x38] sm:$0xff]  ;;  %v2164_v7 = vld [vmem:[#allocation2 + $0x20] sm:$0xff]  ;;  %s3047_s28 = smov (!%p660_p6, %s2616_s28), 1  ;;  %vm966_vm1 = vcmask 130048   ;;  %s3043_s21 = sld [smem:[#allocation19_spill]] }
  0x2b   : > { %911 = vmatpush.bf16.msra.mxu2 %v2183_v6  ;;  %v2182_v8 = vld [vmem:[#allocation6 + $0x30] sm:$0xff]  ;;  %v2172_v9 = vld [vmem:[#allocation4 + $0x20] sm:$0xff]  ;;  %v2181_v10 = vld [vmem:[#allocation6 + $0x28] sm:$0xff]  ;;  %s2158_s8 = sshll.u32 %s3047_s28, 4  ;;  %s3044_s18 = sld [smem:[#allocation20_spill]] }
  0x2c   : > { %v2163_v11 = vld [vmem:[#allocation2 + $0x18] sm:$0xff]  ;;  %v2180_v13 = vld [vmem:[#allocation6 + $0x20] sm:$0xff]  ;;  %v2162_v14 = vld [vmem:[#allocation2 + $0x10] sm:$0xff] }
  0x2d   : > { %746 = vmatpush.bf16.msra.mxu0 %v2166_v2  ;;  %v2171_v12 = vld [vmem:[#allocation4 + $0x18] sm:$0xff]  ;;  %v2170_v15 = vld [vmem:[#allocation4 + $0x10] sm:$0xff]  ;;  %v2161_v17 = vld [vmem:[#allocation2 + $0x8] sm:$0xff] }
  0x2e   : > { %830 = vmatpush.bf16.msra.mxu1 %v2174_v3  ;;  %v2179_v16 = vld [vmem:[#allocation6 + $0x18] sm:$0xff]  ;;  %v2169_v18 = vld [vmem:[#allocation4 + $0x8] sm:$0xff]  ;;  %s664_s19 = scalar_lea.vmem %s3039_s27, %s2158_s8  ;;  %v2178_v19 = vld [vmem:[#allocation6 + $0x10] sm:$0xff] }
  0x2f   : > { %912 = vmatpush.bf16.msra.mxu2 %v2182_v8  ;;  %v2160_v20 = vld [vmem:[#allocation2] sm:$0xff]  ;;  %v2684_v23 = vld [vmem:[%s664_s19 + $0x8] sm:$0xff]  ;;  %s667_s26 = scalar_lea.vmem %s3040_s24, %s3047_s28 }
  0x30   : > { %v2168_v21 = vld [vmem:[#allocation4] sm:$0xff]  ;;  %v2177_v24 = vld [vmem:[#allocation6 + $0x8] sm:$0xff] }
  0x31   : > { %747 = vmatpush.bf16.msra.mxu0 %v2165_v4  ;;  %v2682_v22 = vld [vmem:[%s664_s19] sm:$0xff]  ;;  %s672_s27 = scalar_lea.vmem %s3044_s18, %s2158_s8 }
  0x32   : > { %831 = vmatpush.bf16.msra.mxu1 %v2173_v5  ;;  %v676_v25 = vpack.c.bf16 %v2684_v23, %v2682_v22  ;;  %v2176_v26 = vld [vmem:[#allocation6] sm:$0xff] }
  0x33   : > { %913 = vmatpush.bf16.msra.mxu2 %v2181_v10  ;;  %v2293_v29 = vld [vmem:[%s3010_s5] ss:$0 sm:$0xff] }
  0x34   : > { %v2292_v30 = vld [vmem:[%s3008_s3] ss:$0 sm:$0xff] }
  0x35   : > { %748 = vmatpush.bf16.msra.mxu0 %v2164_v7  ;;  %v2294_v51 = vld [vmem:[%s3012_s7] ss:$0 sm:$0xff] }
  0x36   : > { %832 = vmatpush.bf16.msra.mxu1 %v2172_v9  ;;  %v2295_v62 = vld [vmem:[%s667_s26] ss:$0 sm:$0xff] }
  0x37   : > { %914 = vmatpush.bf16.msra.mxu2 %v2180_v13 }
  0x39   : > { %749 = vmatpush.bf16.msra.mxu0 %v2163_v11 }
  0x3a   : > { %833 = vmatpush.bf16.msra.mxu1 %v2171_v12 }
  0x3b   : > { %915 = vmatpush.bf16.msra.mxu2 %v2179_v16 }
  0x3d   : > { %750 = vmatpush.bf16.msra.mxu0 %v2162_v14 }
  0x3e   : > { %834 = vmatpush.bf16.msra.mxu1 %v2170_v15 }
  0x3f   : > { %916 = vmatpush.bf16.msra.mxu2 %v2178_v19 }
  0x41   : > { %751 = vmatpush.bf16.msra.mxu0 %v2161_v17 }
  0x42   : > { %835 = vmatpush.bf16.msra.mxu1 %v2169_v18 }
  0x43   : > { %917 = vmatpush.bf16.msra.mxu2 %v2177_v24 }
  0x45   : > { %752 = vmatpush.bf16.msra.mxu0 %v2160_v20 }
  0x46   : > { %836 = vmatpush.bf16.msra.mxu1 %v2168_v21 }
  0x47   : > { %918 = vmatpush.bf16.msra.mxu2 %v2176_v26 }
  0x48   : > { %753 = vmatmul.bf16.vlgmr.msra.gmra.mxu0 %v676_v25 }
  0x49   : > { %837 = vmatmul.bf16.vlgmr.msra.gmra.mxu1 %v676_v25 }
  0x4a   : > { %919 = vmatmul.bf16.vlgmr.msra.gmra.mxu2 %v676_v25 }
  0xc5   : > { %v754_v27 = vpop.f32.mrf.mxu0 }
  0xc6   : > { %v838_v28 = vpop.f32.mrf.mxu1  ;;  %v755_v34 = vadd.f32 %v2292_v30, %v754_v27 }
  0xc7   : > { %v839_v31 = vadd.f32 %v2293_v29, %v838_v28 }
  0xc8   : > { %v759_v40 = vmul.f32 0.125, %v755_v34 }
  0xc9   : > { %v927_v35 = vpack.c.bf16 %v839_v31, %v839_v31 }
  0xca   : > { %v925_v45 = vpack.c.bf16 %v759_v40, %v759_v40  ;;  %v2190_v40 = vld [vmem:[#allocation7 + $0x30] sm:$0xff] }
  0xcb   : > { %v942_v41 = vunpack.c.l.b16 %v927_v35 }
  0xcc   : > { %v937_v48 = vunpack.c.l.b16 %v925_v45 }
  0xcd   : > { %v756_v32 = vpop.f32.mrf.mxu0  ;;  %v920_v50 = vpop.f32.mrf.mxu2 }
  0xce   : > { %v840_v33 = vpop.f32.mrf.mxu1  ;;  %v757_v36 = vadd.f32 %v2292_v30, %v756_v32  ;;  %v921_v53 = vadd.f32 %v2294_v51, %v920_v50 }
  0xcf   : > { %v841_v37 = vadd.f32 %v2293_v29, %v840_v33 }
  0xd0   : > { %v760_v38 = vmul.f32 0.125, %v757_v36  ;;  %v929_v55 = vpack.c.bf16 %v921_v53, %v921_v53 }
  0xd1   : > { %v928_v39 = vpack.c.bf16 %v841_v37, %v841_v37 }
  0xd2   : > { %v926_v43 = vpack.c.bf16 %v760_v38, %v760_v38  ;;  %v988_v57 = vunpack.c.l.b16 %v929_v55  ;;  %v2184_v55 = vld [vmem:[#allocation7] sm:$0xff] }
  0xd3   : > { %v943_v42 = vunpack.c.l.b16 %v928_v39  ;;  %v2191_v39 = vld [vmem:[#allocation7 + $0x38] sm:$0xff] }
  0xd4   : > { %v938_v47 = vunpack.c.l.b16 %v926_v43  ;;  %1159 = vmatpush.bf16.msrb.mxu1 %v2191_v39  ;;  %v2187_v43 = vld [vmem:[#allocation7 + $0x18] sm:$0xff] }
  0xd5   : > { %v944_v44 = vpack.c.b16 %v943_v42, %v942_v41  ;;  %v922_v52 = vpop.f32.mrf.mxu2  ;;  %v2189_v41 = vld [vmem:[#allocation7 + $0x28] sm:$0xff]  ;;  %v2188_v42 = vld [vmem:[#allocation7 + $0x20] sm:$0xff]  ;;  %v2203_v39 = vld [vmem:[%s3017_s12 + $0x54] sm:$0xf0] }
  0xd6   : > { %v939_v49 = vpack.c.b16 %v938_v47, %v937_v48  ;;  %v923_v54 = vadd.f32 %v2294_v51, %v922_v52  ;;  %v2185_v48 = vld [vmem:[#allocation7 + $0x8] sm:$0xff] }
  0xd7   : > { %1015 = vrot.lane.b32.xlu1 %v944_v44, %s2513_s29  ;;  %v950_v46 = vsel %vm945_vm0, %v944_v44, 0 }
  0xd8   : > { %959 = vmatpush.bf16.xpose.msra.mxu3 %v950_v46  ;;  %v930_v56 = vpack.c.bf16 %v923_v54, %v923_v54  ;;  %1160 = vmatpush.bf16.msrb.mxu1 %v2190_v40  ;;  %v2186_v46 = vld [vmem:[#allocation7 + $0x10] sm:$0xff] }
  0xd9   : > { %v2202_v40 = vld [vmem:[%s3017_s12 + $0x54] sm:$0xf] }
  0xda   : > { %v989_v58 = vunpack.c.l.b16 %v930_v56 }
  0xdc   : > { %v990_v59 = vpack.c.b16 %v989_v58, %v988_v57  ;;  %1161 = vmatpush.bf16.msrb.mxu1 %v2189_v41 }
  0xdf   : > { %1013 = vrot.lane.b32.xlu1 %v939_v49, %s2513_s29  ;;  %1988 = vmatmul.msk.bf16.vlgmr.msra.gmra.mxu3 %vm945_vm0, %v939_v49 }
  0xe0   : > { %1002 = vmatpush.bf16.msrb.mxu3 %v990_v59  ;;  %1162 = vmatpush.bf16.msrb.mxu1 %v2188_v42  ;;  %v2068_v42 = vld [vmem:[%s3017_s12 + $0x58] sm:$0xf0] }
  0xe4   : > { %1163 = vmatpush.bf16.msrb.mxu1 %v2187_v43  ;;  %v2071_v43 = vor.u32 %v2202_v40, %v2068_v42 }
  0xe8   : > { %1164 = vmatpush.bf16.msrb.mxu1 %v2186_v46  ;;  %v2200_v46 = vld [vmem:[%s3017_s12 + $0x44] sm:$0xf] }
  0xec   : > { %1165 = vmatpush.bf16.msrb.mxu1 %v2185_v48  ;;  %v2060_v48 = vld [vmem:[%s3017_s12 + $0x48] sm:$0xf0] }
  0xf0   : > { %1166 = vmatpush.bf16.msrb.mxu1 %v2184_v55 }
 0x149   : > { %v1016_v60 = vpop.permute.xlu1 %1015 }
 0x14a   : > { %v1021_v61 = vsel %vm945_vm0, %v1016_v60, 0 }
 0x14b   : > { %1030 = vmatpush.bf16.xpose.msra.mxu3 %v1021_v61 }
 0x151   : > { %v1014_v15 = vpop.permute.xlu1 %1013 }
 0x162   : > { %v961_v63 = vpop.f32.mrf.mxu3 }
 0x163   : > { %v962_v0 = vadd.f32 %v2295_v62, %v961_v63 }
 0x165   : > { %v967_v1 = vsel %vm966_vm1, %v962_v0, -inf }
 0x166   : > { %968 = vmax.xlane.f32.xlu0 %v967_v1 }
 0x16a   : > { %v963_v2 = vpop.f32.mrf.mxu3 }
 0x16b   : > { %v964_v3 = vadd.f32 %v2295_v62, %v963_v2 }
 0x16d   : > { %v970_v4 = vsel %vm966_vm1, %v964_v3, -inf }
 0x16e   : > { %971 = vmax.xlane.f32.xlu0 %v970_v4  ;;  %v2296_v4 = vld [vmem:[%s3014_s9] ss:$0 sm:$0xff] }
 0x182   : > { %1056 = vrot.lane.b32.xlu0 %v990_v59, %s2513_s29 }
 0x1d9   : > { %v969_v5 = vpop.xlane.xlu0 %968 }
 0x1da   : > { %v973_v6 = vsub.f32 %v962_v0, %v969_v5 }
 0x1dc   : > { %v975_v7 = vmul.f32 1.442695, %v973_v6 }
 0x1de   : > { %2302 = vpow2.f32 %v975_v7 }
 0x1e1   : > { %v972_v8 = vpop.xlane.xlu0 %971 }
 0x1e2   : > { %v974_v9 = vsub.f32 %v964_v3, %v972_v8 }
 0x1e4   : > { %v977_v10 = vmul.f32 1.442695, %v974_v9  ;;  %v2303_v11 = vpop.eup %2302 }
 0x1e5   : > { %v979_v37 = vsel %vm966_vm1, %v2303_v11, 0.0 }
 0x1e6   : > { %2304 = vpow2.f32 %v977_v10 }
 0x1ec   : > { %v2305_v12 = vpop.eup %2304 }
 0x1ed   : > { %v985_v13 = vpack.c.bf16 %v2305_v12, %v2303_v11  ;;  %v982_v38 = vsel %vm966_vm1, %v2305_v12, 0.0  ;;  %v2514_v11 = vmov 128.0  }
 0x1ef   : > { %1989 = vmatmul.msk.bf16.vlgmr.msrb.gmra.mxu3 %vm966_vm1, %v985_v13 }
 0x1f4   : > { %v1057_v14 = vpop.permute.xlu0 %1056 }
 0x1f5   : > { %1069 = vmatpush.bf16.msrb.mxu0 %v1057_v14 }
 0x1ff   : > { %1990 = vmatmul.msk.bf16.vlgmr.msra.gmra.mxu3 %vm945_vm0, %v1014_v15 }
 0x272   : > { %v2716_v16 = vpop.f32.mrf.mxu3 }
 0x27a   : > { %v2718_v17 = vpop.f32.mrf.mxu3 }
 0x282   : > { %v1032_v18 = vpop.f32.mrf.mxu3 }
 0x283   : > { %v1033_v19 = vadd.f32 %v2295_v62, %v1032_v18 }
 0x285   : > { %v1037_v20 = vsel %vm966_vm1, %v1033_v19, -inf }
 0x286   : > { %1038 = vmax.xlane.f32.xlu2 %v1037_v20 }
 0x28a   : > { %v1034_v21 = vpop.f32.mrf.mxu3 }
 0x28b   : > { %v1035_v24 = vadd.f32 %v2295_v62, %v1034_v21 }
 0x28d   : > { %v1040_v25 = vsel %vm966_vm1, %v1035_v24, -inf }
 0x28e   : > { %1041 = vmax.xlane.f32.xlu2 %v1040_v25 }
 0x2f9   : > { %v1039_v26 = vpop.xlane.xlu2 %1038 }
 0x2fa   : > { %v1043_v27 = vsub.f32 %v1033_v19, %v1039_v26  ;;  %v2082_v26 = vld [vmem:[%s3017_s12 + $0x70] sm:$0xf] }
 0x2fc   : > { %v1045_v28 = vmul.f32 1.442695, %v1043_v27  ;;  %v2207_v27 = vld [vmem:[%s3017_s12 + $0x74] sm:$0xf0] }
 0x2fe   : > { %2306 = vpow2.f32 %v1045_v28  ;;  %v2206_v28 = vld [vmem:[%s3017_s12 + $0x74] sm:$0xf] }
 0x301   : > { %v1042_v29 = vpop.xlane.xlu2 %1041 }
 0x302   : > { %v1044_v30 = vsub.f32 %v1035_v24, %v1042_v29  ;;  %v2083_v29 = vor.u32 %v2207_v27, %v2082_v26 }
 0x304   : > { %v2307_v31 = vpop.eup %2306  ;;  %v1047_v32 = vmul.f32 1.442695, %v1044_v30  ;;  %v2084_v30 = vld [vmem:[%s3017_s12 + $0x78] sm:$0xf0]  ;;  %1337 = vmatpush.bf16.msrb.mxu2 %v2083_v29 }
 0x305   : > { %v1049_v33 = vsel %vm966_vm1, %v2307_v31, 0.0 }
 0x306   : > { %2308 = vpow2.f32 %v1047_v32  ;;  %1050 = vadd.xlane.f32.xlu1 %v1049_v33  ;;  %v2074_v32 = vld [vmem:[%s3017_s12 + $0x60] sm:$0xf]  ;;  %v2205_v33 = vld [vmem:[%s3017_s12 + $0x64] sm:$0xf0] }
 0x30c   : > { %v2309_v34 = vpop.eup %2308 }
 0x30d   : > { %v1052_v35 = vsel %vm966_vm1, %v2309_v34, 0.0  ;;  %v1055_v36 = vpack.c.bf16 %v2309_v34, %v2307_v31  ;;  %v2087_v31 = vor.u32 %v2206_v28, %v2084_v30  ;;  %v2204_v34 = vld [vmem:[%s3017_s12 + $0x64] sm:$0xf] }
 0x30e   : > { %1053 = vadd.xlane.f32.xlu2 %v1052_v35  ;;  %v2075_v35 = vor.u32 %v2205_v33, %v2074_v32  ;;  %v2297_v32 = vld [vmem:[%s3015_s10] ss:$0 sm:$0xff] }
 0x30f   : > { %1991 = vmatmul.msk.bf16.vlgmr.msrb.gmra.mxu0 %vm966_vm1, %v1055_v36  ;;  %1351 = vmatpush.bf16.msrb.mxu3 %v2087_v31  ;;  %v2076_v36 = vld [vmem:[%s3017_s12 + $0x68] sm:$0xf0] }
 0x310   : > { %1338 = vmatpush.bf16.msrb.mxu2 %v2075_v35 }
 0x316   : > { %980 = vadd.xlane.f32.xlu2 %v979_v37  ;;  %v2079_v37 = vor.u32 %v2204_v34, %v2076_v36 }
 0x318   : > { %1352 = vmatpush.bf16.msrb.mxu3 %v2079_v37  ;;  %v2298_v37 = vld [vmem:[%s3016_s11] ss:$0 sm:$0xff] }
 0x31c   : > { %1353 = vmatpush.bf16.msrb.mxu3 %v2071_v43 }
 0x31e   : > { %983 = vadd.xlane.f32.xlu2 %v982_v38  ;;  %v2066_v38 = vld [vmem:[%s3017_s12 + $0x50] sm:$0xf] }
 0x31f   : > { %v2067_v41 = vor.u32 %v2203_v39, %v2066_v38 }
 0x321   : > { %1339 = vmatpush.bf16.msrb.mxu2 %v2067_v41  ;;  %v1251_v41 = vld [vmem:[%s3018_s13] sm:$0x3] }
 0x322   : > { %v1254_v42 = vperm.slane %v1251_v41, 1 }
 0x379   : > { %v1051_v44 = vpop.xlane.xlu1 %1050 }
 0x37a   : > { %2310 = vrcp.f32 %v1051_v44  ;;  %v2058_v44 = vld [vmem:[%s3017_s12 + $0x40] sm:$0xf] }
 0x380   : > { %v2311_v49 = vpop.eup %2310 }
 0x381   : > { %v1054_v45 = vpop.xlane.xlu2 %1053 }
 0x382   : > { %2312 = vrcp.f32 %v1054_v45  ;;  %v2201_v45 = vld [vmem:[%s3017_s12 + $0x44] sm:$0xf0] }
 0x388   : > { %v2313_v50 = vpop.eup %2312 }
 0x389   : > { %v981_v56 = vpop.xlane.xlu2 %980 }
 0x38a   : > { %2314 = vrcp.f32 %v981_v56  ;;  %v2042_v56 = vld [vmem:[%s3017_s12 + $0x20] sm:$0xf] }
 0x38c   : > { %v1071_v47 = vpop.f32.mrf.mxu0 }
 0x38d   : > { %v1078_v52 = vmul.f32 %v2311_v49, %v1071_v47  ;;  %v2059_v47 = vor.u32 %v2201_v45, %v2058_v44  ;;  %v2063_v49 = vor.u32 %v2200_v46, %v2060_v48 }
 0x38f   : > { %1340 = vmatpush.bf16.msrb.mxu2 %v2059_v47  ;;  %1354 = vmatpush.bf16.msrb.mxu3 %v2063_v49 }
 0x390   : > { %v2315_v58 = vpop.eup %2314 }
 0x391   : > { %v984_v57 = vpop.xlane.xlu2 %983  ;;  %v1011_v61 = vmul.f32 %v2315_v58, %v2716_v16  ;;  %v2196_v58 = vld [vmem:[%s3017_s12 + $0x24] sm:$0xf] }
 0x392   : > { %2316 = vrcp.f32 %v984_v57  ;;  %v2197_v57 = vld [vmem:[%s3017_s12 + $0x24] sm:$0xf0] }
 0x393   : > { %2318 = vrcp.f32 %v2514_v11 }
 0x394   : > { %v1073_v51 = vpop.f32.mrf.mxu0 }
 0x395   : > { %v1079_v53 = vmul.f32 %v2313_v50, %v1073_v51  ;;  %v2050_v50 = vld [vmem:[%s3017_s12 + $0x30] sm:$0xf]  ;;  %v2199_v51 = vld [vmem:[%s3017_s12 + $0x34] sm:$0xf0] }
 0x397   : > { %v2287_v54 = vpack.i.bf16 %v1079_v53, %v1078_v52  ;;  %v2198_v52 = vld [vmem:[%s3017_s12 + $0x34] sm:$0xf]  ;;  %v2051_v53 = vor.u32 %v2199_v51, %v2050_v50 }
 0x398   : > { %v2317_v59 = vpop.eup %2316 }
 0x399   : > { %2288 = vrot.lane.b32.xlu0 %v2287_v54, %s2513_s29  ;;  %v1012_v62 = vmul.f32 %v2317_v59, %v2718_v17  ;;  %v2319_v12 = vpop.eup %2318  ;;  %v2052_v54 = vld [vmem:[%s3017_s12 + $0x38] sm:$0xf0]  ;;  %1341 = vmatpush.bf16.msrb.mxu2 %v2051_v53  ;;  %v2043_v59 = vor.u32 %v2197_v57, %v2042_v56 }
 0x39a   : > { %v1182_v13 = vmul.f32 128.0, %v2319_v12  ;;  %vm1186_vm2 = vweird.f32 %v2319_v12  ;;  %v2055_v55 = vor.u32 %v2198_v52, %v2052_v54 }
 0x39c   : > { %v1183_v14 = vsub.f32 1.0, %v1182_v13  ;;  %1355 = vmatpush.bf16.msrb.mxu3 %v2055_v55 }
 0x39d   : > { %1342 = vmatpush.bf16.msrb.mxu2 %v2043_v59 }
 0x39e   : > { %v1184_v15 = vmul.f32 %v2319_v12, %v1183_v14 }
 0x3a0   : > { %v1185_v16 = vadd.f32 %v2319_v12, %v1184_v15 }
 0x3a2   : > { %v2737_v17 = vsel %vm1186_vm2, %v2319_v12, %v1185_v16 }
 0x40b   : > { %v2289_v60 = vpop.permute.xlu0 %2288 }
 0x40c   : > { %v2291_v63 = vunpack.i.h.bf16 %v2289_v60  ;;  %v2290_v0 = vunpack.i.l.bf16 %v2289_v60  ;;  %v2044_v60 = vld [vmem:[%s3017_s12 + $0x28] sm:$0xf0] }
 0x40e   : > { %v1088_v1 = vsel %vm945_vm0, %v1011_v61, %v2290_v0  ;;  %v1089_v2 = vsel %vm945_vm0, %v1012_v62, %v2291_v63  ;;  %v2047_v61 = vor.u32 %v2196_v58, %v2044_v60  ;;  %v2034_v62 = vld [vmem:[%s3017_s12 + $0x10] sm:$0xf]  ;;  %v2195_v63 = vld [vmem:[%s3017_s12 + $0x14] sm:$0xf0]  ;;  %v2194_v0 = vld [vmem:[%s3017_s12 + $0x14] sm:$0xf] }
 0x40f   : > { %v1090_v3 = vpack.c.bf16 %v1089_v2, %v1088_v1  ;;  %v2035_v1 = vor.u32 %v2195_v63, %v2034_v62  ;;  %v2036_v2 = vld [vmem:[%s3017_s12 + $0x18] sm:$0xf0] }
 0x410   : > { %1356 = vmatpush.bf16.msrb.mxu3 %v2047_v61 }
 0x411   : > { %1167 = vmatmul.bf16.vlgmr.msrb.gmra.mxu1 %v1090_v3  ;;  %v2039_v3 = vor.u32 %v2194_v0, %v2036_v2  ;;  %1343 = vmatpush.bf16.msrb.mxu2 %v2035_v1 }
 0x414   : > { %1357 = vmatpush.bf16.msrb.mxu3 %v2039_v3  ;;  %v2215_v3 = vld [vmem:[#allocation9 + $0x38] sm:$0xff] }
 0x415   : > { %1675 = vmatpush.bf16.msra.mxu0 %v2215_v3 }
 0x48e   : > { %v1168_v5 = vpop.f32.mrf.mxu1 }
 0x48f   : > { %v1169_v6 = vadd.f32 %v2296_v4, %v1168_v5  ;;  %v2193_v5 = vld [vmem:[%s3017_s12 + $0x4] sm:$0xf0] }
 0x491   : > { %v1173_v7 = vadd.f32 %v1169_v6, %v2682_v22  ;;  %v2192_v6 = vld [vmem:[%s3017_s12 + $0x4] sm:$0xf] }
 0x493   : > { %1177 = vadd.xlane.f32.xlu2 %v1173_v7 }
 0x496   : > { %v1170_v8 = vpop.f32.mrf.mxu1 }
 0x497   : > { %v1171_v9 = vadd.f32 %v2296_v4, %v1170_v8  ;;  %v2026_v4 = vld [vmem:[%s3017_s12] sm:$0xf] }
 0x498   : > { %v2027_v8 = vor.u32 %v2193_v5, %v2026_v4  ;;  %v2223_v4 = vld [vmem:[#allocation9 + $0x78] sm:$0xff] }
 0x499   : > { %v1174_v10 = vadd.f32 %v1171_v9, %v2684_v23  ;;  %v2028_v9 = vld [vmem:[%s3017_s12 + $0x8] sm:$0xf0]  ;;  %1689 = vmatpush.bf16.msra.mxu1 %v2223_v4 }
 0x49a   : > { %v2031_v11 = vor.u32 %v2192_v6, %v2028_v9  ;;  %1344 = vmatpush.bf16.msrb.mxu2 %v2027_v8 }
 0x49b   : > { %1179 = vadd.xlane.f32.xlu0 %v1174_v10 }
 0x49c   : > { %1358 = vmatpush.bf16.msrb.mxu3 %v2031_v11 }
 0x506   : > { %v1178_v18 = vpop.xlane.xlu2 %1177 }
 0x507   : > { %v1188_v19 = vmul.f32 %v2737_v17, %v1178_v18 }
 0x509   : > { %v2740_v22 = vsub.f32 %v1173_v7, %v1188_v19 }
 0x50b   : > { %v1192_v20 = vmul.f32 %v2740_v22, %v2740_v22 }
 0x50d   : > { %1194 = vadd.xlane.f32.xlu2 %v1192_v20 }
 0x50e   : > { %v1180_v23 = vpop.xlane.xlu0 %1179 }
 0x50f   : > { %v1189_v21 = vmul.f32 %v2737_v17, %v1180_v23 }
 0x511   : > { %v2745_v24 = vsub.f32 %v1174_v10, %v1189_v21 }
 0x513   : > { %v1193_v25 = vmul.f32 %v2745_v24, %v2745_v24 }
 0x515   : > { %1196 = vadd.xlane.f32.xlu2 %v1193_v25 }
 0x580   : > { %v1195_v7 = vpop.xlane.xlu2 %1194 }
 0x581   : > { %v1198_v10 = vmul.f32 %v1195_v7, %v2737_v17 }
 0x583   : > { %v1200_v12 = vadd.f32 1e-12, %v1198_v10 }
 0x585   : > { %2320 = vrsqrt.f32 %v1200_v12  ;;  %vm1208_vm4 = vweird.f32 %v1200_v12 }
 0x588   : > { %v1197_v13 = vpop.xlane.xlu2 %1196 }
 0x589   : > { %v1199_v14 = vmul.f32 %v1197_v13, %v2737_v17  ;;  %v2222_v13 = vld [vmem:[#allocation9 + $0x70] sm:$0xff] }
 0x58a   : > { %1690 = vmatpush.bf16.msra.mxu1 %v2222_v13 }
 0x58b   : > { %v2321_v15 = vpop.eup %2320  ;;  %v1201_v16 = vadd.f32 1e-12, %v1199_v14 }
 0x58c   : > { %v1203_v18 = vmul.f32 %v2321_v15, %v1200_v12  ;;  %vm1209_vm3 = vweird.f32 %v2321_v15  ;;  %v2214_v12 = vld [vmem:[#allocation9 + $0x30] sm:$0xff] }
 0x58d   : > { %2322 = vrsqrt.f32 %v1201_v16  ;;  %vm1210_vm5 = vmor %vm1208_vm4, %vm1209_vm3  ;;  %vm1218_vm7 = vweird.f32 %v1201_v16  ;;  %1676 = vmatpush.bf16.msra.mxu0 %v2214_v12 }
 0x58e   : > { %v1204_v19 = vmul.f32 %v2321_v15, %v1203_v18 }
 0x590   : > { %v1205_v20 = vmul.f32 0.5, %v1204_v19 }
 0x592   : > { %v1206_v23 = vsub.f32 1.5, %v1205_v20 }
 0x593   : > { %v2323_v21 = vpop.eup %2322 }
 0x594   : > { %v1207_v25 = vmul.f32 %v2321_v15, %v1206_v23  ;;  %v1213_v26 = vmul.f32 %v2323_v21, %v1201_v16  ;;  %vm1219_vm6 = vweird.f32 %v2323_v21 }
 0x595   : > { %vm1220_vm8 = vmor %vm1218_vm7, %vm1219_vm6 }
 0x596   : > { %v1214_v27 = vmul.f32 %v2323_v21, %v1213_v26  ;;  %v1211_v28 = vsel %vm1210_vm5, %v2321_v15, %v1207_v25 }
 0x597   : > { %v1222_v31 = vmul.f32 %v1211_v28, %v2740_v22 }
 0x598   : > { %v1215_v29 = vmul.f32 0.5, %v1214_v27 }
 0x599   : > { %v1227_v36 = vmul.f32 %v2297_v32, %v1222_v31  ;;  %v2213_v31 = vld [vmem:[#allocation9 + $0x28] sm:$0xff] }
 0x59a   : > { %v1216_v30 = vsub.f32 1.5, %v1215_v29  ;;  %1677 = vmatpush.bf16.msra.mxu0 %v2213_v31 }
 0x59b   : > { %v2855_v39 = vadd.f32 %v2298_v37, %v1227_v36 }
 0x59c   : > { %v1217_v33 = vmul.f32 %v2323_v21, %v1216_v30 }
 0x59e   : > { %v1221_v34 = vsel %vm1220_vm8, %v2323_v21, %v1217_v33 }
 0x59f   : > { %v1223_v35 = vmul.f32 %v1221_v34, %v2745_v24  ;;  %v1253_v24 = vperm.slane %v1251_v41, 0 }
 0x5a1   : > { %v1228_v38 = vmul.f32 %v2297_v32, %v1223_v35  ;;  %v2221_v32 = vld [vmem:[#allocation9 + $0x68] sm:$0xff] }
 0x5a2   : > { %1691 = vmatpush.bf16.msra.mxu1 %v2221_v32 }
 0x5a3   : > { %v2857_v40 = vadd.f32 %v2298_v37, %v1228_v38 }
 0x5a5   : > { %v1234_v22 = vpack.c.bf16 %v2857_v40, %v2855_v39 }
 0x5a7   : > { %1345 = vmatmul.bf16.vlgmr.msrb.gmra.mxu2 %v1234_v22  ;;  %1359 = vmatmul.bf16.vlgmr.msrb.gmra.mxu3 %v1234_v22 }
 0x62a   : > { %v1346_v43 = vpop.f32.mrf.mxu2  ;;  %v1360_v44 = vpop.f32.mrf.mxu3 }
 0x62b   : > { %v2864_v45 = vadd.f32 %v1346_v43, %v1253_v24  ;;  %v2866_v46 = vadd.f32 %v1360_v44, %v1254_v42  ;;  %v2212_v44 = vld [vmem:[#allocation9 + $0x20] sm:$0xff] }
 0x62c   : > { %1678 = vmatpush.bf16.msra.mxu0 %v2212_v44 }
 0x62d   : > { %v2869_v47 = vmul.f32 0.70710677, %v2864_v45  ;;  %v2872_v48 = vmul.f32 0.70710677, %v2866_v46 }
 0x62f   : > { %v1373_v49 = vmul.f32 %v2869_v47, %v2869_v47  ;;  %v1413_v50 = vmul.f32 %v2872_v48, %v2872_v48 }
 0x631   : > { %v2878_v51 = vmin.f32 %v1373_v49, 16.0  ;;  %v2880_v52 = vmin.f32 %v1413_v50, 16.0  ;;  %v2220_v49 = vld [vmem:[#allocation9 + $0x60] sm:$0xff] }
 0x632   : > { %v1348_v53 = vpop.f32.mrf.mxu2  ;;  %v1362_v54 = vpop.f32.mrf.mxu3  ;;  %1692 = vmatpush.bf16.msra.mxu1 %v2220_v49 }
 0x633   : > { %v1375_v55 = vmul.f32 2.1237322e-06, %v2878_v51  ;;  %v1386_v56 = vmul.f32 3.8918573e-05, %v2878_v51  ;;  %v2884_v57 = vadd.f32 %v1348_v53, %v1253_v24  ;;  %v1426_v58 = vmul.f32 3.8918573e-05, %v2880_v52 }
 0x634   : > { %v2887_v59 = vadd.f32 %v1362_v54, %v1254_v42  ;;  %v1415_v1 = vmul.f32 2.1237322e-06, %v2880_v52 }
 0x635   : > { %v1376_v60 = vadd.f32 0.00028619796, %v1375_v55  ;;  %v1387_v61 = vadd.f32 0.001143296, %v1386_v56  ;;  %v1427_v62 = vadd.f32 0.001143296, %v1426_v58 }
 0x636   : > { %v2890_v63 = vmul.f32 0.70710677, %v2884_v57  ;;  %v2895_v2 = vmul.f32 0.70710677, %v2887_v59  ;;  %v1416_v15 = vadd.f32 0.00028619796, %v1415_v1 }
 0x637   : > { %v1388_v0 = vmul.f32 %v1387_v61, %v2878_v51  ;;  %v1428_v5 = vmul.f32 %v1427_v62, %v2880_v52  ;;  %v1377_v7 = vmul.f32 %v1376_v60, %v2878_v51  ;;  %v2211_v60 = vld [vmem:[#allocation9 + $0x18] sm:$0xff] }
 0x638   : > { %v1453_v6 = vmul.f32 %v2890_v63, %v2890_v63  ;;  %v1493_v9 = vmul.f32 %v2895_v2, %v2895_v2  ;;  %v1417_v29 = vmul.f32 %v1416_v15, %v2880_v52  ;;  %v2219_v1 = vld [vmem:[#allocation9 + $0x58] sm:$0xff]  ;;  %1679 = vmatpush.bf16.msra.mxu0 %v2211_v60 }
 0x639   : > { %v1389_v8 = vadd.f32 0.014752088, %v1388_v0  ;;  %v1429_v10 = vadd.f32 0.014752088, %v1428_v5  ;;  %v1378_v23 = vadd.f32 0.0036580483, %v1377_v7  ;;  %1693 = vmatpush.bf16.msra.mxu1 %v2219_v1 }
 0x63a   : > { %v2903_v11 = vmin.f32 %v1453_v6, 16.0  ;;  %v2906_v16 = vmin.f32 %v1493_v9, 16.0  ;;  %v1418_v42 = vadd.f32 0.0036580483, %v1417_v29  ;;  %v2210_v7 = vld [vmem:[#allocation9 + $0x10] sm:$0xff] }
 0x63b   : > { %v1390_v14 = vmul.f32 %v1389_v8, %v2878_v51  ;;  %v1430_v18 = vmul.f32 %v1429_v10, %v2880_v52  ;;  %v1379_v37 = vmul.f32 %v1378_v23, %v2878_v51  ;;  %v2218_v8 = vld [vmem:[#allocation9 + $0x50] sm:$0xff]  ;;  %v2209_v23 = vld [vmem:[#allocation9 + $0x8] sm:$0xff] }
 0x63c   : > { %v1455_v19 = vmul.f32 2.1237322e-06, %v2903_v11  ;;  %v1466_v20 = vmul.f32 3.8918573e-05, %v2903_v11  ;;  %v1495_v30 = vmul.f32 2.1237322e-06, %v2906_v16  ;;  %v1419_v4 = vmul.f32 %v1418_v42, %v2880_v52  ;;  %1680 = vmatpush.bf16.msra.mxu0 %v2210_v7 }
 0x63d   : > { %v1391_v21 = vadd.f32 0.112945676, %v1390_v14  ;;  %v1431_v25 = vadd.f32 0.112945676, %v1430_v18  ;;  %v1506_v36 = vmul.f32 3.8918573e-05, %v2906_v16  ;;  %1694 = vmatpush.bf16.msra.mxu1 %v2218_v8 }
 0x63e   : > { %v1456_v26 = vadd.f32 0.00028619796, %v1455_v19  ;;  %v1467_v27 = vadd.f32 0.001143296, %v1466_v20  ;;  %v1496_v54 = vadd.f32 0.00028619796, %v1495_v30 }
 0x63f   : > { %v1392_v28 = vmul.f32 %v1391_v21, %v2878_v51  ;;  %v1432_v33 = vmul.f32 %v1431_v25, %v2880_v52  ;;  %v1507_v55 = vadd.f32 0.001143296, %v1506_v36  ;;  %v1380_v56 = vadd.f32 0.05243302, %v1379_v37  ;;  %v2217_v21 = vld [vmem:[#allocation9 + $0x48] sm:$0xff]  ;;  %v2208_v37 = vld [vmem:[#allocation9] sm:$0xff] }
 0x640   : > { %v1457_v34 = vmul.f32 %v1456_v26, %v2903_v11  ;;  %v1468_v35 = vmul.f32 %v1467_v27, %v2903_v11  ;;  %v1497_v5 = vmul.f32 %v1496_v54, %v2906_v16  ;;  %v1420_v13 = vadd.f32 0.05243302, %v1419_v4  ;;  %1681 = vmatpush.bf16.msra.mxu0 %v2209_v23 }
 0x641   : > { %v1393_v38 = vadd.f32 0.4994258, %v1392_v28  ;;  %v1433_v22 = vadd.f32 0.4994258, %v1432_v33  ;;  %v1508_v0 = vmul.f32 %v1507_v55, %v2906_v16  ;;  %v1381_v6 = vmul.f32 %v1380_v56, %v2878_v51  ;;  %1695 = vmatpush.bf16.msra.mxu1 %v2217_v21 }
 0x642   : > { %v1469_v41 = vadd.f32 0.014752088, %v1468_v35  ;;  %v1458_v43 = vadd.f32 0.0036580483, %v1457_v34  ;;  %v1498_v15 = vadd.f32 0.0036580483, %v1497_v5  ;;  %v1421_v32 = vmul.f32 %v1420_v13, %v2880_v52 }
 0x643   : > { %v1394_v24 = vmul.f32 %v1393_v38, %v2878_v51  ;;  %v1434_v50 = vmul.f32 %v1433_v22, %v2880_v52  ;;  %v1509_v10 = vadd.f32 0.014752088, %v1508_v0  ;;  %v1382_v20 = vadd.f32 0.18741608, %v1381_v6  ;;  %v2216_v38 = vld [vmem:[#allocation9 + $0x40] sm:$0xff] }
 0x644   : > { %v1470_v53 = vmul.f32 %v1469_v41, %v2903_v11  ;;  %v1459_v3 = vmul.f32 %v1458_v43, %v2903_v11  ;;  %v1499_v34 = vmul.f32 %v1498_v15, %v2906_v16  ;;  %v1422_v49 = vadd.f32 0.18741608, %v1421_v32  ;;  %1682 = vmatpush.bf16.msra.mxu0 %v2208_v37 }
 0x645   : > { %v2922_v58 = vadd.f32 1.0, %v1394_v24  ;;  %v2924_v61 = vadd.f32 1.0, %v1434_v50  ;;  %v1510_v18 = vmul.f32 %v1509_v10, %v2906_v16  ;;  %v1383_v35 = vmul.f32 %v1382_v20, %v2878_v51  ;;  %1696 = vmatpush.bf16.msra.mxu1 %v2216_v38 }
 0x646   : > { %v1471_v62 = vadd.f32 0.112945676, %v1470_v53  ;;  %v1460_v12 = vadd.f32 0.05243302, %v1459_v3  ;;  %v1500_v50 = vadd.f32 0.05243302, %v1499_v34 }
 0x647   : > { %2324 = vrcp.f32 %v2922_v58  ;;  %v1511_v30 = vadd.f32 0.112945676, %v1510_v18  ;;  %v1407_v44 = vand.u32 2147483648, %v2922_v58  ;;  %v1384_v53 = vadd.f32 1.1283791, %v1383_v35 }
 0x648   : > { %2326 = vrcp.f32 %v2924_v61  ;;  %v1472_v9 = vmul.f32 %v1471_v62, %v2903_v11  ;;  %v1461_v29 = vmul.f32 %v1460_v12, %v2903_v11  ;;  %vm1401_vm10 = vweird.f32 %v2922_v58 }
 0x649   : > { %v1512_v36 = vmul.f32 %v1511_v30, %v2906_v16  ;;  %v1405_v51 = vand.u32 2147483647, %v2922_v58  ;;  %v1408_v1 = vor.u32 1.1754944e-38, %v1407_v44  ;;  %v1501_v3 = vmul.f32 %v1500_v50, %v2906_v16 }
 0x64a   : > { %v1473_v14 = vadd.f32 0.4994258, %v1472_v9  ;;  %v1462_v24 = vadd.f32 0.18741608, %v1461_v29  ;;  %v1385_v4 = vmul.f32 %v1384_v53, %v2869_v47  ;;  %v1447_v8 = vand.u32 2147483648, %v2924_v61 }
 0x64b   : > { %v1513_v42 = vadd.f32 0.4994258, %v1512_v36  ;;  %vm1406_vm12 = vcmp.eq.f32.partialorder %v1405_v51, 8.507059e+37  ;;  %vm1441_vm14 = vweird.f32 %v2924_v61  ;;  %v1502_v13 = vadd.f32 0.18741608, %v1501_v3 }
 0x64c   : > { %v1474_v27 = vmul.f32 %v1473_v14, %v2903_v11  ;;  %v1463_v60 = vmul.f32 %v1462_v24, %v2903_v11  ;;  %v1445_v11 = vand.u32 2147483647, %v2924_v61  ;;  %v1448_v20 = vor.u32 1.1754944e-38, %v1447_v8 }
 0x64d   : > { %v2325_v19 = vpop.eup %2324  ;;  %v1514_v54 = vmul.f32 %v1513_v42, %v2906_v16  ;;  %v1367_v24 = vmul.f32 0.5, %v2884_v57  ;;  %v1366_v57 = vmul.f32 0.5, %v2866_v46 }
 0x64e   : > { %v2935_v25 = vpop.eup %2326  ;;  %v1397_v26 = vmul.f32 %v2325_v19, %v2922_v58  ;;  %v1475_v33 = vadd.f32 1.0, %v1474_v27  ;;  %vm1402_vm9 = vweird.f32 %v2325_v19  ;;  %v1423_v58 = vmul.f32 %v1422_v49, %v2880_v52 }
 0x64f   : > { %v1437_v28 = vmul.f32 %v2935_v25, %v2924_v61  ;;  %vm1403_vm11 = vmor %vm1401_vm10, %vm1402_vm9  ;;  %v2952_v62 = vadd.f32 1.0, %v1514_v54  ;;  %vm1442_vm13 = vweird.f32 %v2935_v25  ;;  %v1464_v9 = vadd.f32 1.1283791, %v1463_v60 }
 0x650   : > { %v1398_v31 = vsub.f32 1.0, %v1397_v26  ;;  %2328 = vrcp.f32 %v1475_v33  ;;  %v1485_v47 = vand.u32 2147483647, %v1475_v33  ;;  %v1487_v12 = vand.u32 2147483648, %v1475_v33  ;;  %vm2963_vm15 = vmor %vm1441_vm14, %vm1442_vm13 }
 0x651   : > { %v1438_v41 = vsub.f32 1.0, %v1437_v28  ;;  %2330 = vrcp.f32 %v2952_v62  ;;  %v1424_v18 = vadd.f32 1.1283791, %v1423_v58  ;;  %vm1446_vm1 = vcmp.eq.f32.partialorder %v1445_v11, 8.507059e+37  ;;  %v2299_v58 = vld [vmem:[%s3020_s15] ss:$0 sm:$0xff] }
 0x652   : > { %v1399_v22 = vmul.f32 %v2325_v19, %v1398_v31  ;;  %vm1481_vm2 = vweird.f32 %v1475_v33  ;;  %v1465_v21 = vmul.f32 %v1464_v9, %v2890_v63  ;;  %vm1486_vm4 = vcmp.eq.f32.partialorder %v1485_v47, 8.507059e+37 }
 0x653   : > { %v1439_v55 = vmul.f32 %v2935_v25, %v1438_v41  ;;  %v1488_v26 = vor.u32 1.1754944e-38, %v1487_v12  ;;  %v1503_v27 = vmul.f32 %v1502_v13, %v2906_v16  ;;  %v1425_v32 = vmul.f32 %v1424_v18, %v2872_v48 }
 0x654   : > { %v1400_v43 = vadd.f32 %v2325_v19, %v1399_v22  ;;  %v1525_v37 = vand.u32 2147483647, %v2952_v62  ;;  %v1527_v63 = vand.u32 2147483648, %v2952_v62  ;;  %v1365_v16 = vmul.f32 0.5, %v2864_v45 }
 0x655   : > { %v1440_v7 = vadd.f32 %v2935_v25, %v1439_v55  ;;  %vm1521_vm6 = vweird.f32 %v2952_v62 }
 0x656   : > { %v1404_v56 = vsel %vm1403_vm11, %v2325_v19, %v1400_v43  ;;  %v2329_v0 = vpop.eup %2328  ;;  %v1528_v49 = vor.u32 1.1754944e-38, %v1527_v63  ;;  %vm1526_vm8 = vcmp.eq.f32.partialorder %v1525_v37, 8.507059e+37 }
 0x657   : > { %v1477_v5 = vmul.f32 %v2329_v0, %v1475_v33  ;;  %v1409_v6 = vsel %vm1406_vm12, %v1408_v1, %v1404_v56  ;;  %vm1482_vm0 = vweird.f32 %v2329_v0  ;;  %v1444_v19 = vsel %vm2963_vm15, %v2935_v25, %v1440_v7  ;;  %v2331_v61 = vpop.eup %2330 }
 0x658   : > { %v1410_v52 = vmul.f32 %v1409_v6, %v1385_v4  ;;  %vm1483_vm3 = vmor %vm1481_vm2, %vm1482_vm0  ;;  %v1449_v29 = vsel %vm1446_vm1, %v1448_v20, %v1444_v19  ;;  %v1517_v31 = vmul.f32 %v2331_v61, %v2952_v62  ;;  %v1504_v33 = vadd.f32 1.1283791, %v1503_v27 }
 0x659   : > { %v1478_v10 = vsub.f32 1.0, %v1477_v5  ;;  %v1450_v36 = vmul.f32 %v1449_v29, %v1425_v32  ;;  %vm1522_vm5 = vweird.f32 %v2331_v61 }
 0x65a   : > { %v2088_v28 = vclamps-f32 %v1410_v52, 1.0  ;;  %v1518_v35 = vsub.f32 1.0, %v1517_v31  ;;  %v1505_v44 = vmul.f32 %v1504_v33, %v2895_v2  ;;  %vm1523_vm7 = vmor %vm1521_vm6, %vm1522_vm5 }
 0x65b   : > { %v1479_v15 = vmul.f32 %v2329_v0, %v1478_v10  ;;  %v2089_v48 = vclamps-f32 %v1450_v36, 1.0  ;;  %v2301_v36 = vld [vmem:[%s3043_s21] ss:$0 sm:$0xff] }
 0x65c   : > { %v1533_v38 = vadd.f32 1.0, %v2088_v28  ;;  %v1519_v41 = vmul.f32 %v2331_v61, %v1518_v35 }
 0x65d   : > { %v1480_v23 = vadd.f32 %v2329_v0, %v1479_v15  ;;  %v1534_v60 = vadd.f32 1.0, %v2089_v48 }
 0x65e   : > { %v1520_v43 = vadd.f32 %v2331_v61, %v1519_v41  ;;  %v1537_v50 = vmul.f32 %v1533_v38, %v1365_v16 }
 0x65f   : > { %v1484_v30 = vsel %vm1483_vm3, %v2329_v0, %v1480_v23  ;;  %v1368_v0 = vmul.f32 0.5, %v2887_v59  ;;  %v1538_v1 = vmul.f32 %v1534_v60, %v1366_v57 }
 0x660   : > { %v1489_v25 = vsel %vm1486_vm4, %v1488_v26, %v1484_v30  ;;  %v1524_v51 = vsel %vm1523_vm7, %v2331_v61, %v1520_v43 }
 0x661   : > { %v1490_v34 = vmul.f32 %v1489_v25, %v1465_v21  ;;  %v1529_v54 = vsel %vm1526_vm8, %v1528_v49, %v1524_v51 }
 0x662   : > { %v1530_v56 = vmul.f32 %v1529_v54, %v1505_v44 }
 0x663   : > { %v2090_v22 = vclamps-f32 %v1490_v34, 1.0  ;;  %v2300_v34 = vld [vmem:[%s3021_s16] ss:$0 sm:$0xff] }
 0x664   : > { %v2091_v45 = vclamps-f32 %v1530_v56, 1.0 }
 0x665   : > { %v1535_v42 = vadd.f32 1.0, %v2090_v22 }
 0x666   : > { %v1536_v62 = vadd.f32 1.0, %v2091_v45 }
 0x667   : > { %v1539_v53 = vmul.f32 %v1535_v42, %v1367_v24 }
 0x668   : > { %v1540_v3 = vmul.f32 %v1536_v62, %v1368_v0 }
 0x669   : > { %v1541_v55 = vpack.c.bf16 %v1539_v53, %v1537_v50 }
 0x66a   : > { %v1542_v2 = vpack.c.bf16 %v1540_v3, %v1538_v1 }
 0x66b   : > { %1683 = vmatmul.bf16.vlgmr.msra.gmra.mxu0 %v1541_v55 }
 0x66c   : > { %1697 = vmatmul.bf16.vlgmr.msra.gmra.mxu1 %v1542_v2 }
 0x6e8   : > { %v1684_v4 = vpop.f32.mrf.mxu0 }
 0x6e9   : > { %v1685_v5 = vadd.f32 %v2299_v58, %v1684_v4  ;;  %v1698_v6 = vpop.f32.mrf.mxu1 }
 0x6eb   : > { %v1699_v7 = vadd.f32 %v1698_v6, %v1685_v5 }
 0x6ed   : > { %v1703_v8 = vadd.f32 %v1699_v7, %v2855_v39 }
 0x6ef   : > { %1707 = vadd.xlane.f32.xlu1 %v1703_v8 }
 0x6f0   : > { %v1686_v11 = vpop.f32.mrf.mxu0 }
 0x6f1   : > { %v1687_v46 = vadd.f32 %v2299_v58, %v1686_v11  ;;  %v1700_v9 = vpop.f32.mrf.mxu1 }
 0x6f3   : > { %v1701_v59 = vadd.f32 %v1700_v9, %v1687_v46 }
 0x6f5   : > { %v1704_v10 = vadd.f32 %v1701_v59, %v2857_v40 }
 0x6f7   : > { %1709 = vadd.xlane.f32.xlu2 %v1704_v10 }
 0x762   : > { %v1708_v47 = vpop.xlane.xlu1 %1707 }
 0x763   : > { %v1711_v12 = vmul.f32 %v1708_v47, %v2737_v17 }
 0x765   : > { %v1713_v13 = vsub.f32 %v1703_v8, %v1711_v12 }
 0x767   : > { %v1715_v52 = vmul.f32 %v1713_v13, %v1713_v13 }
 0x769   : > { %1717 = vadd.xlane.f32.xlu1 %v1715_v52 }
 0x76a   : > { %v1710_v14 = vpop.xlane.xlu2 %1709 }
 0x76b   : > { %v1712_v15 = vmul.f32 %v1710_v14, %v2737_v17 }
 0x76d   : > { %v1714_v18 = vsub.f32 %v1704_v10, %v1712_v15 }
 0x76f   : > { %v1716_v19 = vmul.f32 %v1714_v18, %v1714_v18 }
 0x771   : > { %1719 = vadd.xlane.f32.xlu2 %v1716_v19 }
 0x7dc   : > { %v1718_v39 = vpop.xlane.xlu1 %1717 }
 0x7dd   : > { %v1721_v20 = vmul.f32 %v1718_v39, %v2737_v17 }
 0x7df   : > { %v1723_v23 = vadd.f32 1e-12, %v1721_v20 }
 0x7e1   : > { %2332 = vrsqrt.f32 %v1723_v23  ;;  %vm1731_vm10 = vweird.f32 %v1723_v23 }
 0x7e4   : > { %v1720_v61 = vpop.xlane.xlu2 %1719 }
 0x7e5   : > { %v1722_v40 = vmul.f32 %v1720_v61, %v2737_v17 }
 0x7e7   : > { %v2333_v21 = vpop.eup %2332  ;;  %v1724_v26 = vadd.f32 1e-12, %v1722_v40 }
 0x7e8   : > { %v1726_v27 = vmul.f32 %v2333_v21, %v1723_v23  ;;  %vm1732_vm9 = vweird.f32 %v2333_v21 }
 0x7e9   : > { %2334 = vrsqrt.f32 %v1724_v26  ;;  %vm1733_vm11 = vmor %vm1731_vm10, %vm1732_vm9  ;;  %vm1741_vm13 = vweird.f32 %v1724_v26 }
 0x7ea   : > { %v1727_v28 = vmul.f32 %v2333_v21, %v1726_v27 }
 0x7ec   : > { %v1728_v29 = vmul.f32 0.5, %v1727_v28 }
 0x7ee   : > { %v1729_v30 = vsub.f32 1.5, %v1728_v29 }
 0x7ef   : > { %v2335_v31 = vpop.eup %2334 }
 0x7f0   : > { %v1730_v32 = vmul.f32 %v2333_v21, %v1729_v30  ;;  %v1736_v25 = vmul.f32 %v2335_v31, %v1724_v26  ;;  %vm1742_vm12 = vweird.f32 %v2335_v31 }
 0x7f1   : > { %vm1743_vm14 = vmor %vm1741_vm13, %vm1742_vm12 }
 0x7f2   : > { %v1734_v35 = vsel %vm1733_vm11, %v2333_v21, %v1730_v32  ;;  %v1737_v17 = vmul.f32 %v2335_v31, %v1736_v25 }
 0x7f3   : > { %v1745_v33 = vmul.f32 %v1734_v35, %v1713_v13 }
 0x7f4   : > { %v1738_v37 = vmul.f32 0.5, %v1737_v17 }
 0x7f5   : > { %v1750_v63 = vmul.f32 %v2300_v34, %v1745_v33 }
 0x7f6   : > { %v1739_v38 = vsub.f32 1.5, %v1738_v37 }
 0x7f7   : > { %v1755_v22 = vadd.f32 %v2301_v36, %v1750_v63 }
 0x7f8   : > { %v1740_v41 = vmul.f32 %v2335_v31, %v1739_v38 }
 0x7f9   : > { %1757 = vst [vmem:[%s672_s27] sm:$0xff] %v1755_v22 }
 0x7fa   : > { %v1744_v16 = vsel %vm1743_vm14, %v2335_v31, %v1740_v41 }
 0x7fb   : > { %v1746_v24 = vmul.f32 %v1744_v16, %v1714_v18 }
 0x7fd   : > { %v1751_v42 = vmul.f32 %v2300_v34, %v1746_v24 }
 0x7ff   : > { %v1756_v43 = vadd.f32 %v2301_v36, %v1751_v42 }
 0x801   : > { %1758 = vst [vmem:[%s672_s27 + $0x8] sm:$0xff] %v1756_v43 }
 0x802 PF: > { %s3045_s19 = sld [smem:[#allocation13_spill]] }
 0x808   : > { %s31_s27 = sadd.s32 1, %s3045_s19  }
 0x809   : > { %p28_p7 = scmp.ge.s32.totalorder %s31_s27, 4  }
 0x80b   :  { %30 = sbr.rel (!%p28_p7) target bundleno = 11 (0xb), region = 146 }
 0x810   :  { %1780 = vsyncpa [#allocation3], 1 }
 0x811   :  { %1782 = vsyncpa [#allocation3 + $0x1], 1 }
 0x812   :  { %1783 = vsyncpa [#allocation5], 1 }
 0x813   :  { %1784 = vsyncpa [#allocation8], 1 }

</bundles_post_ra>
